<compile_context>
chip_gen: v7x
topology: tpu7x:2x2x1
jax: 0.10.0
libtpu: 0.0.40
codegen_flags: <defaults>
</compile_context>

<pallas_src>
import numpy as np

import jax
import jax.numpy as jnp
from jax.experimental import pallas as pl
from jax.experimental.pallas import tpu as pltpu


N_BATCH = 2
H = W = 16
# sublane-aligned padded row counts (interior image rows live at 1..H_layer)
R16, R8, R4 = 24, 16, 8


# ----------------------------------------------------------------------------
# Kernel-constant ordering (single source of truth for wrapper + kernel unpack)
# ----------------------------------------------------------------------------
_CONST_NAMES = (
    # interior-row masks and +-1 row-shift matrices, per padded row count
    "mask24", "mask16", "mask8",
    "sdn24", "sup24", "sdn16", "sup16", "sdn8", "sup8",
    # generator convs: banded weights (3, W*Cin, W*Cout) + lane-tiled biases
    "g_enc1_w", "g_enc1_b", "g_enc2_w", "g_enc2_b", "g_bott_w", "g_bott_b",
    "g_dec1_w", "g_dec1_b", "g_dec2_w", "g_dec2_b", "g_head_w", "g_head_b",
    # segmentor convs (dec1 skip-concat folded into two banded groups)
    "s_enc1_w", "s_enc1_b", "s_bott_w", "s_bott_b",
    "s_dec1_up_w", "s_dec1_skip_w", "s_dec1_b", "s_head_w", "s_head_b",
    # 2x avg-pool / nearest-upsample expressed as (row, lane) linear maps
    "pool_r_16_8", "pool_c_16_8", "pool_r_8_4", "pool_c_8_4",
    "up_r_4_8", "up_c_4_8", "up_r_8_16", "up_c_8_16",
    # z-vector lane reduction and generated-mask lane selector
    "zcol", "sel_gm",
)

_BF16_CONSTS = frozenset(
    n for n in _CONST_NAMES
    if n.endswith("_w") or n.startswith("pool_") or n.startswith("up_")
)


# ----------------------------------------------------------------------------
# Host-side constant builders (numpy, one-time weight preparation)
# ----------------------------------------------------------------------------
def _band(w, width):
    """3x3 HWIO conv weight -> 3 banded matrices (3, width*Cin, width*Cout)."""
    _, _, cin, cout = w.shape
    out = np.zeros((3, width * cin, width * cout), np.float32)
    for di in range(3):
        for j in range(width):              # output column
            for dj in range(3):
                jin = j + dj - 1            # input column ('same' zero padding)
                if 0 <= jin < width:
                    out[di, jin * cin:(jin + 1) * cin,
                        j * cout:(j + 1) * cout] = w[di, dj]
    return out


def _bias_tile(b, width):
    return np.tile(np.asarray(b, np.float32), width)[None, :]


def _row_mask(rows, h):
    m = np.zeros((rows, 1), np.float32)
    m[1:h + 1, 0] = 1.0
    return m


def _pool_row(r_out, r_in, h_out):
    p = np.zeros((r_out, r_in), np.float32)
    for i in range(h_out):
        p[1 + i, 1 + 2 * i] = 0.5
        p[1 + i, 2 + 2 * i] = 0.5
    return p


def _pool_col(w_in, w_out, ch):
    p = np.zeros((w_in * ch, w_out * ch), np.float32)
    for j in range(w_out):
        for s in range(2):
            for k in range(ch):
                p[(2 * j + s) * ch + k, j * ch + k] = 0.5
    return p


def _up_row(r_out, r_in, h_out):
    u = np.zeros((r_out, r_in), np.float32)
    for i in range(h_out):
        u[1 + i, 1 + i // 2] = 1.0
    return u


def _up_col(w_in, w_out, ch):
    u = np.zeros((w_in * ch, w_out * ch), np.float32)
    for j in range(w_out):
        for k in range(ch):
            u[(j // 2) * ch + k, j * ch + k] = 1.0
    return u


def _zcol(width, ch):
    z = np.zeros((width * ch, ch), np.float32)
    for j in range(width):
        for k in range(ch):
            z[j * ch + k, k] = 1.0
    return z


def _sel_genmask(width, c_all, mask_lo, c_mask):
    s = np.zeros((width * c_all, width * c_mask), np.float32)
    for j in range(width):
        for m in range(c_mask):
            s[j * c_all + mask_lo + m, j * c_mask + m] = 1.0
    return s


def _build_constants(raw):
    c = {}
    c["mask24"], c["mask16"], c["mask8"] = (
        _row_mask(R16, 16), _row_mask(R8, 8), _row_mask(R4, 4))
    for rows, tag in ((R16, "24"), (R8, "16"), (R4, "8")):
        c["sdn" + tag] = np.eye(rows, k=-1, dtype=np.float32)   # out[p] <- in[p-1]
        c["sup" + tag] = np.eye(rows, k=1, dtype=np.float32)    # out[p] <- in[p+1]
    for name, width in (("g_enc1", 16), ("g_enc2", 8), ("g_bott", 4),
                        ("g_dec1", 8), ("g_dec2", 16), ("g_head", 16),
                        ("s_enc1", 16), ("s_bott", 8), ("s_head", 16)):
        w, b = raw[name]
        c[name + "_w"] = _band(w, width)
        c[name + "_b"] = _bias_tile(b, width)
    w, b = raw["s_dec1"]                 # skip concat = [upsampled(16ch) | enc1(8ch)]
    c["s_dec1_up_w"] = _band(w[:, :, 0:16, :], 16)
    c["s_dec1_skip_w"] = _band(w[:, :, 16:24, :], 16)
    c["s_dec1_b"] = _bias_tile(b, 16)
    c["pool_r_16_8"], c["pool_c_16_8"] = _pool_row(R8, R16, 8), _pool_col(16, 8, 8)
    c["pool_r_8_4"], c["pool_c_8_4"] = _pool_row(R4, R8, 4), _pool_col(8, 4, 16)
    c["up_r_4_8"], c["up_c_4_8"] = _up_row(R8, R4, 8), _up_col(4, 8, 32)
    c["up_r_8_16"], c["up_c_8_16"] = _up_row(R16, R8, 16), _up_col(8, 16, 16)
    c["zcol"] = _zcol(4, 32)
    c["sel_gm"] = _sel_genmask(16, 5, 3, 2)

    out = {}
    for name in _CONST_NAMES:
        dt = jnp.bfloat16 if name in _BF16_CONSTS else jnp.float32
        out[name] = jnp.asarray(c[name], dtype=dt)
    return out


def build_model(seed=42):
    """Deterministic synthetic weights (replaces torch.load of the checkpoint)."""
    key = jax.random.PRNGKey(seed)
    ks = [jax.random.fold_in(key, i) for i in range(20)]

    def conv_w(k, cin, cout):
        w = jax.random.normal(k, (3, 3, cin, cout), jnp.float32) / np.sqrt(9.0 * cin)
        return np.asarray(w, np.float32)

    def conv_b(k, cout):
        return np.asarray(0.1 * jax.random.normal(k, (cout,), jnp.float32), np.float32)

    raw = {
        "g_enc1": (conv_w(ks[0], 3, 8), conv_b(ks[1], 8)),
        "g_enc2": (conv_w(ks[2], 8, 16), conv_b(ks[3], 16)),
        "g_bott": (conv_w(ks[4], 16, 32), conv_b(ks[5], 32)),
        "g_dec1": (conv_w(ks[6], 32, 16), conv_b(ks[7], 16)),
        "g_dec2": (conv_w(ks[8], 16, 8), conv_b(ks[9], 8)),
        "g_head": (conv_w(ks[10], 8, 5), conv_b(ks[11], 5)),
        "s_enc1": (conv_w(ks[12], 3, 8), conv_b(ks[13], 8)),
        "s_bott": (conv_w(ks[14], 8, 16), conv_b(ks[15], 16)),
        "s_dec1": (conv_w(ks[16], 24, 8), conv_b(ks[17], 8)),
        "s_head": (conv_w(ks[18], 8, 2), conv_b(ks[19], 2)),
    }
    return {"raw": raw, "consts": _build_constants(raw)}


# ----------------------------------------------------------------------------
# The fused Pallas kernel (one grid step == one batch element)
# ----------------------------------------------------------------------------
def _fused_kernel(*refs):
    x_ref = refs[0]
    c = {name: refs[1 + i] for i, name in enumerate(_CONST_NAMES)}
    out_ref = refs[1 + len(_CONST_NAMES)]
    z_ref = refs[2 + len(_CONST_NAMES)]

    f32, bf16 = jnp.float32, jnp.bfloat16

    def mxu(a, b):
        return jnp.dot(a, b, preferred_element_type=f32)

    def conv3x3(groups, bias, mask, sdn, sup, relu):
        # groups: [(slab_bf16 (R, W*Cin), band_ref (3, W*Cin, W*Cout)), ...]
        rows = groups[0][0].shape[0]
        ncol = groups[0][1].shape[-1]
        acc = jnp.zeros((rows, ncol), f32)
        for slab, band in groups:
            y_top = mxu(slab, band[0])      # input row p-1 contribution
            y_mid = mxu(slab, band[1])      # input row p
            y_bot = mxu(slab, band[2])      # input row p+1
            acc = acc + y_mid + mxu(sdn[...], y_top) + mxu(sup[...], y_bot)
        acc = acc + bias[...]
        if relu:
            acc = jnp.maximum(acc, 0.0)
        return acc * mask[...]              # zero padded border rows (f32 epilogue)

    def resize(slab, row_m, col_m):         # avg-pool / nearest-upsample as GEMMs
        t = mxu(row_m[...], slab.astype(bf16))
        return mxu(t.astype(bf16), col_m[...])

    x = x_ref[0]                                             # (24, 48) bf16

    # ---------------- generator (unet_withoutskip, frozen) ------------------
    e1 = conv3x3([(x, c["g_enc1_w"])], c["g_enc1_b"], c["mask24"],
                 c["sdn24"], c["sup24"], True)               # (24, 128)
    p1 = resize(e1, c["pool_r_16_8"], c["pool_c_16_8"])       # (16, 64)
    e2 = conv3x3([(p1.astype(bf16), c["g_enc2_w"])], c["g_enc2_b"], c["mask16"],
                 c["sdn16"], c["sup16"], True)               # (16, 128)
    p2 = resize(e2, c["pool_r_8_4"], c["pool_c_8_4"])         # (8, 64)
    bt = conv3x3([(p2.astype(bf16), c["g_bott_w"])], c["g_bott_b"], c["mask8"],
                 c["sdn8"], c["sup8"], True)                 # (8, 128)

    # z vectors: spatial mean of the bottleneck (borders are already zero)
    z_rows = jnp.sum(bt, axis=0, keepdims=True)              # (1, 128)
    z = mxu(z_rows, c["zcol"][...]) * (1.0 / 16.0)            # (1, 32)

    u1 = resize(bt, c["up_r_4_8"], c["up_c_4_8"])             # (16, 256)
    d1 = conv3x3([(u1.astype(bf16), c["g_dec1_w"])], c["g_dec1_b"], c["mask16"],
                 c["sdn16"], c["sup16"], True)               # (16, 128)
    u2 = resize(d1, c["up_r_8_16"], c["up_c_8_16"])           # (24, 256)
    d2 = conv3x3([(u2.astype(bf16), c["g_dec2_w"])], c["g_dec2_b"], c["mask24"],
                 c["sdn24"], c["sup24"], True)               # (24, 128)
    gen_head = conv3x3([(d2.astype(bf16), c["g_head_w"])], c["g_head_b"],
                       c["mask24"], c["sdn24"], c["sup24"], False)   # (24, 80)

    # ------------------------- segmentor (UNet) -----------------------------
    s1 = conv3x3([(x, c["s_enc1_w"])], c["s_enc1_b"], c["mask24"],
                 c["sdn24"], c["sup24"], True)               # (24, 128)
    sp = resize(s1, c["pool_r_16_8"], c["pool_c_16_8"])       # (16, 64)
    sb = conv3x3([(sp.astype(bf16), c["s_bott_w"])], c["s_bott_b"], c["mask16"],
                 c["sdn16"], c["sup16"], True)               # (16, 128)
    su = resize(sb, c["up_r_8_16"], c["up_c_8_16"])           # (24, 256)
    # skip concat folded into two banded-weight groups (no concat materialized)
    sd = conv3x3([(su.astype(bf16), c["s_dec1_up_w"]),
                  (s1.astype(bf16), c["s_dec1_skip_w"])],
                 c["s_dec1_b"], c["mask24"], c["sdn24"], c["sup24"], True)  # (24,128)
    seg_head = conv3x3([(sd.astype(bf16), c["s_head_w"])], c["s_head_b"],
                       c["mask24"], c["sdn24"], c["sup24"], False)   # (24, 32)

    # ------- fused 0.5*predicted + 0.5*generated mask average (f32) ---------
    gen_mask = mxu(gen_head, c["sel_gm"][...])                # (24, 32)
    avg = 0.5 * (seg_head + gen_mask)

    out_ref[0] = jnp.concatenate([gen_head, seg_head, avg], axis=1)  # (24, 144)
    z_ref[0] = z


def _zero_index_map(ndim):
    def imap(i):
        return (0,) * ndim
    return imap


def _fused_pallas_call(x_slab, consts):
    n = x_slab.shape[0]
    const_list = [consts[k] for k in _CONST_NAMES]

    in_specs = [pl.BlockSpec((1,) + tuple(x_slab.shape[1:]), lambda i: (i, 0, 0))]
    in_specs += [pl.BlockSpec(tuple(a.shape), _zero_index_map(a.ndim))
                 for a in const_list]

    out_shape = (
        jax.ShapeDtypeStruct((n, R16, 144), jnp.float32),   # [gen_head|seg_head|avg]
        jax.ShapeDtypeStruct((n, 1, 32), jnp.float32),      # z vectors
    )
    out_specs = (
        pl.BlockSpec((1, R16, 144), lambda i: (i, 0, 0)),
        pl.BlockSpec((1, 1, 32), lambda i: (i, 0, 0)),
    )
    return pl.pallas_call(
        _fused_kernel,
        out_shape=out_shape,
        grid=(n,),
        in_specs=in_specs,
        out_specs=out_specs,
        compiler_params=pltpu.CompilerParams(
            dimension_semantics=("parallel",)),   # 2-way batch split for v7x megacore
    )(x_slab, *const_list)


@jax.jit
def _forward_arrays(x_nchw, consts):
    n = x_nchw.shape[0]
    x_nhwc = jnp.transpose(x_nchw, (0, 2, 3, 1))                    # (N,16,16,3)
    x_rows = x_nhwc.reshape(n, H, W * 3)                            # lanes = (w, c)
    x_slab = jnp.pad(x_rows, ((0, 0), (1, R16 - H - 1), (0, 0)))    # (N,24,48)
    slab, z = _fused_pallas_call(x_slab.astype(jnp.bfloat16), consts)

    core = slab[:, 1:H + 1, :]
    gen = core[:, :, 0:80].reshape(n, H, W, 5)
    seg = core[:, :, 80:112].reshape(n, H, W, 2)
    avg = core[:, :, 112:144].reshape(n, H, W, 2)
    generated_images = jnp.transpose(gen[..., 0:3], (0, 3, 1, 2))
    generated_masks = jnp.transpose(gen[..., 3:5], (0, 3, 1, 2))
    predicted_masks = jnp.transpose(seg, (0, 3, 1, 2))
    avg_mask = jnp.transpose(avg, (0, 3, 1, 2))
    z_vectors = z[:, 0, :]
    return generated_images, generated_masks, predicted_masks, avg_mask, z_vectors


# ----------------------------------------------------------------------------
# ExpandMani_AE_AvgMaskGenSeg.forward
# ----------------------------------------------------------------------------
def expandmani_forward(model, x_nchw, phase, truth_masks, rate, z_vectors=None):
    """Mirrors ExpandMani_AE_AvgMaskGenSeg.forward (`rate` / `z_vectors` kept
    for API parity with the PyTorch module and unused, as in the original)."""
    gen_imgs, _gen_masks, pred_masks, avg_mask, _z = _forward_arrays(
        x_nchw, model["consts"])
    if phase == "train":
        return (gen_imgs, pred_masks, truth_masks)
    if (phase.find("val") >= 0) or (phase.find("test") >= 0):
        return (gen_imgs, avg_mask, truth_masks)
    raise RuntimeError("avg_mask only defined for val/test phases "
                       "(torch raises UnboundLocalError here)")


# ----------------------------------------------------------------------------
# Pure-JAX (XLA) reference of the same network, for a numerical sanity check
# ----------------------------------------------------------------------------
def _ref_conv(x, w, b, relu):
    y = jax.lax.conv_general_dilated(
        x, jnp.asarray(w), (1, 1), "SAME",
        dimension_numbers=("NHWC", "HWIO", "NHWC"),
        precision=jax.lax.Precision.HIGHEST) + jnp.asarray(b)
    return jnp.maximum(y, 0.0) if relu else y


def _ref_pool(x):
    n, h, w, ch = x.shape
    return x.reshape(n, h // 2, 2, w // 2, 2, ch).mean(axis=(2, 4))


def _ref_up(x):
    return jnp.repeat(jnp.repeat(x, 2, axis=1), 2, axis=2)


def _reference_forward(raw, x_nchw):
    x = jnp.transpose(x_nchw, (0, 2, 3, 1))
    e1 = _ref_conv(x, *raw["g_enc1"], True)
    e2 = _ref_conv(_ref_pool(e1), *raw["g_enc2"], True)
    bt = _ref_conv(_ref_pool(e2), *raw["g_bott"], True)
    z = bt.mean(axis=(1, 2))
    d1 = _ref_conv(_ref_up(bt), *raw["g_dec1"], True)
    d2 = _ref_conv(_ref_up(d1), *raw["g_dec2"], True)
    gh = _ref_conv(d2, *raw["g_head"], False)
    s1 = _ref_conv(x, *raw["s_enc1"], True)
    sb = _ref_conv(_ref_pool(s1), *raw["s_bott"], True)
    sd = _ref_conv(jnp.concatenate([_ref_up(sb), s1], axis=-1), *raw["s_dec1"], True)
    sh = _ref_conv(sd, *raw["s_head"], False)
    gen_images = jnp.transpose(gh[..., 0:3], (0, 3, 1, 2))
    gen_masks = jnp.transpose(gh[..., 3:5], (0, 3, 1, 2))
    pred_masks = jnp.transpose(sh, (0, 3, 1, 2))
    avg = 0.5 * pred_masks + 0.5 * gen_masks
    return gen_images, pred_masks, avg, z


# ----------------------------------------------------------------------------
# Main
# ----------------------------------------------------------------------------
if __name__ == "__main__":
    key = jax.random.PRNGKey(0)
    kx, km = jax.random.split(key)
    x = jax.random.normal(kx, (N_BATCH, 3, H, W), jnp.float32)            # NCHW
    truth_masks = jax.random.normal(km, (N_BATCH, 2, H, W), jnp.float32)

    model = build_model(seed=42)

    # val phase: exercises both networks + the fused mask averaging
    gen_imgs, avg_mask, tmask = expandmani_forward(model, x, "val", truth_masks,
                                                   rate=0.5)
    jax.block_until_ready((gen_imgs, avg_mask, tmask))

    # train phase branch (returns predicted_masks instead of avg_mask)
    out_train = expandmani_forward(model, x, "train", truth_masks, rate=0.5)
    jax.block_until_ready(out_train)

    # numerical sanity check vs. a pure-JAX f32 reference (bf16 MXU tolerance)
    ref_imgs, ref_pred, ref_avg, _ = _reference_forward(model["raw"], x)

    def _relerr(a, b):
        return float(jnp.max(jnp.abs(a - b)) / (jnp.max(jnp.abs(b)) + 1e-6))

    assert _relerr(gen_imgs, ref_imgs) < 0.15, "generator mismatch vs reference"
    assert _relerr(avg_mask, ref_avg) < 0.15, "avg mask mismatch vs reference"
    assert _relerr(out_train[1], ref_pred) < 0.15, "segmentor mismatch vs reference"

    assert gen_imgs.shape == (N_BATCH, 3, H, W)
    assert avg_mask.shape == (N_BATCH, 2, H, W)
    assert tmask.shape == (N_BATCH, 2, H, W)
    print("KERNEL_OK")
</pallas_src>

<mosaic_0001>
module attributes {stable_mosaic.version = 11 : i64} {
  func.func @_fused_kernel(%arg0: i32, %arg1: memref<1x24x48xbf16, #tpu.memory_space<vmem>>, %arg2: memref<24x1xf32, #tpu.memory_space<vmem>>, %arg3: memref<16x1xf32, #tpu.memory_space<vmem>>, %arg4: memref<8x1xf32, #tpu.memory_space<vmem>>, %arg5: memref<24x24xf32, #tpu.memory_space<vmem>>, %arg6: memref<24x24xf32, #tpu.memory_space<vmem>>, %arg7: memref<16x16xf32, #tpu.memory_space<vmem>>, %arg8: memref<16x16xf32, #tpu.memory_space<vmem>>, %arg9: memref<8x8xf32, #tpu.memory_space<vmem>>, %arg10: memref<8x8xf32, #tpu.memory_space<vmem>>, %arg11: memref<3x48x128xbf16, #tpu.memory_space<vmem>>, %arg12: memref<1x128xf32, #tpu.memory_space<vmem>>, %arg13: memref<3x64x128xbf16, #tpu.memory_space<vmem>>, %arg14: memref<1x128xf32, #tpu.memory_space<vmem>>, %arg15: memref<3x64x128xbf16, #tpu.memory_space<vmem>>, %arg16: memref<1x128xf32, #tpu.memory_space<vmem>>, %arg17: memref<3x256x128xbf16, #tpu.memory_space<vmem>>, %arg18: memref<1x128xf32, #tpu.memory_space<vmem>>, %arg19: memref<3x256x128xbf16, #tpu.memory_space<vmem>>, %arg20: memref<1x128xf32, #tpu.memory_space<vmem>>, %arg21: memref<3x128x80xbf16, #tpu.memory_space<vmem>>, %arg22: memref<1x80xf32, #tpu.memory_space<vmem>>, %arg23: memref<3x48x128xbf16, #tpu.memory_space<vmem>>, %arg24: memref<1x128xf32, #tpu.memory_space<vmem>>, %arg25: memref<3x64x128xbf16, #tpu.memory_space<vmem>>, %arg26: memref<1x128xf32, #tpu.memory_space<vmem>>, %arg27: memref<3x256x128xbf16, #tpu.memory_space<vmem>>, %arg28: memref<3x128x128xbf16, #tpu.memory_space<vmem>>, %arg29: memref<1x128xf32, #tpu.memory_space<vmem>>, %arg30: memref<3x128x32xbf16, #tpu.memory_space<vmem>>, %arg31: memref<1x32xf32, #tpu.memory_space<vmem>>, %arg32: memref<16x24xbf16, #tpu.memory_space<vmem>>, %arg33: memref<128x64xbf16, #tpu.memory_space<vmem>>, %arg34: memref<8x16xbf16, #tpu.memory_space<vmem>>, %arg35: memref<128x64xbf16, #tpu.memory_space<vmem>>, %arg36: memref<16x8xbf16, #tpu.memory_space<vmem>>, %arg37: memref<128x256xbf16, #tpu.memory_space<vmem>>, %arg38: memref<24x16xbf16, #tpu.memory_space<vmem>>, %arg39: memref<128x256xbf16, #tpu.memory_space<vmem>>, %arg40: memref<128x32xf32, #tpu.memory_space<vmem>>, %arg41: memref<80x32xf32, #tpu.memory_space<vmem>>, %arg42: memref<1x24x144xf32, #tpu.memory_space<vmem>>, %arg43: memref<1x1x32xf32, #tpu.memory_space<vmem>>) attributes {dimension_semantics = [#tpu.dimension_semantics<parallel>], iteration_bounds = array<i64: 2>, scalar_prefetch = 0 : i64, scratch_operands = 0 : i64, tpu.core_type = #tpu.core_type<tc>, window_params = [{transform_indices = @transform_0, window_bounds = array<i64: 1, 24, 48>}, {pipeline_mode = #tpu.pipeline_mode<synchronous>, transform_indices = @transform_1, window_bounds = array<i64: 24, 1>}, {pipeline_mode = #tpu.pipeline_mode<synchronous>, transform_indices = @transform_2, window_bounds = array<i64: 16, 1>}, {pipeline_mode = #tpu.pipeline_mode<synchronous>, transform_indices = @transform_3, window_bounds = array<i64: 8, 1>}, {pipeline_mode = #tpu.pipeline_mode<synchronous>, transform_indices = @transform_4, window_bounds = array<i64: 24, 24>}, {pipeline_mode = #tpu.pipeline_mode<synchronous>, transform_indices = @transform_5, window_bounds = array<i64: 24, 24>}, {pipeline_mode = #tpu.pipeline_mode<synchronous>, transform_indices = @transform_6, window_bounds = array<i64: 16, 16>}, {pipeline_mode = #tpu.pipeline_mode<synchronous>, transform_indices = @transform_7, window_bounds = array<i64: 16, 16>}, {pipeline_mode = #tpu.pipeline_mode<synchronous>, transform_indices = @transform_8, window_bounds = array<i64: 8, 8>}, {pipeline_mode = #tpu.pipeline_mode<synchronous>, transform_indices = @transform_9, window_bounds = array<i64: 8, 8>}, {pipeline_mode = #tpu.pipeline_mode<synchronous>, transform_indices = @transform_10, window_bounds = array<i64: 3, 48, 128>}, {pipeline_mode = #tpu.pipeline_mode<synchronous>, transform_indices = @transform_11, window_bounds = array<i64: 1, 128>}, {pipeline_mode = #tpu.pipeline_mode<synchronous>, transform_indices = @transform_12, window_bounds = array<i64: 3, 64, 128>}, {pipeline_mode = #tpu.pipeline_mode<synchronous>, transform_indices = @transform_13, window_bounds = array<i64: 1, 128>}, {pipeline_mode = #tpu.pipeline_mode<synchronous>, transform_indices = @transform_14, window_bounds = array<i64: 3, 64, 128>}, {pipeline_mode = #tpu.pipeline_mode<synchronous>, transform_indices = @transform_15, window_bounds = array<i64: 1, 128>}, {pipeline_mode = #tpu.pipeline_mode<synchronous>, transform_indices = @transform_16, window_bounds = array<i64: 3, 256, 128>}, {pipeline_mode = #tpu.pipeline_mode<synchronous>, transform_indices = @transform_17, window_bounds = array<i64: 1, 128>}, {pipeline_mode = #tpu.pipeline_mode<synchronous>, transform_indices = @transform_18, window_bounds = array<i64: 3, 256, 128>}, {pipeline_mode = #tpu.pipeline_mode<synchronous>, transform_indices = @transform_19, window_bounds = array<i64: 1, 128>}, {pipeline_mode = #tpu.pipeline_mode<synchronous>, transform_indices = @transform_20, window_bounds = array<i64: 3, 128, 80>}, {pipeline_mode = #tpu.pipeline_mode<synchronous>, transform_indices = @transform_21, window_bounds = array<i64: 1, 80>}, {pipeline_mode = #tpu.pipeline_mode<synchronous>, transform_indices = @transform_22, window_bounds = array<i64: 3, 48, 128>}, {pipeline_mode = #tpu.pipeline_mode<synchronous>, transform_indices = @transform_23, window_bounds = array<i64: 1, 128>}, {pipeline_mode = #tpu.pipeline_mode<synchronous>, transform_indices = @transform_24, window_bounds = array<i64: 3, 64, 128>}, {pipeline_mode = #tpu.pipeline_mode<synchronous>, transform_indices = @transform_25, window_bounds = array<i64: 1, 128>}, {pipeline_mode = #tpu.pipeline_mode<synchronous>, transform_indices = @transform_26, window_bounds = array<i64: 3, 256, 128>}, {pipeline_mode = #tpu.pipeline_mode<synchronous>, transform_indices = @transform_27, window_bounds = array<i64: 3, 128, 128>}, {pipeline_mode = #tpu.pipeline_mode<synchronous>, transform_indices = @transform_28, window_bounds = array<i64: 1, 128>}, {pipeline_mode = #tpu.pipeline_mode<synchronous>, transform_indices = @transform_29, window_bounds = array<i64: 3, 128, 32>}, {pipeline_mode = #tpu.pipeline_mode<synchronous>, transform_indices = @transform_30, window_bounds = array<i64: 1, 32>}, {pipeline_mode = #tpu.pipeline_mode<synchronous>, transform_indices = @transform_31, window_bounds = array<i64: 16, 24>}, {pipeline_mode = #tpu.pipeline_mode<synchronous>, transform_indices = @transform_32, window_bounds = array<i64: 128, 64>}, {pipeline_mode = #tpu.pipeline_mode<synchronous>, transform_indices = @transform_33, window_bounds = array<i64: 8, 16>}, {pipeline_mode = #tpu.pipeline_mode<synchronous>, transform_indices = @transform_34, window_bounds = array<i64: 128, 64>}, {pipeline_mode = #tpu.pipeline_mode<synchronous>, transform_indices = @transform_35, window_bounds = array<i64: 16, 8>}, {pipeline_mode = #tpu.pipeline_mode<synchronous>, transform_indices = @transform_36, window_bounds = array<i64: 128, 256>}, {pipeline_mode = #tpu.pipeline_mode<synchronous>, transform_indices = @transform_37, window_bounds = array<i64: 24, 16>}, {pipeline_mode = #tpu.pipeline_mode<synchronous>, transform_indices = @transform_38, window_bounds = array<i64: 128, 256>}, {pipeline_mode = #tpu.pipeline_mode<synchronous>, transform_indices = @transform_39, window_bounds = array<i64: 128, 32>}, {pipeline_mode = #tpu.pipeline_mode<synchronous>, transform_indices = @transform_40, window_bounds = array<i64: 80, 32>}, {transform_indices = @transform_41, window_bounds = array<i64: 1, 24, 144>}, {transform_indices = @transform_42, window_bounds = array<i64: 1, 1, 32>}]} {
    %c0 = arith.constant 0 : index
    %c0_0 = arith.constant 0 : index
    %c0_1 = arith.constant 0 : index
    %0 = vector.load %arg1[%c0, %c0_0, %c0_1] : memref<1x24x48xbf16, #tpu.memory_space<vmem>>, vector<1x24x48xbf16>
    %1 = vector.shape_cast %0 : vector<1x24x48xbf16> to vector<24x48xbf16>
    %cst = arith.constant 0.000000e+00 : f32
    %2 = vector.broadcast %cst : f32 to vector<24x128xf32>
    %c0_2 = arith.constant 0 : index
    %c0_3 = arith.constant 0 : index
    %c0_4 = arith.constant 0 : index
    %3 = vector.load %arg11[%c0_2, %c0_3, %c0_4] : memref<3x48x128xbf16, #tpu.memory_space<vmem>>, vector<1x48x128xbf16>
    %4 = vector.shape_cast %3 : vector<1x48x128xbf16> to vector<48x128xbf16>
    %cst_5 = arith.constant dense<0.000000e+00> : vector<24x128xf32>
    %5 = tpu.matmul %1, %4, %cst_5 {dimension_numbers = #tpu.dot_dimension_numbers<[1], [0], [0], [1], [0, 0, 1, 1], [], []>} : vector<24x48xbf16>, vector<48x128xbf16>, vector<24x128xf32> -> vector<24x128xf32>
    %c1 = arith.constant 1 : index
    %c0_6 = arith.constant 0 : index
    %c0_7 = arith.constant 0 : index
    %6 = vector.load %arg11[%c1, %c0_6, %c0_7] : memref<3x48x128xbf16, #tpu.memory_space<vmem>>, vector<1x48x128xbf16>
    %7 = vector.shape_cast %6 : vector<1x48x128xbf16> to vector<48x128xbf16>
    %cst_8 = arith.constant dense<0.000000e+00> : vector<24x128xf32>
    %8 = tpu.matmul %1, %7, %cst_8 {dimension_numbers = #tpu.dot_dimension_numbers<[1], [0], [0], [1], [0, 0, 1, 1], [], []>} : vector<24x48xbf16>, vector<48x128xbf16>, vector<24x128xf32> -> vector<24x128xf32>
    %c2 = arith.constant 2 : index
    %c0_9 = arith.constant 0 : index
    %c0_10 = arith.constant 0 : index
    %9 = vector.load %arg11[%c2, %c0_9, %c0_10] : memref<3x48x128xbf16, #tpu.memory_space<vmem>>, vector<1x48x128xbf16>
    %10 = vector.shape_cast %9 : vector<1x48x128xbf16> to vector<48x128xbf16>
    %cst_11 = arith.constant dense<0.000000e+00> : vector<24x128xf32>
    %11 = tpu.matmul %1, %10, %cst_11 {dimension_numbers = #tpu.dot_dimension_numbers<[1], [0], [0], [1], [0, 0, 1, 1], [], []>} : vector<24x48xbf16>, vector<48x128xbf16>, vector<24x128xf32> -> vector<24x128xf32>
    %12 = arith.addf %2, %8 : vector<24x128xf32>
    %c0_12 = arith.constant 0 : index
    %c0_13 = arith.constant 0 : index
    %13 = vector.load %arg5[%c0_12, %c0_13] : memref<24x24xf32, #tpu.memory_space<vmem>>, vector<24x24xf32>
    %cst_14 = arith.constant dense<0.000000e+00> : vector<24x128xf32>
    %14 = tpu.matmul %13, %5, %cst_14 {dimension_numbers = #tpu.dot_dimension_numbers<[1], [0], [0], [1], [0, 0, 1, 1], [], []>} : vector<24x24xf32>, vector<24x128xf32>, vector<24x128xf32> -> vector<24x128xf32>
    %15 = arith.addf %12, %14 : vector<24x128xf32>
    %c0_15 = arith.constant 0 : index
    %c0_16 = arith.constant 0 : index
    %16 = vector.load %arg6[%c0_15, %c0_16] : memref<24x24xf32, #tpu.memory_space<vmem>>, vector<24x24xf32>
    %cst_17 = arith.constant dense<0.000000e+00> : vector<24x128xf32>
    %17 = tpu.matmul %16, %11, %cst_17 {dimension_numbers = #tpu.dot_dimension_numbers<[1], [0], [0], [1], [0, 0, 1, 1], [], []>} : vector<24x24xf32>, vector<24x128xf32>, vector<24x128xf32> -> vector<24x128xf32>
    %18 = arith.addf %15, %17 : vector<24x128xf32>
    %c0_18 = arith.constant 0 : index
    %c0_19 = arith.constant 0 : index
    %19 = vector.load %arg12[%c0_18, %c0_19] : memref<1x128xf32, #tpu.memory_space<vmem>>, vector<1x128xf32>
    %20 = vector.broadcast %19 : vector<1x128xf32> to vector<24x128xf32>
    %21 = arith.addf %18, %20 : vector<24x128xf32>
    %cst_20 = arith.constant 0.000000e+00 : f32
    %22 = vector.broadcast %cst_20 : f32 to vector<24x128xf32>
    %23 = arith.maximumf %21, %22 : vector<24x128xf32>
    %c0_21 = arith.constant 0 : index
    %c0_22 = arith.constant 0 : index
    %24 = vector.load %arg2[%c0_21, %c0_22] : memref<24x1xf32, #tpu.memory_space<vmem>>, vector<24x1xf32>
    %25 = vector.broadcast %24 : vector<24x1xf32> to vector<24x128xf32>
    %26 = arith.mulf %23, %25 : vector<24x128xf32>
    %c0_23 = arith.constant 0 : index
    %c0_24 = arith.constant 0 : index
    %27 = vector.load %arg32[%c0_23, %c0_24] : memref<16x24xbf16, #tpu.memory_space<vmem>>, vector<16x24xbf16>
    %28 = arith.truncf %26 : vector<24x128xf32> to vector<24x128xbf16>
    %cst_25 = arith.constant dense<0.000000e+00> : vector<16x128xf32>
    %29 = tpu.matmul %27, %28, %cst_25 {dimension_numbers = #tpu.dot_dimension_numbers<[1], [0], [0], [1], [0, 0, 1, 1], [], []>} : vector<16x24xbf16>, vector<24x128xbf16>, vector<16x128xf32> -> vector<16x128xf32>
    %30 = arith.truncf %29 : vector<16x128xf32> to vector<16x128xbf16>
    %c0_26 = arith.constant 0 : index
    %c0_27 = arith.constant 0 : index
    %31 = vector.load %arg33[%c0_26, %c0_27] : memref<128x64xbf16, #tpu.memory_space<vmem>>, vector<128x64xbf16>
    %cst_28 = arith.constant dense<0.000000e+00> : vector<16x64xf32>
    %32 = tpu.matmul %30, %31, %cst_28 {dimension_numbers = #tpu.dot_dimension_numbers<[1], [0], [0], [1], [0, 0, 1, 1], [], []>} : vector<16x128xbf16>, vector<128x64xbf16>, vector<16x64xf32> -> vector<16x64xf32>
    %33 = arith.truncf %32 : vector<16x64xf32> to vector<16x64xbf16>
    %cst_29 = arith.constant 0.000000e+00 : f32
    %34 = vector.broadcast %cst_29 : f32 to vector<16x128xf32>
    %c0_30 = arith.constant 0 : index
    %c0_31 = arith.constant 0 : index
    %c0_32 = arith.constant 0 : index
    %35 = vector.load %arg13[%c0_30, %c0_31, %c0_32] : memref<3x64x128xbf16, #tpu.memory_space<vmem>>, vector<1x64x128xbf16>
    %36 = vector.shape_cast %35 : vector<1x64x128xbf16> to vector<64x128xbf16>
    %cst_33 = arith.constant dense<0.000000e+00> : vector<16x128xf32>
    %37 = tpu.matmul %33, %36, %cst_33 {dimension_numbers = #tpu.dot_dimension_numbers<[1], [0], [0], [1], [0, 0, 1, 1], [], []>} : vector<16x64xbf16>, vector<64x128xbf16>, vector<16x128xf32> -> vector<16x128xf32>
    %c1_34 = arith.constant 1 : index
    %c0_35 = arith.constant 0 : index
    %c0_36 = arith.constant 0 : index
    %38 = vector.load %arg13[%c1_34, %c0_35, %c0_36] : memref<3x64x128xbf16, #tpu.memory_space<vmem>>, vector<1x64x128xbf16>
    %39 = vector.shape_cast %38 : vector<1x64x128xbf16> to vector<64x128xbf16>
    %cst_37 = arith.constant dense<0.000000e+00> : vector<16x128xf32>
    %40 = tpu.matmul %33, %39, %cst_37 {dimension_numbers = #tpu.dot_dimension_numbers<[1], [0], [0], [1], [0, 0, 1, 1], [], []>} : vector<16x64xbf16>, vector<64x128xbf16>, vector<16x128xf32> -> vector<16x128xf32>
    %c2_38 = arith.constant 2 : index
    %c0_39 = arith.constant 0 : index
    %c0_40 = arith.constant 0 : index
    %41 = vector.load %arg13[%c2_38, %c0_39, %c0_40] : memref<3x64x128xbf16, #tpu.memory_space<vmem>>, vector<1x64x128xbf16>
    %42 = vector.shape_cast %41 : vector<1x64x128xbf16> to vector<64x128xbf16>
    %cst_41 = arith.constant dense<0.000000e+00> : vector<16x128xf32>
    %43 = tpu.matmul %33, %42, %cst_41 {dimension_numbers = #tpu.dot_dimension_numbers<[1], [0], [0], [1], [0, 0, 1, 1], [], []>} : vector<16x64xbf16>, vector<64x128xbf16>, vector<16x128xf32> -> vector<16x128xf32>
    %44 = arith.addf %34, %40 : vector<16x128xf32>
    %c0_42 = arith.constant 0 : index
    %c0_43 = arith.constant 0 : index
    %45 = vector.load %arg7[%c0_42, %c0_43] : memref<16x16xf32, #tpu.memory_space<vmem>>, vector<16x16xf32>
    %cst_44 = arith.constant dense<0.000000e+00> : vector<16x128xf32>
    %46 = tpu.matmul %45, %37, %cst_44 {dimension_numbers = #tpu.dot_dimension_numbers<[1], [0], [0], [1], [0, 0, 1, 1], [], []>} : vector<16x16xf32>, vector<16x128xf32>, vector<16x128xf32> -> vector<16x128xf32>
    %47 = arith.addf %44, %46 : vector<16x128xf32>
    %c0_45 = arith.constant 0 : index
    %c0_46 = arith.constant 0 : index
    %48 = vector.load %arg8[%c0_45, %c0_46] : memref<16x16xf32, #tpu.memory_space<vmem>>, vector<16x16xf32>
    %cst_47 = arith.constant dense<0.000000e+00> : vector<16x128xf32>
    %49 = tpu.matmul %48, %43, %cst_47 {dimension_numbers = #tpu.dot_dimension_numbers<[1], [0], [0], [1], [0, 0, 1, 1], [], []>} : vector<16x16xf32>, vector<16x128xf32>, vector<16x128xf32> -> vector<16x128xf32>
    %50 = arith.addf %47, %49 : vector<16x128xf32>
    %c0_48 = arith.constant 0 : index
    %c0_49 = arith.constant 0 : index
    %51 = vector.load %arg14[%c0_48, %c0_49] : memref<1x128xf32, #tpu.memory_space<vmem>>, vector<1x128xf32>
    %52 = vector.broadcast %51 : vector<1x128xf32> to vector<16x128xf32>
    %53 = arith.addf %50, %52 : vector<16x128xf32>
    %cst_50 = arith.constant 0.000000e+00 : f32
    %54 = vector.broadcast %cst_50 : f32 to vector<16x128xf32>
    %55 = arith.maximumf %53, %54 : vector<16x128xf32>
    %c0_51 = arith.constant 0 : index
    %c0_52 = arith.constant 0 : index
    %56 = vector.load %arg3[%c0_51, %c0_52] : memref<16x1xf32, #tpu.memory_space<vmem>>, vector<16x1xf32>
    %57 = vector.broadcast %56 : vector<16x1xf32> to vector<16x128xf32>
    %58 = arith.mulf %55, %57 : vector<16x128xf32>
    %c0_53 = arith.constant 0 : index
    %c0_54 = arith.constant 0 : index
    %59 = vector.load %arg34[%c0_53, %c0_54] : memref<8x16xbf16, #tpu.memory_space<vmem>>, vector<8x16xbf16>
    %60 = arith.truncf %58 : vector<16x128xf32> to vector<16x128xbf16>
    %cst_55 = arith.constant dense<0.000000e+00> : vector<8x128xf32>
    %61 = tpu.matmul %59, %60, %cst_55 {dimension_numbers = #tpu.dot_dimension_numbers<[1], [0], [0], [1], [0, 0, 1, 1], [], []>} : vector<8x16xbf16>, vector<16x128xbf16>, vector<8x128xf32> -> vector<8x128xf32>
    %62 = arith.truncf %61 : vector<8x128xf32> to vector<8x128xbf16>
    %c0_56 = arith.constant 0 : index
    %c0_57 = arith.constant 0 : index
    %63 = vector.load %arg35[%c0_56, %c0_57] : memref<128x64xbf16, #tpu.memory_space<vmem>>, vector<128x64xbf16>
    %cst_58 = arith.constant dense<0.000000e+00> : vector<8x64xf32>
    %64 = tpu.matmul %62, %63, %cst_58 {dimension_numbers = #tpu.dot_dimension_numbers<[1], [0], [0], [1], [0, 0, 1, 1], [], []>} : vector<8x128xbf16>, vector<128x64xbf16>, vector<8x64xf32> -> vector<8x64xf32>
    %65 = arith.truncf %64 : vector<8x64xf32> to vector<8x64xbf16>
    %cst_59 = arith.constant 0.000000e+00 : f32
    %66 = vector.broadcast %cst_59 : f32 to vector<8x128xf32>
    %c0_60 = arith.constant 0 : index
    %c0_61 = arith.constant 0 : index
    %c0_62 = arith.constant 0 : index
    %67 = vector.load %arg15[%c0_60, %c0_61, %c0_62] : memref<3x64x128xbf16, #tpu.memory_space<vmem>>, vector<1x64x128xbf16>
    %68 = vector.shape_cast %67 : vector<1x64x128xbf16> to vector<64x128xbf16>
    %cst_63 = arith.constant dense<0.000000e+00> : vector<8x128xf32>
    %69 = tpu.matmul %65, %68, %cst_63 {dimension_numbers = #tpu.dot_dimension_numbers<[1], [0], [0], [1], [0, 0, 1, 1], [], []>} : vector<8x64xbf16>, vector<64x128xbf16>, vector<8x128xf32> -> vector<8x128xf32>
    %c1_64 = arith.constant 1 : index
    %c0_65 = arith.constant 0 : index
    %c0_66 = arith.constant 0 : index
    %70 = vector.load %arg15[%c1_64, %c0_65, %c0_66] : memref<3x64x128xbf16, #tpu.memory_space<vmem>>, vector<1x64x128xbf16>
    %71 = vector.shape_cast %70 : vector<1x64x128xbf16> to vector<64x128xbf16>
    %cst_67 = arith.constant dense<0.000000e+00> : vector<8x128xf32>
    %72 = tpu.matmul %65, %71, %cst_67 {dimension_numbers = #tpu.dot_dimension_numbers<[1], [0], [0], [1], [0, 0, 1, 1], [], []>} : vector<8x64xbf16>, vector<64x128xbf16>, vector<8x128xf32> -> vector<8x128xf32>
    %c2_68 = arith.constant 2 : index
    %c0_69 = arith.constant 0 : index
    %c0_70 = arith.constant 0 : index
    %73 = vector.load %arg15[%c2_68, %c0_69, %c0_70] : memref<3x64x128xbf16, #tpu.memory_space<vmem>>, vector<1x64x128xbf16>
    %74 = vector.shape_cast %73 : vector<1x64x128xbf16> to vector<64x128xbf16>
    %cst_71 = arith.constant dense<0.000000e+00> : vector<8x128xf32>
    %75 = tpu.matmul %65, %74, %cst_71 {dimension_numbers = #tpu.dot_dimension_numbers<[1], [0], [0], [1], [0, 0, 1, 1], [], []>} : vector<8x64xbf16>, vector<64x128xbf16>, vector<8x128xf32> -> vector<8x128xf32>
    %76 = arith.addf %66, %72 : vector<8x128xf32>
    %c0_72 = arith.constant 0 : index
    %c0_73 = arith.constant 0 : index
    %77 = vector.load %arg9[%c0_72, %c0_73] : memref<8x8xf32, #tpu.memory_space<vmem>>, vector<8x8xf32>
    %cst_74 = arith.constant dense<0.000000e+00> : vector<8x128xf32>
    %78 = tpu.matmul %77, %69, %cst_74 {dimension_numbers = #tpu.dot_dimension_numbers<[1], [0], [0], [1], [0, 0, 1, 1], [], []>} : vector<8x8xf32>, vector<8x128xf32>, vector<8x128xf32> -> vector<8x128xf32>
    %79 = arith.addf %76, %78 : vector<8x128xf32>
    %c0_75 = arith.constant 0 : index
    %c0_76 = arith.constant 0 : index
    %80 = vector.load %arg10[%c0_75, %c0_76] : memref<8x8xf32, #tpu.memory_space<vmem>>, vector<8x8xf32>
    %cst_77 = arith.constant dense<0.000000e+00> : vector<8x128xf32>
    %81 = tpu.matmul %80, %75, %cst_77 {dimension_numbers = #tpu.dot_dimension_numbers<[1], [0], [0], [1], [0, 0, 1, 1], [], []>} : vector<8x8xf32>, vector<8x128xf32>, vector<8x128xf32> -> vector<8x128xf32>
    %82 = arith.addf %79, %81 : vector<8x128xf32>
    %c0_78 = arith.constant 0 : index
    %c0_79 = arith.constant 0 : index
    %83 = vector.load %arg16[%c0_78, %c0_79] : memref<1x128xf32, #tpu.memory_space<vmem>>, vector<1x128xf32>
    %84 = vector.broadcast %83 : vector<1x128xf32> to vector<8x128xf32>
    %85 = arith.addf %82, %84 : vector<8x128xf32>
    %cst_80 = arith.constant 0.000000e+00 : f32
    %86 = vector.broadcast %cst_80 : f32 to vector<8x128xf32>
    %87 = arith.maximumf %85, %86 : vector<8x128xf32>
    %c0_81 = arith.constant 0 : index
    %c0_82 = arith.constant 0 : index
    %88 = vector.load %arg4[%c0_81, %c0_82] : memref<8x1xf32, #tpu.memory_space<vmem>>, vector<8x1xf32>
    %89 = vector.broadcast %88 : vector<8x1xf32> to vector<8x128xf32>
    %90 = arith.mulf %87, %89 : vector<8x128xf32>
    %cst_83 = arith.constant dense<0.000000e+00> : vector<128xf32>
    %91 = vector.multi_reduction <add>, %90, %cst_83 [0] : vector<8x128xf32> to vector<128xf32>
    %92 = vector.shape_cast %91 : vector<128xf32> to vector<1x128xf32>
    %c0_84 = arith.constant 0 : index
    %c0_85 = arith.constant 0 : index
    %93 = vector.load %arg40[%c0_84, %c0_85] : memref<128x32xf32, #tpu.memory_space<vmem>>, vector<128x32xf32>
    %cst_86 = arith.constant dense<0.000000e+00> : vector<1x32xf32>
    %94 = tpu.matmul %92, %93, %cst_86 {dimension_numbers = #tpu.dot_dimension_numbers<[1], [0], [0], [1], [0, 0, 1, 1], [], []>} : vector<1x128xf32>, vector<128x32xf32>, vector<1x32xf32> -> vector<1x32xf32>
    %cst_87 = arith.constant 6.250000e-02 : f32
    %95 = vector.broadcast %cst_87 : f32 to vector<1x32xf32>
    %96 = arith.mulf %94, %95 : vector<1x32xf32>
    %c0_88 = arith.constant 0 : index
    %c0_89 = arith.constant 0 : index
    %97 = vector.load %arg36[%c0_88, %c0_89] : memref<16x8xbf16, #tpu.memory_space<vmem>>, vector<16x8xbf16>
    %98 = arith.truncf %90 : vector<8x128xf32> to vector<8x128xbf16>
    %cst_90 = arith.constant dense<0.000000e+00> : vector<16x128xf32>
    %99 = tpu.matmul %97, %98, %cst_90 {dimension_numbers = #tpu.dot_dimension_numbers<[1], [0], [0], [1], [0, 0, 1, 1], [], []>} : vector<16x8xbf16>, vector<8x128xbf16>, vector<16x128xf32> -> vector<16x128xf32>
    %100 = arith.truncf %99 : vector<16x128xf32> to vector<16x128xbf16>
    %c0_91 = arith.constant 0 : index
    %c0_92 = arith.constant 0 : index
    %101 = vector.load %arg37[%c0_91, %c0_92] : memref<128x256xbf16, #tpu.memory_space<vmem>>, vector<128x256xbf16>
    %cst_93 = arith.constant dense<0.000000e+00> : vector<16x256xf32>
    %102 = tpu.matmul %100, %101, %cst_93 {dimension_numbers = #tpu.dot_dimension_numbers<[1], [0], [0], [1], [0, 0, 1, 1], [], []>} : vector<16x128xbf16>, vector<128x256xbf16>, vector<16x256xf32> -> vector<16x256xf32>
    %103 = arith.truncf %102 : vector<16x256xf32> to vector<16x256xbf16>
    %cst_94 = arith.constant 0.000000e+00 : f32
    %104 = vector.broadcast %cst_94 : f32 to vector<16x128xf32>
    %c0_95 = arith.constant 0 : index
    %c0_96 = arith.constant 0 : index
    %c0_97 = arith.constant 0 : index
    %105 = vector.load %arg17[%c0_95, %c0_96, %c0_97] : memref<3x256x128xbf16, #tpu.memory_space<vmem>>, vector<1x256x128xbf16>
    %106 = vector.shape_cast %105 : vector<1x256x128xbf16> to vector<256x128xbf16>
    %cst_98 = arith.constant dense<0.000000e+00> : vector<16x128xf32>
    %107 = tpu.matmul %103, %106, %cst_98 {dimension_numbers = #tpu.dot_dimension_numbers<[1], [0], [0], [1], [0, 0, 1, 1], [], []>} : vector<16x256xbf16>, vector<256x128xbf16>, vector<16x128xf32> -> vector<16x128xf32>
    %c1_99 = arith.constant 1 : index
    %c0_100 = arith.constant 0 : index
    %c0_101 = arith.constant 0 : index
    %108 = vector.load %arg17[%c1_99, %c0_100, %c0_101] : memref<3x256x128xbf16, #tpu.memory_space<vmem>>, vector<1x256x128xbf16>
    %109 = vector.shape_cast %108 : vector<1x256x128xbf16> to vector<256x128xbf16>
    %cst_102 = arith.constant dense<0.000000e+00> : vector<16x128xf32>
    %110 = tpu.matmul %103, %109, %cst_102 {dimension_numbers = #tpu.dot_dimension_numbers<[1], [0], [0], [1], [0, 0, 1, 1], [], []>} : vector<16x256xbf16>, vector<256x128xbf16>, vector<16x128xf32> -> vector<16x128xf32>
    %c2_103 = arith.constant 2 : index
    %c0_104 = arith.constant 0 : index
    %c0_105 = arith.constant 0 : index
    %111 = vector.load %arg17[%c2_103, %c0_104, %c0_105] : memref<3x256x128xbf16, #tpu.memory_space<vmem>>, vector<1x256x128xbf16>
    %112 = vector.shape_cast %111 : vector<1x256x128xbf16> to vector<256x128xbf16>
    %cst_106 = arith.constant dense<0.000000e+00> : vector<16x128xf32>
    %113 = tpu.matmul %103, %112, %cst_106 {dimension_numbers = #tpu.dot_dimension_numbers<[1], [0], [0], [1], [0, 0, 1, 1], [], []>} : vector<16x256xbf16>, vector<256x128xbf16>, vector<16x128xf32> -> vector<16x128xf32>
    %114 = arith.addf %104, %110 : vector<16x128xf32>
    %c0_107 = arith.constant 0 : index
    %c0_108 = arith.constant 0 : index
    %115 = vector.load %arg7[%c0_107, %c0_108] : memref<16x16xf32, #tpu.memory_space<vmem>>, vector<16x16xf32>
    %cst_109 = arith.constant dense<0.000000e+00> : vector<16x128xf32>
    %116 = tpu.matmul %115, %107, %cst_109 {dimension_numbers = #tpu.dot_dimension_numbers<[1], [0], [0], [1], [0, 0, 1, 1], [], []>} : vector<16x16xf32>, vector<16x128xf32>, vector<16x128xf32> -> vector<16x128xf32>
    %117 = arith.addf %114, %116 : vector<16x128xf32>
    %c0_110 = arith.constant 0 : index
    %c0_111 = arith.constant 0 : index
    %118 = vector.load %arg8[%c0_110, %c0_111] : memref<16x16xf32, #tpu.memory_space<vmem>>, vector<16x16xf32>
    %cst_112 = arith.constant dense<0.000000e+00> : vector<16x128xf32>
    %119 = tpu.matmul %118, %113, %cst_112 {dimension_numbers = #tpu.dot_dimension_numbers<[1], [0], [0], [1], [0, 0, 1, 1], [], []>} : vector<16x16xf32>, vector<16x128xf32>, vector<16x128xf32> -> vector<16x128xf32>
    %120 = arith.addf %117, %119 : vector<16x128xf32>
    %c0_113 = arith.constant 0 : index
    %c0_114 = arith.constant 0 : index
    %121 = vector.load %arg18[%c0_113, %c0_114] : memref<1x128xf32, #tpu.memory_space<vmem>>, vector<1x128xf32>
    %122 = vector.broadcast %121 : vector<1x128xf32> to vector<16x128xf32>
    %123 = arith.addf %120, %122 : vector<16x128xf32>
    %cst_115 = arith.constant 0.000000e+00 : f32
    %124 = vector.broadcast %cst_115 : f32 to vector<16x128xf32>
    %125 = arith.maximumf %123, %124 : vector<16x128xf32>
    %c0_116 = arith.constant 0 : index
    %c0_117 = arith.constant 0 : index
    %126 = vector.load %arg3[%c0_116, %c0_117] : memref<16x1xf32, #tpu.memory_space<vmem>>, vector<16x1xf32>
    %127 = vector.broadcast %126 : vector<16x1xf32> to vector<16x128xf32>
    %128 = arith.mulf %125, %127 : vector<16x128xf32>
    %c0_118 = arith.constant 0 : index
    %c0_119 = arith.constant 0 : index
    %129 = vector.load %arg38[%c0_118, %c0_119] : memref<24x16xbf16, #tpu.memory_space<vmem>>, vector<24x16xbf16>
    %130 = arith.truncf %128 : vector<16x128xf32> to vector<16x128xbf16>
    %cst_120 = arith.constant dense<0.000000e+00> : vector<24x128xf32>
    %131 = tpu.matmul %129, %130, %cst_120 {dimension_numbers = #tpu.dot_dimension_numbers<[1], [0], [0], [1], [0, 0, 1, 1], [], []>} : vector<24x16xbf16>, vector<16x128xbf16>, vector<24x128xf32> -> vector<24x128xf32>
    %132 = arith.truncf %131 : vector<24x128xf32> to vector<24x128xbf16>
    %c0_121 = arith.constant 0 : index
    %c0_122 = arith.constant 0 : index
    %133 = vector.load %arg39[%c0_121, %c0_122] : memref<128x256xbf16, #tpu.memory_space<vmem>>, vector<128x256xbf16>
    %cst_123 = arith.constant dense<0.000000e+00> : vector<24x256xf32>
    %134 = tpu.matmul %132, %133, %cst_123 {dimension_numbers = #tpu.dot_dimension_numbers<[1], [0], [0], [1], [0, 0, 1, 1], [], []>} : vector<24x128xbf16>, vector<128x256xbf16>, vector<24x256xf32> -> vector<24x256xf32>
    %135 = arith.truncf %134 : vector<24x256xf32> to vector<24x256xbf16>
    %cst_124 = arith.constant 0.000000e+00 : f32
    %136 = vector.broadcast %cst_124 : f32 to vector<24x128xf32>
    %c0_125 = arith.constant 0 : index
    %c0_126 = arith.constant 0 : index
    %c0_127 = arith.constant 0 : index
    %137 = vector.load %arg19[%c0_125, %c0_126, %c0_127] : memref<3x256x128xbf16, #tpu.memory_space<vmem>>, vector<1x256x128xbf16>
    %138 = vector.shape_cast %137 : vector<1x256x128xbf16> to vector<256x128xbf16>
    %cst_128 = arith.constant dense<0.000000e+00> : vector<24x128xf32>
    %139 = tpu.matmul %135, %138, %cst_128 {dimension_numbers = #tpu.dot_dimension_numbers<[1], [0], [0], [1], [0, 0, 1, 1], [], []>} : vector<24x256xbf16>, vector<256x128xbf16>, vector<24x128xf32> -> vector<24x128xf32>
    %c1_129 = arith.constant 1 : index
    %c0_130 = arith.constant 0 : index
    %c0_131 = arith.constant 0 : index
    %140 = vector.load %arg19[%c1_129, %c0_130, %c0_131] : memref<3x256x128xbf16, #tpu.memory_space<vmem>>, vector<1x256x128xbf16>
    %141 = vector.shape_cast %140 : vector<1x256x128xbf16> to vector<256x128xbf16>
    %cst_132 = arith.constant dense<0.000000e+00> : vector<24x128xf32>
    %142 = tpu.matmul %135, %141, %cst_132 {dimension_numbers = #tpu.dot_dimension_numbers<[1], [0], [0], [1], [0, 0, 1, 1], [], []>} : vector<24x256xbf16>, vector<256x128xbf16>, vector<24x128xf32> -> vector<24x128xf32>
    %c2_133 = arith.constant 2 : index
    %c0_134 = arith.constant 0 : index
    %c0_135 = arith.constant 0 : index
    %143 = vector.load %arg19[%c2_133, %c0_134, %c0_135] : memref<3x256x128xbf16, #tpu.memory_space<vmem>>, vector<1x256x128xbf16>
    %144 = vector.shape_cast %143 : vector<1x256x128xbf16> to vector<256x128xbf16>
    %cst_136 = arith.constant dense<0.000000e+00> : vector<24x128xf32>
    %145 = tpu.matmul %135, %144, %cst_136 {dimension_numbers = #tpu.dot_dimension_numbers<[1], [0], [0], [1], [0, 0, 1, 1], [], []>} : vector<24x256xbf16>, vector<256x128xbf16>, vector<24x128xf32> -> vector<24x128xf32>
    %146 = arith.addf %136, %142 : vector<24x128xf32>
    %c0_137 = arith.constant 0 : index
    %c0_138 = arith.constant 0 : index
    %147 = vector.load %arg5[%c0_137, %c0_138] : memref<24x24xf32, #tpu.memory_space<vmem>>, vector<24x24xf32>
    %cst_139 = arith.constant dense<0.000000e+00> : vector<24x128xf32>
    %148 = tpu.matmul %147, %139, %cst_139 {dimension_numbers = #tpu.dot_dimension_numbers<[1], [0], [0], [1], [0, 0, 1, 1], [], []>} : vector<24x24xf32>, vector<24x128xf32>, vector<24x128xf32> -> vector<24x128xf32>
    %149 = arith.addf %146, %148 : vector<24x128xf32>
    %c0_140 = arith.constant 0 : index
    %c0_141 = arith.constant 0 : index
    %150 = vector.load %arg6[%c0_140, %c0_141] : memref<24x24xf32, #tpu.memory_space<vmem>>, vector<24x24xf32>
    %cst_142 = arith.constant dense<0.000000e+00> : vector<24x128xf32>
    %151 = tpu.matmul %150, %145, %cst_142 {dimension_numbers = #tpu.dot_dimension_numbers<[1], [0], [0], [1], [0, 0, 1, 1], [], []>} : vector<24x24xf32>, vector<24x128xf32>, vector<24x128xf32> -> vector<24x128xf32>
    %152 = arith.addf %149, %151 : vector<24x128xf32>
    %c0_143 = arith.constant 0 : index
    %c0_144 = arith.constant 0 : index
    %153 = vector.load %arg20[%c0_143, %c0_144] : memref<1x128xf32, #tpu.memory_space<vmem>>, vector<1x128xf32>
    %154 = vector.broadcast %153 : vector<1x128xf32> to vector<24x128xf32>
    %155 = arith.addf %152, %154 : vector<24x128xf32>
    %cst_145 = arith.constant 0.000000e+00 : f32
    %156 = vector.broadcast %cst_145 : f32 to vector<24x128xf32>
    %157 = arith.maximumf %155, %156 : vector<24x128xf32>
    %c0_146 = arith.constant 0 : index
    %c0_147 = arith.constant 0 : index
    %158 = vector.load %arg2[%c0_146, %c0_147] : memref<24x1xf32, #tpu.memory_space<vmem>>, vector<24x1xf32>
    %159 = vector.broadcast %158 : vector<24x1xf32> to vector<24x128xf32>
    %160 = arith.mulf %157, %159 : vector<24x128xf32>
    %161 = arith.truncf %160 : vector<24x128xf32> to vector<24x128xbf16>
    %cst_148 = arith.constant 0.000000e+00 : f32
    %162 = vector.broadcast %cst_148 : f32 to vector<24x80xf32>
    %c0_149 = arith.constant 0 : index
    %c0_150 = arith.constant 0 : index
    %c0_151 = arith.constant 0 : index
    %163 = vector.load %arg21[%c0_149, %c0_150, %c0_151] : memref<3x128x80xbf16, #tpu.memory_space<vmem>>, vector<1x128x80xbf16>
    %164 = vector.shape_cast %163 : vector<1x128x80xbf16> to vector<128x80xbf16>
    %cst_152 = arith.constant dense<0.000000e+00> : vector<24x80xf32>
    %165 = tpu.matmul %161, %164, %cst_152 {dimension_numbers = #tpu.dot_dimension_numbers<[1], [0], [0], [1], [0, 0, 1, 1], [], []>} : vector<24x128xbf16>, vector<128x80xbf16>, vector<24x80xf32> -> vector<24x80xf32>
    %c1_153 = arith.constant 1 : index
    %c0_154 = arith.constant 0 : index
    %c0_155 = arith.constant 0 : index
    %166 = vector.load %arg21[%c1_153, %c0_154, %c0_155] : memref<3x128x80xbf16, #tpu.memory_space<vmem>>, vector<1x128x80xbf16>
    %167 = vector.shape_cast %166 : vector<1x128x80xbf16> to vector<128x80xbf16>
    %cst_156 = arith.constant dense<0.000000e+00> : vector<24x80xf32>
    %168 = tpu.matmul %161, %167, %cst_156 {dimension_numbers = #tpu.dot_dimension_numbers<[1], [0], [0], [1], [0, 0, 1, 1], [], []>} : vector<24x128xbf16>, vector<128x80xbf16>, vector<24x80xf32> -> vector<24x80xf32>
    %c2_157 = arith.constant 2 : index
    %c0_158 = arith.constant 0 : index
    %c0_159 = arith.constant 0 : index
    %169 = vector.load %arg21[%c2_157, %c0_158, %c0_159] : memref<3x128x80xbf16, #tpu.memory_space<vmem>>, vector<1x128x80xbf16>
    %170 = vector.shape_cast %169 : vector<1x128x80xbf16> to vector<128x80xbf16>
    %cst_160 = arith.constant dense<0.000000e+00> : vector<24x80xf32>
    %171 = tpu.matmul %161, %170, %cst_160 {dimension_numbers = #tpu.dot_dimension_numbers<[1], [0], [0], [1], [0, 0, 1, 1], [], []>} : vector<24x128xbf16>, vector<128x80xbf16>, vector<24x80xf32> -> vector<24x80xf32>
    %172 = arith.addf %162, %168 : vector<24x80xf32>
    %c0_161 = arith.constant 0 : index
    %c0_162 = arith.constant 0 : index
    %173 = vector.load %arg5[%c0_161, %c0_162] : memref<24x24xf32, #tpu.memory_space<vmem>>, vector<24x24xf32>
    %cst_163 = arith.constant dense<0.000000e+00> : vector<24x80xf32>
    %174 = tpu.matmul %173, %165, %cst_163 {dimension_numbers = #tpu.dot_dimension_numbers<[1], [0], [0], [1], [0, 0, 1, 1], [], []>} : vector<24x24xf32>, vector<24x80xf32>, vector<24x80xf32> -> vector<24x80xf32>
    %175 = arith.addf %172, %174 : vector<24x80xf32>
    %c0_164 = arith.constant 0 : index
    %c0_165 = arith.constant 0 : index
    %176 = vector.load %arg6[%c0_164, %c0_165] : memref<24x24xf32, #tpu.memory_space<vmem>>, vector<24x24xf32>
    %cst_166 = arith.constant dense<0.000000e+00> : vector<24x80xf32>
    %177 = tpu.matmul %176, %171, %cst_166 {dimension_numbers = #tpu.dot_dimension_numbers<[1], [0], [0], [1], [0, 0, 1, 1], [], []>} : vector<24x24xf32>, vector<24x80xf32>, vector<24x80xf32> -> vector<24x80xf32>
    %178 = arith.addf %175, %177 : vector<24x80xf32>
    %c0_167 = arith.constant 0 : index
    %c0_168 = arith.constant 0 : index
    %179 = vector.load %arg22[%c0_167, %c0_168] : memref<1x80xf32, #tpu.memory_space<vmem>>, vector<1x80xf32>
    %180 = vector.broadcast %179 : vector<1x80xf32> to vector<24x80xf32>
    %181 = arith.addf %178, %180 : vector<24x80xf32>
    %c0_169 = arith.constant 0 : index
    %c0_170 = arith.constant 0 : index
    %182 = vector.load %arg2[%c0_169, %c0_170] : memref<24x1xf32, #tpu.memory_space<vmem>>, vector<24x1xf32>
    %183 = vector.broadcast %182 : vector<24x1xf32> to vector<24x80xf32>
    %184 = arith.mulf %181, %183 : vector<24x80xf32>
    %cst_171 = arith.constant 0.000000e+00 : f32
    %185 = vector.broadcast %cst_171 : f32 to vector<24x128xf32>
    %c0_172 = arith.constant 0 : index
    %c0_173 = arith.constant 0 : index
    %c0_174 = arith.constant 0 : index
    %186 = vector.load %arg23[%c0_172, %c0_173, %c0_174] : memref<3x48x128xbf16, #tpu.memory_space<vmem>>, vector<1x48x128xbf16>
    %187 = vector.shape_cast %186 : vector<1x48x128xbf16> to vector<48x128xbf16>
    %cst_175 = arith.constant dense<0.000000e+00> : vector<24x128xf32>
    %188 = tpu.matmul %1, %187, %cst_175 {dimension_numbers = #tpu.dot_dimension_numbers<[1], [0], [0], [1], [0, 0, 1, 1], [], []>} : vector<24x48xbf16>, vector<48x128xbf16>, vector<24x128xf32> -> vector<24x128xf32>
    %c1_176 = arith.constant 1 : index
    %c0_177 = arith.constant 0 : index
    %c0_178 = arith.constant 0 : index
    %189 = vector.load %arg23[%c1_176, %c0_177, %c0_178] : memref<3x48x128xbf16, #tpu.memory_space<vmem>>, vector<1x48x128xbf16>
    %190 = vector.shape_cast %189 : vector<1x48x128xbf16> to vector<48x128xbf16>
    %cst_179 = arith.constant dense<0.000000e+00> : vector<24x128xf32>
    %191 = tpu.matmul %1, %190, %cst_179 {dimension_numbers = #tpu.dot_dimension_numbers<[1], [0], [0], [1], [0, 0, 1, 1], [], []>} : vector<24x48xbf16>, vector<48x128xbf16>, vector<24x128xf32> -> vector<24x128xf32>
    %c2_180 = arith.constant 2 : index
    %c0_181 = arith.constant 0 : index
    %c0_182 = arith.constant 0 : index
    %192 = vector.load %arg23[%c2_180, %c0_181, %c0_182] : memref<3x48x128xbf16, #tpu.memory_space<vmem>>, vector<1x48x128xbf16>
    %193 = vector.shape_cast %192 : vector<1x48x128xbf16> to vector<48x128xbf16>
    %cst_183 = arith.constant dense<0.000000e+00> : vector<24x128xf32>
    %194 = tpu.matmul %1, %193, %cst_183 {dimension_numbers = #tpu.dot_dimension_numbers<[1], [0], [0], [1], [0, 0, 1, 1], [], []>} : vector<24x48xbf16>, vector<48x128xbf16>, vector<24x128xf32> -> vector<24x128xf32>
    %195 = arith.addf %185, %191 : vector<24x128xf32>
    %c0_184 = arith.constant 0 : index
    %c0_185 = arith.constant 0 : index
    %196 = vector.load %arg5[%c0_184, %c0_185] : memref<24x24xf32, #tpu.memory_space<vmem>>, vector<24x24xf32>
    %cst_186 = arith.constant dense<0.000000e+00> : vector<24x128xf32>
    %197 = tpu.matmul %196, %188, %cst_186 {dimension_numbers = #tpu.dot_dimension_numbers<[1], [0], [0], [1], [0, 0, 1, 1], [], []>} : vector<24x24xf32>, vector<24x128xf32>, vector<24x128xf32> -> vector<24x128xf32>
    %198 = arith.addf %195, %197 : vector<24x128xf32>
    %c0_187 = arith.constant 0 : index
    %c0_188 = arith.constant 0 : index
    %199 = vector.load %arg6[%c0_187, %c0_188] : memref<24x24xf32, #tpu.memory_space<vmem>>, vector<24x24xf32>
    %cst_189 = arith.constant dense<0.000000e+00> : vector<24x128xf32>
    %200 = tpu.matmul %199, %194, %cst_189 {dimension_numbers = #tpu.dot_dimension_numbers<[1], [0], [0], [1], [0, 0, 1, 1], [], []>} : vector<24x24xf32>, vector<24x128xf32>, vector<24x128xf32> -> vector<24x128xf32>
    %201 = arith.addf %198, %200 : vector<24x128xf32>
    %c0_190 = arith.constant 0 : index
    %c0_191 = arith.constant 0 : index
    %202 = vector.load %arg24[%c0_190, %c0_191] : memref<1x128xf32, #tpu.memory_space<vmem>>, vector<1x128xf32>
    %203 = vector.broadcast %202 : vector<1x128xf32> to vector<24x128xf32>
    %204 = arith.addf %201, %203 : vector<24x128xf32>
    %cst_192 = arith.constant 0.000000e+00 : f32
    %205 = vector.broadcast %cst_192 : f32 to vector<24x128xf32>
    %206 = arith.maximumf %204, %205 : vector<24x128xf32>
    %c0_193 = arith.constant 0 : index
    %c0_194 = arith.constant 0 : index
    %207 = vector.load %arg2[%c0_193, %c0_194] : memref<24x1xf32, #tpu.memory_space<vmem>>, vector<24x1xf32>
    %208 = vector.broadcast %207 : vector<24x1xf32> to vector<24x128xf32>
    %209 = arith.mulf %206, %208 : vector<24x128xf32>
    %c0_195 = arith.constant 0 : index
    %c0_196 = arith.constant 0 : index
    %210 = vector.load %arg32[%c0_195, %c0_196] : memref<16x24xbf16, #tpu.memory_space<vmem>>, vector<16x24xbf16>
    %211 = arith.truncf %209 : vector<24x128xf32> to vector<24x128xbf16>
    %cst_197 = arith.constant dense<0.000000e+00> : vector<16x128xf32>
    %212 = tpu.matmul %210, %211, %cst_197 {dimension_numbers = #tpu.dot_dimension_numbers<[1], [0], [0], [1], [0, 0, 1, 1], [], []>} : vector<16x24xbf16>, vector<24x128xbf16>, vector<16x128xf32> -> vector<16x128xf32>
    %213 = arith.truncf %212 : vector<16x128xf32> to vector<16x128xbf16>
    %c0_198 = arith.constant 0 : index
    %c0_199 = arith.constant 0 : index
    %214 = vector.load %arg33[%c0_198, %c0_199] : memref<128x64xbf16, #tpu.memory_space<vmem>>, vector<128x64xbf16>
    %cst_200 = arith.constant dense<0.000000e+00> : vector<16x64xf32>
    %215 = tpu.matmul %213, %214, %cst_200 {dimension_numbers = #tpu.dot_dimension_numbers<[1], [0], [0], [1], [0, 0, 1, 1], [], []>} : vector<16x128xbf16>, vector<128x64xbf16>, vector<16x64xf32> -> vector<16x64xf32>
    %216 = arith.truncf %215 : vector<16x64xf32> to vector<16x64xbf16>
    %cst_201 = arith.constant 0.000000e+00 : f32
    %217 = vector.broadcast %cst_201 : f32 to vector<16x128xf32>
    %c0_202 = arith.constant 0 : index
    %c0_203 = arith.constant 0 : index
    %c0_204 = arith.constant 0 : index
    %218 = vector.load %arg25[%c0_202, %c0_203, %c0_204] : memref<3x64x128xbf16, #tpu.memory_space<vmem>>, vector<1x64x128xbf16>
    %219 = vector.shape_cast %218 : vector<1x64x128xbf16> to vector<64x128xbf16>
    %cst_205 = arith.constant dense<0.000000e+00> : vector<16x128xf32>
    %220 = tpu.matmul %216, %219, %cst_205 {dimension_numbers = #tpu.dot_dimension_numbers<[1], [0], [0], [1], [0, 0, 1, 1], [], []>} : vector<16x64xbf16>, vector<64x128xbf16>, vector<16x128xf32> -> vector<16x128xf32>
    %c1_206 = arith.constant 1 : index
    %c0_207 = arith.constant 0 : index
    %c0_208 = arith.constant 0 : index
    %221 = vector.load %arg25[%c1_206, %c0_207, %c0_208] : memref<3x64x128xbf16, #tpu.memory_space<vmem>>, vector<1x64x128xbf16>
    %222 = vector.shape_cast %221 : vector<1x64x128xbf16> to vector<64x128xbf16>
    %cst_209 = arith.constant dense<0.000000e+00> : vector<16x128xf32>
    %223 = tpu.matmul %216, %222, %cst_209 {dimension_numbers = #tpu.dot_dimension_numbers<[1], [0], [0], [1], [0, 0, 1, 1], [], []>} : vector<16x64xbf16>, vector<64x128xbf16>, vector<16x128xf32> -> vector<16x128xf32>
    %c2_210 = arith.constant 2 : index
    %c0_211 = arith.constant 0 : index
    %c0_212 = arith.constant 0 : index
    %224 = vector.load %arg25[%c2_210, %c0_211, %c0_212] : memref<3x64x128xbf16, #tpu.memory_space<vmem>>, vector<1x64x128xbf16>
    %225 = vector.shape_cast %224 : vector<1x64x128xbf16> to vector<64x128xbf16>
    %cst_213 = arith.constant dense<0.000000e+00> : vector<16x128xf32>
    %226 = tpu.matmul %216, %225, %cst_213 {dimension_numbers = #tpu.dot_dimension_numbers<[1], [0], [0], [1], [0, 0, 1, 1], [], []>} : vector<16x64xbf16>, vector<64x128xbf16>, vector<16x128xf32> -> vector<16x128xf32>
    %227 = arith.addf %217, %223 : vector<16x128xf32>
    %c0_214 = arith.constant 0 : index
    %c0_215 = arith.constant 0 : index
    %228 = vector.load %arg7[%c0_214, %c0_215] : memref<16x16xf32, #tpu.memory_space<vmem>>, vector<16x16xf32>
    %cst_216 = arith.constant dense<0.000000e+00> : vector<16x128xf32>
    %229 = tpu.matmul %228, %220, %cst_216 {dimension_numbers = #tpu.dot_dimension_numbers<[1], [0], [0], [1], [0, 0, 1, 1], [], []>} : vector<16x16xf32>, vector<16x128xf32>, vector<16x128xf32> -> vector<16x128xf32>
    %230 = arith.addf %227, %229 : vector<16x128xf32>
    %c0_217 = arith.constant 0 : index
    %c0_218 = arith.constant 0 : index
    %231 = vector.load %arg8[%c0_217, %c0_218] : memref<16x16xf32, #tpu.memory_space<vmem>>, vector<16x16xf32>
    %cst_219 = arith.constant dense<0.000000e+00> : vector<16x128xf32>
    %232 = tpu.matmul %231, %226, %cst_219 {dimension_numbers = #tpu.dot_dimension_numbers<[1], [0], [0], [1], [0, 0, 1, 1], [], []>} : vector<16x16xf32>, vector<16x128xf32>, vector<16x128xf32> -> vector<16x128xf32>
    %233 = arith.addf %230, %232 : vector<16x128xf32>
    %c0_220 = arith.constant 0 : index
    %c0_221 = arith.constant 0 : index
    %234 = vector.load %arg26[%c0_220, %c0_221] : memref<1x128xf32, #tpu.memory_space<vmem>>, vector<1x128xf32>
    %235 = vector.broadcast %234 : vector<1x128xf32> to vector<16x128xf32>
    %236 = arith.addf %233, %235 : vector<16x128xf32>
    %cst_222 = arith.constant 0.000000e+00 : f32
    %237 = vector.broadcast %cst_222 : f32 to vector<16x128xf32>
    %238 = arith.maximumf %236, %237 : vector<16x128xf32>
    %c0_223 = arith.constant 0 : index
    %c0_224 = arith.constant 0 : index
    %239 = vector.load %arg3[%c0_223, %c0_224] : memref<16x1xf32, #tpu.memory_space<vmem>>, vector<16x1xf32>
    %240 = vector.broadcast %239 : vector<16x1xf32> to vector<16x128xf32>
    %241 = arith.mulf %238, %240 : vector<16x128xf32>
    %c0_225 = arith.constant 0 : index
    %c0_226 = arith.constant 0 : index
    %242 = vector.load %arg38[%c0_225, %c0_226] : memref<24x16xbf16, #tpu.memory_space<vmem>>, vector<24x16xbf16>
    %243 = arith.truncf %241 : vector<16x128xf32> to vector<16x128xbf16>
    %cst_227 = arith.constant dense<0.000000e+00> : vector<24x128xf32>
    %244 = tpu.matmul %242, %243, %cst_227 {dimension_numbers = #tpu.dot_dimension_numbers<[1], [0], [0], [1], [0, 0, 1, 1], [], []>} : vector<24x16xbf16>, vector<16x128xbf16>, vector<24x128xf32> -> vector<24x128xf32>
    %245 = arith.truncf %244 : vector<24x128xf32> to vector<24x128xbf16>
    %c0_228 = arith.constant 0 : index
    %c0_229 = arith.constant 0 : index
    %246 = vector.load %arg39[%c0_228, %c0_229] : memref<128x256xbf16, #tpu.memory_space<vmem>>, vector<128x256xbf16>
    %cst_230 = arith.constant dense<0.000000e+00> : vector<24x256xf32>
    %247 = tpu.matmul %245, %246, %cst_230 {dimension_numbers = #tpu.dot_dimension_numbers<[1], [0], [0], [1], [0, 0, 1, 1], [], []>} : vector<24x128xbf16>, vector<128x256xbf16>, vector<24x256xf32> -> vector<24x256xf32>
    %248 = arith.truncf %247 : vector<24x256xf32> to vector<24x256xbf16>
    %249 = arith.truncf %209 : vector<24x128xf32> to vector<24x128xbf16>
    %cst_231 = arith.constant 0.000000e+00 : f32
    %250 = vector.broadcast %cst_231 : f32 to vector<24x128xf32>
    %c0_232 = arith.constant 0 : index
    %c0_233 = arith.constant 0 : index
    %c0_234 = arith.constant 0 : index
    %251 = vector.load %arg27[%c0_232, %c0_233, %c0_234] : memref<3x256x128xbf16, #tpu.memory_space<vmem>>, vector<1x256x128xbf16>
    %252 = vector.shape_cast %251 : vector<1x256x128xbf16> to vector<256x128xbf16>
    %cst_235 = arith.constant dense<0.000000e+00> : vector<24x128xf32>
    %253 = tpu.matmul %248, %252, %cst_235 {dimension_numbers = #tpu.dot_dimension_numbers<[1], [0], [0], [1], [0, 0, 1, 1], [], []>} : vector<24x256xbf16>, vector<256x128xbf16>, vector<24x128xf32> -> vector<24x128xf32>
    %c1_236 = arith.constant 1 : index
    %c0_237 = arith.constant 0 : index
    %c0_238 = arith.constant 0 : index
    %254 = vector.load %arg27[%c1_236, %c0_237, %c0_238] : memref<3x256x128xbf16, #tpu.memory_space<vmem>>, vector<1x256x128xbf16>
    %255 = vector.shape_cast %254 : vector<1x256x128xbf16> to vector<256x128xbf16>
    %cst_239 = arith.constant dense<0.000000e+00> : vector<24x128xf32>
    %256 = tpu.matmul %248, %255, %cst_239 {dimension_numbers = #tpu.dot_dimension_numbers<[1], [0], [0], [1], [0, 0, 1, 1], [], []>} : vector<24x256xbf16>, vector<256x128xbf16>, vector<24x128xf32> -> vector<24x128xf32>
    %c2_240 = arith.constant 2 : index
    %c0_241 = arith.constant 0 : index
    %c0_242 = arith.constant 0 : index
    %257 = vector.load %arg27[%c2_240, %c0_241, %c0_242] : memref<3x256x128xbf16, #tpu.memory_space<vmem>>, vector<1x256x128xbf16>
    %258 = vector.shape_cast %257 : vector<1x256x128xbf16> to vector<256x128xbf16>
    %cst_243 = arith.constant dense<0.000000e+00> : vector<24x128xf32>
    %259 = tpu.matmul %248, %258, %cst_243 {dimension_numbers = #tpu.dot_dimension_numbers<[1], [0], [0], [1], [0, 0, 1, 1], [], []>} : vector<24x256xbf16>, vector<256x128xbf16>, vector<24x128xf32> -> vector<24x128xf32>
    %260 = arith.addf %250, %256 : vector<24x128xf32>
    %c0_244 = arith.constant 0 : index
    %c0_245 = arith.constant 0 : index
    %261 = vector.load %arg5[%c0_244, %c0_245] : memref<24x24xf32, #tpu.memory_space<vmem>>, vector<24x24xf32>
    %cst_246 = arith.constant dense<0.000000e+00> : vector<24x128xf32>
    %262 = tpu.matmul %261, %253, %cst_246 {dimension_numbers = #tpu.dot_dimension_numbers<[1], [0], [0], [1], [0, 0, 1, 1], [], []>} : vector<24x24xf32>, vector<24x128xf32>, vector<24x128xf32> -> vector<24x128xf32>
    %263 = arith.addf %260, %262 : vector<24x128xf32>
    %c0_247 = arith.constant 0 : index
    %c0_248 = arith.constant 0 : index
    %264 = vector.load %arg6[%c0_247, %c0_248] : memref<24x24xf32, #tpu.memory_space<vmem>>, vector<24x24xf32>
    %cst_249 = arith.constant dense<0.000000e+00> : vector<24x128xf32>
    %265 = tpu.matmul %264, %259, %cst_249 {dimension_numbers = #tpu.dot_dimension_numbers<[1], [0], [0], [1], [0, 0, 1, 1], [], []>} : vector<24x24xf32>, vector<24x128xf32>, vector<24x128xf32> -> vector<24x128xf32>
    %266 = arith.addf %263, %265 : vector<24x128xf32>
    %c0_250 = arith.constant 0 : index
    %c0_251 = arith.constant 0 : index
    %c0_252 = arith.constant 0 : index
    %267 = vector.load %arg28[%c0_250, %c0_251, %c0_252] : memref<3x128x128xbf16, #tpu.memory_space<vmem>>, vector<1x128x128xbf16>
    %268 = vector.shape_cast %267 : vector<1x128x128xbf16> to vector<128x128xbf16>
    %cst_253 = arith.constant dense<0.000000e+00> : vector<24x128xf32>
    %269 = tpu.matmul %249, %268, %cst_253 {dimension_numbers = #tpu.dot_dimension_numbers<[1], [0], [0], [1], [0, 0, 1, 1], [], []>} : vector<24x128xbf16>, vector<128x128xbf16>, vector<24x128xf32> -> vector<24x128xf32>
    %c1_254 = arith.constant 1 : index
    %c0_255 = arith.constant 0 : index
    %c0_256 = arith.constant 0 : index
    %270 = vector.load %arg28[%c1_254, %c0_255, %c0_256] : memref<3x128x128xbf16, #tpu.memory_space<vmem>>, vector<1x128x128xbf16>
    %271 = vector.shape_cast %270 : vector<1x128x128xbf16> to vector<128x128xbf16>
    %cst_257 = arith.constant dense<0.000000e+00> : vector<24x128xf32>
    %272 = tpu.matmul %249, %271, %cst_257 {dimension_numbers = #tpu.dot_dimension_numbers<[1], [0], [0], [1], [0, 0, 1, 1], [], []>} : vector<24x128xbf16>, vector<128x128xbf16>, vector<24x128xf32> -> vector<24x128xf32>
    %c2_258 = arith.constant 2 : index
    %c0_259 = arith.constant 0 : index
    %c0_260 = arith.constant 0 : index
    %273 = vector.load %arg28[%c2_258, %c0_259, %c0_260] : memref<3x128x128xbf16, #tpu.memory_space<vmem>>, vector<1x128x128xbf16>
    %274 = vector.shape_cast %273 : vector<1x128x128xbf16> to vector<128x128xbf16>
    %cst_261 = arith.constant dense<0.000000e+00> : vector<24x128xf32>
    %275 = tpu.matmul %249, %274, %cst_261 {dimension_numbers = #tpu.dot_dimension_numbers<[1], [0], [0], [1], [0, 0, 1, 1], [], []>} : vector<24x128xbf16>, vector<128x128xbf16>, vector<24x128xf32> -> vector<24x128xf32>
    %276 = arith.addf %266, %272 : vector<24x128xf32>
    %c0_262 = arith.constant 0 : index
    %c0_263 = arith.constant 0 : index
    %277 = vector.load %arg5[%c0_262, %c0_263] : memref<24x24xf32, #tpu.memory_space<vmem>>, vector<24x24xf32>
    %cst_264 = arith.constant dense<0.000000e+00> : vector<24x128xf32>
    %278 = tpu.matmul %277, %269, %cst_264 {dimension_numbers = #tpu.dot_dimension_numbers<[1], [0], [0], [1], [0, 0, 1, 1], [], []>} : vector<24x24xf32>, vector<24x128xf32>, vector<24x128xf32> -> vector<24x128xf32>
    %279 = arith.addf %276, %278 : vector<24x128xf32>
    %c0_265 = arith.constant 0 : index
    %c0_266 = arith.constant 0 : index
    %280 = vector.load %arg6[%c0_265, %c0_266] : memref<24x24xf32, #tpu.memory_space<vmem>>, vector<24x24xf32>
    %cst_267 = arith.constant dense<0.000000e+00> : vector<24x128xf32>
    %281 = tpu.matmul %280, %275, %cst_267 {dimension_numbers = #tpu.dot_dimension_numbers<[1], [0], [0], [1], [0, 0, 1, 1], [], []>} : vector<24x24xf32>, vector<24x128xf32>, vector<24x128xf32> -> vector<24x128xf32>
    %282 = arith.addf %279, %281 : vector<24x128xf32>
    %c0_268 = arith.constant 0 : index
    %c0_269 = arith.constant 0 : index
    %283 = vector.load %arg29[%c0_268, %c0_269] : memref<1x128xf32, #tpu.memory_space<vmem>>, vector<1x128xf32>
    %284 = vector.broadcast %283 : vector<1x128xf32> to vector<24x128xf32>
    %285 = arith.addf %282, %284 : vector<24x128xf32>
    %cst_270 = arith.constant 0.000000e+00 : f32
    %286 = vector.broadcast %cst_270 : f32 to vector<24x128xf32>
    %287 = arith.maximumf %285, %286 : vector<24x128xf32>
    %c0_271 = arith.constant 0 : index
    %c0_272 = arith.constant 0 : index
    %288 = vector.load %arg2[%c0_271, %c0_272] : memref<24x1xf32, #tpu.memory_space<vmem>>, vector<24x1xf32>
    %289 = vector.broadcast %288 : vector<24x1xf32> to vector<24x128xf32>
    %290 = arith.mulf %287, %289 : vector<24x128xf32>
    %291 = arith.truncf %290 : vector<24x128xf32> to vector<24x128xbf16>
    %cst_273 = arith.constant 0.000000e+00 : f32
    %292 = vector.broadcast %cst_273 : f32 to vector<24x32xf32>
    %c0_274 = arith.constant 0 : index
    %c0_275 = arith.constant 0 : index
    %c0_276 = arith.constant 0 : index
    %293 = vector.load %arg30[%c0_274, %c0_275, %c0_276] : memref<3x128x32xbf16, #tpu.memory_space<vmem>>, vector<1x128x32xbf16>
    %294 = vector.shape_cast %293 : vector<1x128x32xbf16> to vector<128x32xbf16>
    %cst_277 = arith.constant dense<0.000000e+00> : vector<24x32xf32>
    %295 = tpu.matmul %291, %294, %cst_277 {dimension_numbers = #tpu.dot_dimension_numbers<[1], [0], [0], [1], [0, 0, 1, 1], [], []>} : vector<24x128xbf16>, vector<128x32xbf16>, vector<24x32xf32> -> vector<24x32xf32>
    %c1_278 = arith.constant 1 : index
    %c0_279 = arith.constant 0 : index
    %c0_280 = arith.constant 0 : index
    %296 = vector.load %arg30[%c1_278, %c0_279, %c0_280] : memref<3x128x32xbf16, #tpu.memory_space<vmem>>, vector<1x128x32xbf16>
    %297 = vector.shape_cast %296 : vector<1x128x32xbf16> to vector<128x32xbf16>
    %cst_281 = arith.constant dense<0.000000e+00> : vector<24x32xf32>
    %298 = tpu.matmul %291, %297, %cst_281 {dimension_numbers = #tpu.dot_dimension_numbers<[1], [0], [0], [1], [0, 0, 1, 1], [], []>} : vector<24x128xbf16>, vector<128x32xbf16>, vector<24x32xf32> -> vector<24x32xf32>
    %c2_282 = arith.constant 2 : index
    %c0_283 = arith.constant 0 : index
    %c0_284 = arith.constant 0 : index
    %299 = vector.load %arg30[%c2_282, %c0_283, %c0_284] : memref<3x128x32xbf16, #tpu.memory_space<vmem>>, vector<1x128x32xbf16>
    %300 = vector.shape_cast %299 : vector<1x128x32xbf16> to vector<128x32xbf16>
    %cst_285 = arith.constant dense<0.000000e+00> : vector<24x32xf32>
    %301 = tpu.matmul %291, %300, %cst_285 {dimension_numbers = #tpu.dot_dimension_numbers<[1], [0], [0], [1], [0, 0, 1, 1], [], []>} : vector<24x128xbf16>, vector<128x32xbf16>, vector<24x32xf32> -> vector<24x32xf32>
    %302 = arith.addf %292, %298 : vector<24x32xf32>
    %c0_286 = arith.constant 0 : index
    %c0_287 = arith.constant 0 : index
    %303 = vector.load %arg5[%c0_286, %c0_287] : memref<24x24xf32, #tpu.memory_space<vmem>>, vector<24x24xf32>
    %cst_288 = arith.constant dense<0.000000e+00> : vector<24x32xf32>
    %304 = tpu.matmul %303, %295, %cst_288 {dimension_numbers = #tpu.dot_dimension_numbers<[1], [0], [0], [1], [0, 0, 1, 1], [], []>} : vector<24x24xf32>, vector<24x32xf32>, vector<24x32xf32> -> vector<24x32xf32>
    %305 = arith.addf %302, %304 : vector<24x32xf32>
    %c0_289 = arith.constant 0 : index
    %c0_290 = arith.constant 0 : index
    %306 = vector.load %arg6[%c0_289, %c0_290] : memref<24x24xf32, #tpu.memory_space<vmem>>, vector<24x24xf32>
    %cst_291 = arith.constant dense<0.000000e+00> : vector<24x32xf32>
    %307 = tpu.matmul %306, %301, %cst_291 {dimension_numbers = #tpu.dot_dimension_numbers<[1], [0], [0], [1], [0, 0, 1, 1], [], []>} : vector<24x24xf32>, vector<24x32xf32>, vector<24x32xf32> -> vector<24x32xf32>
    %308 = arith.addf %305, %307 : vector<24x32xf32>
    %c0_292 = arith.constant 0 : index
    %c0_293 = arith.constant 0 : index
    %309 = vector.load %arg31[%c0_292, %c0_293] : memref<1x32xf32, #tpu.memory_space<vmem>>, vector<1x32xf32>
    %310 = vector.broadcast %309 : vector<1x32xf32> to vector<24x32xf32>
    %311 = arith.addf %308, %310 : vector<24x32xf32>
    %c0_294 = arith.constant 0 : index
    %c0_295 = arith.constant 0 : index
    %312 = vector.load %arg2[%c0_294, %c0_295] : memref<24x1xf32, #tpu.memory_space<vmem>>, vector<24x1xf32>
    %313 = vector.broadcast %312 : vector<24x1xf32> to vector<24x32xf32>
    %314 = arith.mulf %311, %313 : vector<24x32xf32>
    %c0_296 = arith.constant 0 : index
    %c0_297 = arith.constant 0 : index
    %315 = vector.load %arg41[%c0_296, %c0_297] : memref<80x32xf32, #tpu.memory_space<vmem>>, vector<80x32xf32>
    %cst_298 = arith.constant dense<0.000000e+00> : vector<24x32xf32>
    %316 = tpu.matmul %184, %315, %cst_298 {dimension_numbers = #tpu.dot_dimension_numbers<[1], [0], [0], [1], [0, 0, 1, 1], [], []>} : vector<24x80xf32>, vector<80x32xf32>, vector<24x32xf32> -> vector<24x32xf32>
    %317 = arith.addf %314, %316 : vector<24x32xf32>
    %cst_299 = arith.constant 5.000000e-01 : f32
    %318 = vector.broadcast %cst_299 : f32 to vector<24x32xf32>
    %319 = arith.mulf %318, %317 : vector<24x32xf32>
    %320 = tpu.concatenate %184, %314, %319 in 1 : vector<24x80xf32>, vector<24x32xf32>, vector<24x32xf32> -> vector<24x144xf32>
    %c0_300 = arith.constant 0 : index
    %c0_301 = arith.constant 0 : index
    %c0_302 = arith.constant 0 : index
    %321 = vector.load %arg42[%c0_300, %c0_301, %c0_302] : memref<1x24x144xf32, #tpu.memory_space<vmem>>, vector<1x24x144xf32>
    %322 = vector.shape_cast %321 : vector<1x24x144xf32> to vector<24x144xf32>
    %323 = vector.shape_cast %320 : vector<24x144xf32> to vector<1x24x144xf32>
    tpu.vector_store %arg42[%c0_300, %c0_301, %c0_302], %323 {strides = array<i32>} : memref<1x24x144xf32, #tpu.memory_space<vmem>>, vector<1x24x144xf32>,
    %c0_303 = arith.constant 0 : index
    %c0_304 = arith.constant 0 : index
    %c0_305 = arith.constant 0 : index
    %324 = vector.load %arg43[%c0_303, %c0_304, %c0_305] : memref<1x1x32xf32, #tpu.memory_space<vmem>>, vector<1x1x32xf32>
    %325 = vector.shape_cast %324 : vector<1x1x32xf32> to vector<1x32xf32>
    %326 = vector.shape_cast %96 : vector<1x32xf32> to vector<1x1x32xf32>
    tpu.vector_store %arg43[%c0_303, %c0_304, %c0_305], %326 {strides = array<i32>} : memref<1x1x32xf32, #tpu.memory_space<vmem>>, vector<1x1x32xf32>,
    return
  }
  func.func @transform_0(%arg0: i32) -> (i32, i32, i32) {
    %c0_i32 = arith.constant 0 : i32
    %c0_i32_0 = arith.constant 0 : i32
    %c0_i32_1 = arith.constant 0 : i32
    return %arg0, %c0_i32, %c0_i32_0 : i32, i32, i32
  }
  func.func @transform_1(%arg0: i32) -> (i32, i32) {
    %c0_i32 = arith.constant 0 : i32
    %c0_i32_0 = arith.constant 0 : i32
    %c0_i32_1 = arith.constant 0 : i32
    return %c0_i32, %c0_i32_0 : i32, i32
  }
  func.func @transform_2(%arg0: i32) -> (i32, i32) {
    %c0_i32 = arith.constant 0 : i32
    %c0_i32_0 = arith.constant 0 : i32
    %c0_i32_1 = arith.constant 0 : i32
    return %c0_i32, %c0_i32_0 : i32, i32
  }
  func.func @transform_3(%arg0: i32) -> (i32, i32) {
    %c0_i32 = arith.constant 0 : i32
    %c0_i32_0 = arith.constant 0 : i32
    %c0_i32_1 = arith.constant 0 : i32
    return %c0_i32, %c0_i32_0 : i32, i32
  }
  func.func @transform_4(%arg0: i32) -> (i32, i32) {
    %c0_i32 = arith.constant 0 : i32
    %c0_i32_0 = arith.constant 0 : i32
    %c0_i32_1 = arith.constant 0 : i32
    return %c0_i32, %c0_i32_0 : i32, i32
  }
  func.func @transform_5(%arg0: i32) -> (i32, i32) {
    %c0_i32 = arith.constant 0 : i32
    %c0_i32_0 = arith.constant 0 : i32
    %c0_i32_1 = arith.constant 0 : i32
    return %c0_i32, %c0_i32_0 : i32, i32
  }
  func.func @transform_6(%arg0: i32) -> (i32, i32) {
    %c0_i32 = arith.constant 0 : i32
    %c0_i32_0 = arith.constant 0 : i32
    %c0_i32_1 = arith.constant 0 : i32
    return %c0_i32, %c0_i32_0 : i32, i32
  }
  func.func @transform_7(%arg0: i32) -> (i32, i32) {
    %c0_i32 = arith.constant 0 : i32
    %c0_i32_0 = arith.constant 0 : i32
    %c0_i32_1 = arith.constant 0 : i32
    return %c0_i32, %c0_i32_0 : i32, i32
  }
  func.func @transform_8(%arg0: i32) -> (i32, i32) {
    %c0_i32 = arith.constant 0 : i32
    %c0_i32_0 = arith.constant 0 : i32
    %c0_i32_1 = arith.constant 0 : i32
    return %c0_i32, %c0_i32_0 : i32, i32
  }
  func.func @transform_9(%arg0: i32) -> (i32, i32) {
    %c0_i32 = arith.constant 0 : i32
    %c0_i32_0 = arith.constant 0 : i32
    %c0_i32_1 = arith.constant 0 : i32
    return %c0_i32, %c0_i32_0 : i32, i32
  }
  func.func @transform_10(%arg0: i32) -> (i32, i32, i32) {
    %c0_i32 = arith.constant 0 : i32
    %c0_i32_0 = arith.constant 0 : i32
    %c0_i32_1 = arith.constant 0 : i32
    %c0_i32_2 = arith.constant 0 : i32
    return %c0_i32, %c0_i32_0, %c0_i32_1 : i32, i32, i32
  }
  func.func @transform_11(%arg0: i32) -> (i32, i32) {
    %c0_i32 = arith.constant 0 : i32
    %c0_i32_0 = arith.constant 0 : i32
    %c0_i32_1 = arith.constant 0 : i32
    return %c0_i32, %c0_i32_0 : i32, i32
  }
  func.func @transform_12(%arg0: i32) -> (i32, i32, i32) {
    %c0_i32 = arith.constant 0 : i32
    %c0_i32_0 = arith.constant 0 : i32
    %c0_i32_1 = arith.constant 0 : i32
    %c0_i32_2 = arith.constant 0 : i32
    return %c0_i32, %c0_i32_0, %c0_i32_1 : i32, i32, i32
  }
  func.func @transform_13(%arg0: i32) -> (i32, i32) {
    %c0_i32 = arith.constant 0 : i32
    %c0_i32_0 = arith.constant 0 : i32
    %c0_i32_1 = arith.constant 0 : i32
    return %c0_i32, %c0_i32_0 : i32, i32
  }
  func.func @transform_14(%arg0: i32) -> (i32, i32, i32) {
    %c0_i32 = arith.constant 0 : i32
    %c0_i32_0 = arith.constant 0 : i32
    %c0_i32_1 = arith.constant 0 : i32
    %c0_i32_2 = arith.constant 0 : i32
    return %c0_i32, %c0_i32_0, %c0_i32_1 : i32, i32, i32
  }
  func.func @transform_15(%arg0: i32) -> (i32, i32) {
    %c0_i32 = arith.constant 0 : i32
    %c0_i32_0 = arith.constant 0 : i32
    %c0_i32_1 = arith.constant 0 : i32
    return %c0_i32, %c0_i32_0 : i32, i32
  }
  func.func @transform_16(%arg0: i32) -> (i32, i32, i32) {
    %c0_i32 = arith.constant 0 : i32
    %c0_i32_0 = arith.constant 0 : i32
    %c0_i32_1 = arith.constant 0 : i32
    %c0_i32_2 = arith.constant 0 : i32
    return %c0_i32, %c0_i32_0, %c0_i32_1 : i32, i32, i32
  }
  func.func @transform_17(%arg0: i32) -> (i32, i32) {
    %c0_i32 = arith.constant 0 : i32
    %c0_i32_0 = arith.constant 0 : i32
    %c0_i32_1 = arith.constant 0 : i32
    return %c0_i32, %c0_i32_0 : i32, i32
  }
  func.func @transform_18(%arg0: i32) -> (i32, i32, i32) {
    %c0_i32 = arith.constant 0 : i32
    %c0_i32_0 = arith.constant 0 : i32
    %c0_i32_1 = arith.constant 0 : i32
    %c0_i32_2 = arith.constant 0 : i32
    return %c0_i32, %c0_i32_0, %c0_i32_1 : i32, i32, i32
  }
  func.func @transform_19(%arg0: i32) -> (i32, i32) {
    %c0_i32 = arith.constant 0 : i32
    %c0_i32_0 = arith.constant 0 : i32
    %c0_i32_1 = arith.constant 0 : i32
    return %c0_i32, %c0_i32_0 : i32, i32
  }
  func.func @transform_20(%arg0: i32) -> (i32, i32, i32) {
    %c0_i32 = arith.constant 0 : i32
    %c0_i32_0 = arith.constant 0 : i32
    %c0_i32_1 = arith.constant 0 : i32
    %c0_i32_2 = arith.constant 0 : i32
    return %c0_i32, %c0_i32_0, %c0_i32_1 : i32, i32, i32
  }
  func.func @transform_21(%arg0: i32) -> (i32, i32) {
    %c0_i32 = arith.constant 0 : i32
    %c0_i32_0 = arith.constant 0 : i32
    %c0_i32_1 = arith.constant 0 : i32
    return %c0_i32, %c0_i32_0 : i32, i32
  }
  func.func @transform_22(%arg0: i32) -> (i32, i32, i32) {
    %c0_i32 = arith.constant 0 : i32
    %c0_i32_0 = arith.constant 0 : i32
    %c0_i32_1 = arith.constant 0 : i32
    %c0_i32_2 = arith.constant 0 : i32
    return %c0_i32, %c0_i32_0, %c0_i32_1 : i32, i32, i32
  }
  func.func @transform_23(%arg0: i32) -> (i32, i32) {
    %c0_i32 = arith.constant 0 : i32
    %c0_i32_0 = arith.constant 0 : i32
    %c0_i32_1 = arith.constant 0 : i32
    return %c0_i32, %c0_i32_0 : i32, i32
  }
  func.func @transform_24(%arg0: i32) -> (i32, i32, i32) {
    %c0_i32 = arith.constant 0 : i32
    %c0_i32_0 = arith.constant 0 : i32
    %c0_i32_1 = arith.constant 0 : i32
    %c0_i32_2 = arith.constant 0 : i32
    return %c0_i32, %c0_i32_0, %c0_i32_1 : i32, i32, i32
  }
  func.func @transform_25(%arg0: i32) -> (i32, i32) {
    %c0_i32 = arith.constant 0 : i32
    %c0_i32_0 = arith.constant 0 : i32
    %c0_i32_1 = arith.constant 0 : i32
    return %c0_i32, %c0_i32_0 : i32, i32
  }
  func.func @transform_26(%arg0: i32) -> (i32, i32, i32) {
    %c0_i32 = arith.constant 0 : i32
    %c0_i32_0 = arith.constant 0 : i32
    %c0_i32_1 = arith.constant 0 : i32
    %c0_i32_2 = arith.constant 0 : i32
    return %c0_i32, %c0_i32_0, %c0_i32_1 : i32, i32, i32
  }
  func.func @transform_27(%arg0: i32) -> (i32, i32, i32) {
    %c0_i32 = arith.constant 0 : i32
    %c0_i32_0 = arith.constant 0 : i32
    %c0_i32_1 = arith.constant 0 : i32
    %c0_i32_2 = arith.constant 0 : i32
    return %c0_i32, %c0_i32_0, %c0_i32_1 : i32, i32, i32
  }
  func.func @transform_28(%arg0: i32) -> (i32, i32) {
    %c0_i32 = arith.constant 0 : i32
    %c0_i32_0 = arith.constant 0 : i32
    %c0_i32_1 = arith.constant 0 : i32
    return %c0_i32, %c0_i32_0 : i32, i32
  }
  func.func @transform_29(%arg0: i32) -> (i32, i32, i32) {
    %c0_i32 = arith.constant 0 : i32
    %c0_i32_0 = arith.constant 0 : i32
    %c0_i32_1 = arith.constant 0 : i32
    %c0_i32_2 = arith.constant 0 : i32
    return %c0_i32, %c0_i32_0, %c0_i32_1 : i32, i32, i32
  }
  func.func @transform_30(%arg0: i32) -> (i32, i32) {
    %c0_i32 = arith.constant 0 : i32
    %c0_i32_0 = arith.constant 0 : i32
    %c0_i32_1 = arith.constant 0 : i32
    return %c0_i32, %c0_i32_0 : i32, i32
  }
  func.func @transform_31(%arg0: i32) -> (i32, i32) {
    %c0_i32 = arith.constant 0 : i32
    %c0_i32_0 = arith.constant 0 : i32
    %c0_i32_1 = arith.constant 0 : i32
    return %c0_i32, %c0_i32_0 : i32, i32
  }
  func.func @transform_32(%arg0: i32) -> (i32, i32) {
    %c0_i32 = arith.constant 0 : i32
    %c0_i32_0 = arith.constant 0 : i32
    %c0_i32_1 = arith.constant 0 : i32
    return %c0_i32, %c0_i32_0 : i32, i32
  }
  func.func @transform_33(%arg0: i32) -> (i32, i32) {
    %c0_i32 = arith.constant 0 : i32
    %c0_i32_0 = arith.constant 0 : i32
    %c0_i32_1 = arith.constant 0 : i32
    return %c0_i32, %c0_i32_0 : i32, i32
  }
  func.func @transform_34(%arg0: i32) -> (i32, i32) {
    %c0_i32 = arith.constant 0 : i32
    %c0_i32_0 = arith.constant 0 : i32
    %c0_i32_1 = arith.constant 0 : i32
    return %c0_i32, %c0_i32_0 : i32, i32
  }
  func.func @transform_35(%arg0: i32) -> (i32, i32) {
    %c0_i32 = arith.constant 0 : i32
    %c0_i32_0 = arith.constant 0 : i32
    %c0_i32_1 = arith.constant 0 : i32
    return %c0_i32, %c0_i32_0 : i32, i32
  }
  func.func @transform_36(%arg0: i32) -> (i32, i32) {
    %c0_i32 = arith.constant 0 : i32
    %c0_i32_0 = arith.constant 0 : i32
    %c0_i32_1 = arith.constant 0 : i32
    return %c0_i32, %c0_i32_0 : i32, i32
  }
  func.func @transform_37(%arg0: i32) -> (i32, i32) {
    %c0_i32 = arith.constant 0 : i32
    %c0_i32_0 = arith.constant 0 : i32
    %c0_i32_1 = arith.constant 0 : i32
    return %c0_i32, %c0_i32_0 : i32, i32
  }
  func.func @transform_38(%arg0: i32) -> (i32, i32) {
    %c0_i32 = arith.constant 0 : i32
    %c0_i32_0 = arith.constant 0 : i32
    %c0_i32_1 = arith.constant 0 : i32
    return %c0_i32, %c0_i32_0 : i32, i32
  }
  func.func @transform_39(%arg0: i32) -> (i32, i32) {
    %c0_i32 = arith.constant 0 : i32
    %c0_i32_0 = arith.constant 0 : i32
    %c0_i32_1 = arith.constant 0 : i32
    return %c0_i32, %c0_i32_0 : i32, i32
  }
  func.func @transform_40(%arg0: i32) -> (i32, i32) {
    %c0_i32 = arith.constant 0 : i32
    %c0_i32_0 = arith.constant 0 : i32
    %c0_i32_1 = arith.constant 0 : i32
    return %c0_i32, %c0_i32_0 : i32, i32
  }
  func.func @transform_41(%arg0: i32) -> (i32, i32, i32) {
    %c0_i32 = arith.constant 0 : i32
    %c0_i32_0 = arith.constant 0 : i32
    %c0_i32_1 = arith.constant 0 : i32
    return %arg0, %c0_i32, %c0_i32_0 : i32, i32, i32
  }
  func.func @transform_42(%arg0: i32) -> (i32, i32, i32) {
    %c0_i32 = arith.constant 0 : i32
    %c0_i32_0 = arith.constant 0 : i32
    %c0_i32_1 = arith.constant 0 : i32
    return %arg0, %c0_i32, %c0_i32_0 : i32, i32, i32
  }
}

</mosaic_0001>

<bundles_post_ra>
// kernel: _forward_arrays.1
= control target key start
LH: loop header
LB: loop body
LE: loop exit
PB: predicated region body
PF: predicated region fallthrough
CT: control target
= control target key end

     0   :  { %s12572_s6 = smov 1   ;;  %s12573_s10 = smov 2   ;;  %s14160_s0 = inlined_call_operand.smem [shape: u32[43], index: -1, kind: input, shape index: {}] }
   0x1   :  { %s12657_s5 = sld [smem:[%s14160_s0]]   ;;  %s12574_s14 = smov 3  }
   0x2   :  { %s12662_s9 = sld [smem:[%s14160_s0 + %s12572_s6]]   ;;  %s12575_s18 = smov 4  }
   0x3   :  { %s12667_s13 = sld [smem:[%s14160_s0 + %s12573_s10]]   ;;  %s12576_s22 = smov 5  }
   0x4   :  { %s12672_s17 = sld [smem:[%s14160_s0 + %s12574_s14]]   ;;  %s12577_s26 = smov 6  }
   0x5   :  { %s12677_s21 = sld [smem:[%s14160_s0 + %s12575_s18]]   ;;  %s12578_s30 = smov 7  }
   0x6   :  { %s12682_s25 = sld [smem:[%s14160_s0 + %s12576_s22]]   ;;  %s12579_s4 = smov 8  }
   0x7   :  { %14225 = sst [smem:[#allocation55_spill]] %s12657_s5  ;;  %s12580_s10 = smov 9  }
   0x8   :  { %14226 = sst [smem:[#allocation56_spill]] %s12662_s9  ;;  %s12581_s15 = smov 10  }
   0x9   :  { %14227 = sst [smem:[#allocation57_spill]] %s12667_s13  ;;  %s12582_s20 = smov 11  }
   0xa   :  { %14228 = sst [smem:[#allocation58_spill]] %s12672_s17  ;;  %s12584_s1 = smov 13  }
   0xb   :  { %s12687_s29 = sld [smem:[%s14160_s0 + %s12577_s26]]   ;;  %s12583_s26 = smov 12  }
   0xc   :  { %s12692_s3 = sld [smem:[%s14160_s0 + %s12578_s30]]   ;;  %s12585_s7 = smov 14  }
   0xd   :  { %s12697_s8 = sld [smem:[%s14160_s0 + %s12579_s4]]   ;;  %s12587_s22 = smov 16  }
   0xe   :  { %s12702_s14 = sld [smem:[%s14160_s0 + %s12580_s10]]   ;;  %s12588_s28 = smov 17  }
   0xf   :  { %s12707_s19 = sld [smem:[%s14160_s0 + %s12581_s15]]   ;;  %s12586_s15 = smov 15  }
  0x10   :  { %s12712_s24 = sld [smem:[%s14160_s0 + %s12582_s20]]  }
  0x11   :  { %s12717_s30 = sld [smem:[%s14160_s0 + %s12583_s26]]  }
  0x12   :  { %14229 = sst [smem:[#allocation59_spill]] %s12692_s3 }
  0x13   :  { %14230 = sst [smem:[#allocation60_spill]] %s12697_s8 }
  0x14   :  { %s12722_s6 = sld [smem:[%s14160_s0 + %s12584_s1]]  }
  0x15   :  { %14231 = sst [smem:[#allocation61_spill]] %s12707_s19 }
  0x16   :  { %s12727_s12 = sld [smem:[%s14160_s0 + %s12585_s7]]   ;;  %s12589_s7 = smov 18  }
  0x17   :  { %14232 = sst [smem:[#allocation62_spill]] %s12717_s30 }
  0x18   :  { %s12732_s20 = sld [smem:[%s14160_s0 + %s12586_s15]]   ;;  %s12590_s15 = smov 19  }
  0x19   :  { %s12737_s27 = sld [smem:[%s14160_s0 + %s12587_s22]]   ;;  %s12591_s22 = smov 20  }
  0x1a   :  { %14233 = sst [smem:[#allocation63_spill]] %s12722_s6 }
  0x1b   :  { %s12742_s4 = sld [smem:[%s14160_s0 + %s12588_s28]]   ;;  %s12592_s28 = smov 21  }
  0x1c   :  { %14234 = sst [smem:[#allocation64_spill]] %s12727_s12 }
  0x1d   :  { %s12747_s17 = sld [smem:[%s14160_s0 + %s12589_s7]]   ;;  %s12593_s7 = smov 22  }
  0x1e   :  { %s12752_s13 = sld [smem:[%s14160_s0 + %s12590_s15]]   ;;  %s12594_s15 = smov 23  }
  0x1f   :  { %14235 = sst [smem:[#allocation65_spill]] %s12737_s27 }
  0x20   :  { %s12757_s27 = sld [smem:[%s14160_s0 + %s12591_s22]]   ;;  %s12595_s22 = smov 24  }
  0x21   :  { %14236 = sst [smem:[#allocation66_spill]] %s12742_s4 }
  0x22   :  { %s12762_s9 = sld [smem:[%s14160_s0 + %s12592_s28]]   ;;  %s12596_s28 = smov 25  }
  0x23   :  { %14237 = sst [smem:[#allocation67_spill]] %s12747_s17 }
  0x24   :  { %14238 = sst [smem:[#allocation68_spill]] %s12752_s13 }
  0x25   :  { %s12767_s17 = sld [smem:[%s14160_s0 + %s12593_s7]]   ;;  %s12597_s7 = smov 26  }
  0x26   :  { %14239 = sst [smem:[#allocation69_spill]] %s12757_s27 }
  0x27   :  { %s12772_s5 = sld [smem:[%s14160_s0 + %s12594_s15]]   ;;  %s12598_s15 = smov 27  }
  0x28   :  { %14240 = sst [smem:[#allocation70_spill]] %s12762_s9 }
  0x29   :  { %s12777_s27 = sld [smem:[%s14160_s0 + %s12595_s22]]   ;;  %s12599_s22 = smov 28  }
  0x2a   :  { %s12782_s9 = sld [smem:[%s14160_s0 + %s12596_s28]]   ;;  %s12600_s28 = smov 29  }
  0x2b   :  { %s12787_s4 = sld [smem:[%s14160_s0 + %s12597_s7]]   ;;  %s12601_s7 = smov 30  }
  0x2c   :  { %s12797_s12 = sld [smem:[%s14160_s0 + %s12599_s22]]   ;;  %s12603_s22 = smov 32  }
  0x2d   :  { %14241 = sst [smem:[#allocation71_spill]] %s12772_s5 }
  0x2e   :  { %s12792_s5 = sld [smem:[%s14160_s0 + %s12598_s15]]   ;;  %s12602_s15 = smov 31  }
  0x2f   :  { %s12817_s30 = sld [smem:[%s14160_s0 + %s12603_s22]]   ;;  %s12607_s22 = smov 36  }
  0x30   :  { %14242 = sst [smem:[#allocation72_spill]] %s12782_s9 }
  0x31   :  { %14243 = sst [smem:[#allocation73_spill]] %s12787_s4 }
  0x32   :  { %14245 = sst [smem:[#allocation75_spill]] %s12797_s12 }
  0x33   :  { %s12802_s9 = sld [smem:[%s14160_s0 + %s12600_s28]]   ;;  %s12604_s28 = smov 33  }
  0x34   :  { %14244 = sst [smem:[#allocation74_spill]] %s12792_s5 }
  0x35   :  { %s12807_s4 = sld [smem:[%s14160_s0 + %s12601_s7]]   ;;  %s12605_s7 = smov 34  }
  0x36   :  { %s12812_s5 = sld [smem:[%s14160_s0 + %s12602_s15]]   ;;  %s12606_s15 = smov 35  }
  0x37   :  { %14249 = sst [smem:[#allocation79_spill]] %s12817_s30 }
  0x38   :  { %s12832_s19 = sld [smem:[%s14160_s0 + %s12606_s15]]   ;;  %s12610_s15 = smov 39  }
  0x39   :  { %14246 = sst [smem:[#allocation76_spill]] %s12802_s9 }
  0x3a   :  { %s12822_s9 = sld [smem:[%s14160_s0 + %s12604_s28]]   ;;  %s12608_s28 = smov 37  }
  0x3b   :  { %14247 = sst [smem:[#allocation77_spill]] %s12807_s4 }
  0x3c   :  { %14248 = sst [smem:[#allocation78_spill]] %s12812_s5 }
  0x3d   :  { %s12827_s4 = sld [smem:[%s14160_s0 + %s12605_s7]]   ;;  %s12609_s7 = smov 38  }
  0x3e   :  { %14252 = sst [smem:[#allocation82_spill]] %s12832_s19 }
  0x3f   :  { %s12837_s30 = sld [smem:[%s14160_s0 + %s12607_s22]]   ;;  %s12611_s22 = smov 40  }
  0x40   :  { %14250 = sst [smem:[#allocation80_spill]] %s12822_s9 }
  0x41   :  { %s12842_s9 = sld [smem:[%s14160_s0 + %s12608_s28]]   ;;  %s12612_s28 = smov 41  }
  0x42   :  { %s12852_s19 = sld [smem:[%s14160_s0 + %s12610_s15]]  }
  0x43   :  { %14251 = sst [smem:[#allocation81_spill]] %s12827_s4 }
  0x44   :  { %s12847_s4 = sld [smem:[%s14160_s0 + %s12609_s7]]   ;;  %s12613_s7 = smov 42  }
  0x45   :  { %14253 = sst [smem:[#allocation83_spill]] %s12837_s30 }
  0x46   :  { %s12857_s30 = sld [smem:[%s14160_s0 + %s12611_s22]]  }
  0x47   :  { %14254 = sst [smem:[#allocation84_spill]] %s12842_s9 }
  0x48   :  { %s12862_s9 = sld [smem:[%s14160_s0 + %s12612_s28]]  }
  0x4a   :  { %14255 = sst [smem:[#allocation85_spill]] %s12847_s4 }
  0x4b   :  { %s12867_s4 = sld [smem:[%s14160_s0 + %s12613_s7]]  }
  0x4c   :  { %91 = vsyncpa [#allocation3], 0 }
  0x4d   :  { %92 = vsyncpa [#allocation6], 0 }
  0x4e   :  { %93 = vsyncpa [#allocation9], 0 }
  0x4f   :  { %94 = vsyncpa [#allocation12], 0 }
  0x50   :  { %95 = vsyncpa [#allocation15], 0 }
  0x51   :  { %96 = vsyncpa [#allocation18], 0 }
  0x52   :  { %97 = vsyncpa [#allocation21], 0 }
  0x53   :  { %98 = vsyncpa [#allocation24], 0 }
  0x54   :  { %99 = vsyncpa [#allocation27], 0 }
  0x55   :  { %100 = vsyncpa [#allocation30], 0 }
  0x56   :  { %101 = vsyncpa [#allocation33], 0 }
  0x57   :  { %102 = vsyncpa [#allocation36], 0 }
  0x58   :  { %103 = vsyncpa [#allocation39], 0 }
  0x59   :  { %104 = vsyncpa [#allocation4], 0 }
  0x5a   :  { %106 = vsyncpa [#allocation4 + $0x1], 0  ;;  %s12869_s15 = smov 0   ;;  %s12871_s16 = smov 0  }
  0x5b   :  { %14256 = sst [smem:[#allocation86_spill]] %s12869_s15  ;;  %s12873_s0 = smov 0  }
  0x5c   :  { %s12875_s18 = smov 0  }
  0x5d LB: > { %s14258_s13 = sld [smem:[#allocation68_spill]]  ;;  %s14259_s12 = sld [smem:[#allocation75_spill]]  ;;  %s12562_s16 = sphi %s12871_s16, %s14351_s16   ;;  %s12570_s18 = sphi %s12875_s18, %s14347_s18   ;;  %s12566_s0 = sphi %s12873_s0, %s14349_s0  }
  0x5e   : > { %s14260_s8 = sld [smem:[#allocation60_spill]]  ;;  %s14261_s5 = sld [smem:[#allocation78_spill]] }
  0x5f   : > { %s14262_s6 = sld [smem:[#allocation63_spill]]  ;;  %s14263_s3 = sld [smem:[#allocation59_spill]] }
  0x60   : > { %s14264_s15 = sld [smem:[#allocation86_spill]]  ;;  %14266 = sst [smem:[#allocation87_spill]] %s12566_s0 }
  0x61   : > { %14267 = sst [smem:[#allocation88_spill]] %s12570_s18  ;;  %s12890_s22 = sadd.s32 4294967295, %s12570_s18  }
  0x62   : > { %s8820_s23 = sadd.s32 4294967294, %s12570_s18   ;;  %s12894_s26 = sadd.s32 1, %s12570_s18  }
  0x63   : > { %14268 = sst [smem:[#allocation89_spill]] %s12894_s26  ;;  %s1011_s28 = sadd.s32 1, %s12566_s0 }
  0x64   : > { %s1008_s1 = ssub.s32 %s12570_s18, %s12894_s26  ;;  %p1021_p0 = scmp.ne.s32.totalorder %s12566_s0, %s12562_s16 }
  0x65   : > { %p1009_p1 = scmp.eq.s32.totalorder %s1008_s1, 0  ;;  %p1022_p2 = scmp.eq.s32.totalorder %s12890_s22, 1 }
  0x66   : > { %14265 = sst [smem:[#allocation86_spill]] %s14264_s15  ;;  %p1027_p3 = scmp.ne.s32.totalorder %s12562_s16, %s14264_s15 }
  0x67   : > { %p1028_p4 = scmp.eq.s32.totalorder %s8820_s23, 1  ;;  %p12907_p5 = por %p1022_p2, %p1021_p0 }
  0x68   : > { %s12905_s2 = scalar_select %p1009_p1, %s12566_s0, %s1011_s28  }
  0x69   : > { %s14270_s7 = scalar_select %p12907_p5, 1, 0 }
  0x6a   : > { %14269 = sst [smem:[#allocation90_spill]] %s12905_s2  ;;  %p12911_p6 = por %p1028_p4, %p1027_p3 }
  0x6b   : > { %p8821_p7 = scmp.ge.s32.totalorder %s12570_s18, 1  ;;  %p1035_p8 = scmp.lt.s32.totalorder %s12570_s18, 3 }
  0x6c   : > { %s14271_s10 = scalar_select %p12911_p6, 1, 0 }
  0x6d   : > { %p14188_p9 = scmp.eq.s32.totalorder %s12890_s22, 0  ;;  %p12918_p10 = pnand %p8821_p7, %p1035_p8 }
  0x6e   : > { %14272 = sst [smem:[#allocation91_spill]] %s14271_s10  ;;  %s12614_s23 = smov [#allocation5]  }
  0x6f   : > { %s14273_s11 = scalar_select %p12918_p10, 1, 0 }
  0x70   : > { %p11163_p11 = pneg %p12918_p10  ;;  %s1069_s28 = sshll.u32 %s12614_s23, 4  ;;  %s12924_s28 = int_to_ptr.vmem [resolvable:$true] %s1069_s28 }
  0x71   : > { %s12615_s2 = smov [#allocation8]   ;;  %s12616_s26 = smov [#allocation11]  }
  0x72   : > { %p12928_p12 = pnand %p14188_p9, %p11163_p11  ;;  %s1095_s0 = sshll.u32 %s12615_s2, 4  ;;  %s12932_s0 = int_to_ptr.vmem [resolvable:$true] %s1095_s0 }
  0x73   : > { %s12934_s10 = sshll.u32 %s12616_s26, 4  ;;  %s11784_s15 = scalar_lea.hbm %s12682_s25, 384  ;;  %s1121_s10 = int_to_ptr.vmem [resolvable:$true] %s12934_s10 }
  0x74   : > { %p11785_p13 = scmp.ne.s32.totalorder %s12682_s25, %s11784_s15  ;;  %p12940_p0 = pneg %p12928_p12 }
  0x75   : > { %p11791_p3 = scmp.lt.u32.totalorder %s11784_s15, %s12682_s25 }
  0x76   : > { %p11787_p1 = pnand %p12940_p0, %p11785_p13 }
  0x78   : > { %p11788_p2 = pneg %p11787_p1 }
  0x7a   : > { %p11793_p4 = pnand %p11791_p3, %p11788_p2 }
  0x7c   : > { %11796 = shalt.err (!%p11793_p4)
}
  0x7d   : > { %s11797_s26 = scalar_lea.vmem %s12924_s28, 384  ;;  %p11805_p9 = scmp.lt.s32.totalorder %s12924_s28, %s12924_s28 }
  0x7e   : > { %p11798_p7 = scmp.ne.s32.totalorder %s12924_s28, %s11797_s26  ;;  %p11806_p6 = scmp.lt.s32.totalorder %s11797_s26, %s11797_s26 }
  0x80   : > { %p11800_p8 = pnand %p11798_p7, %p12940_p0  ;;  %p11807_p5 = por %p11806_p6, %p11805_p9 }
  0x82   : > { %p11801_p11 = pneg %p11800_p8 }
  0x84   : > { %p11808_p10 = pnand %p11807_p5, %p11801_p11 }
  0x86   : > { %11811 = shalt.err (!%p11808_p10)
}
  0x87   : > { %s14192_s2 = smov 128   ;;  %s14194_s15 = smov 8  }
  0x88   : > { %11169 = dma.hbm_to_vmem [thread:$0]  (!%p12928_p12), %s12682_s25, 384, %s12924_s28, [#allocation6], %s14192_s2, %s14192_s2, %s14194_s15  }
  0x89   : > { %s11812_s18 = scalar_lea.hbm %s14263_s3, 256 }
  0x8a   : > { %p11813_p13 = scmp.ne.s32.totalorder %s14263_s3, %s11812_s18  ;;  %p11819_p9 = scmp.lt.u32.totalorder %s11812_s18, %s14263_s3 }
  0x8c   : > { %p11815_p6 = pnand %p11813_p13, %p12940_p0 }
  0x8e   : > { %p11816_p5 = pneg %p11815_p6 }
  0x90   : > { %p11821_p10 = pnand %p11819_p9, %p11816_p5 }
  0x92   : > { %11824 = shalt.err (!%p11821_p10)
}
  0x93   : > { %s11825_s26 = scalar_lea.vmem %s12932_s0, 256  ;;  %p11833_p4 = scmp.lt.s32.totalorder %s12932_s0, %s12932_s0 }
  0x94   : > { %p11826_p1 = scmp.ne.s32.totalorder %s12932_s0, %s11825_s26  ;;  %p11834_p7 = scmp.lt.s32.totalorder %s11825_s26, %s11825_s26 }
  0x96   : > { %p11828_p2 = pnand %p11826_p1, %p12940_p0  ;;  %p11835_p8 = por %p11834_p7, %p11833_p4 }
  0x98   : > { %p11829_p3 = pneg %p11828_p2 }
  0x9a   : > { %p11836_p11 = pnand %p11835_p8, %p11829_p3 }
  0x9c   : > { %11839 = shalt.err (!%p11836_p11)
}
  0x9d   : > { %11175 = dma.hbm_to_vmem [thread:$0]  (!%p12928_p12), %s14263_s3, 256, %s12932_s0, [#allocation9], %s14192_s2, %s14192_s2, %s14194_s15  }
  0x9e   : > { %s11840_s18 = scalar_lea.hbm %s12702_s14, 128 }
  0x9f   : > { %p11841_p13 = scmp.ne.s32.totalorder %s12702_s14, %s11840_s18  ;;  %p11847_p9 = scmp.lt.u32.totalorder %s11840_s18, %s12702_s14 }
  0xa1   : > { %p11843_p6 = pnand %p11841_p13, %p12940_p0 }
  0xa3   : > { %p11844_p5 = pneg %p11843_p6 }
  0xa5   : > { %p11849_p10 = pnand %p11847_p9, %p11844_p5 }
  0xa7   : > { %11852 = shalt.err (!%p11849_p10)
}
  0xa8   : > { %s11853_s28 = scalar_lea.vmem %s1121_s10, 128  ;;  %p11861_p4 = scmp.lt.s32.totalorder %s1121_s10, %s1121_s10 }
  0xa9   : > { %p11854_p1 = scmp.ne.s32.totalorder %s1121_s10, %s11853_s28  ;;  %p11862_p7 = scmp.lt.s32.totalorder %s11853_s28, %s11853_s28 }
  0xab   : > { %p11856_p2 = pnand %p11854_p1, %p12940_p0  ;;  %p11863_p8 = por %p11862_p7, %p11861_p4 }
  0xad   : > { %p11857_p3 = pneg %p11856_p2 }
  0xaf   : > { %p11864_p11 = pnand %p11863_p8, %p11857_p3 }
  0xb1   : > { %11867 = shalt.err (!%p11864_p11)
}
  0xb2   : > { %11181 = dma.hbm_to_vmem [thread:$0]  (!%p12928_p12), %s12702_s14, 128, %s1121_s10, [#allocation12]  }
  0xb3   : > { %s12619_s0 = smov [#allocation14]   ;;  %s12620_s18 = smov [#allocation17]  }
  0xb4   : > { %s1144_s26 = sshll.u32 %s12619_s0, 4  ;;  %s1168_s2 = sshll.u32 %s12620_s18, 4  ;;  %s1145_s26 = int_to_ptr.vmem [resolvable:$true] %s1144_s26  ;;  %s1169_s2 = int_to_ptr.vmem [resolvable:$true] %s1168_s2 }
  0xb5   : > { %s11868_s15 = scalar_lea.hbm %s12712_s24, 16 }
  0xb6   : > { %p11869_p13 = scmp.ne.s32.totalorder %s12712_s24, %s11868_s15  ;;  %p11875_p9 = scmp.lt.u32.totalorder %s11868_s15, %s12712_s24 }
  0xb8   : > { %p11871_p6 = pnand %p11869_p13, %p12940_p0 }
  0xba   : > { %p11872_p5 = pneg %p11871_p6 }
  0xbc   : > { %p11877_p10 = pnand %p11875_p9, %p11872_p5 }
  0xbe   : > { %11880 = shalt.err (!%p11877_p10)
}
  0xbf   : > { %s11881_s28 = scalar_lea.vmem %s1145_s26, 16  ;;  %s11888_s10 = scalar_lea.vmem %s1145_s26, 32 }
  0xc0   : > { %p11882_p1 = scmp.ne.s32.totalorder %s1145_s26, %s11881_s28  ;;  %p11889_p4 = scmp.lt.s32.totalorder %s1145_s26, %s1145_s26 }
  0xc1   : > { %p11890_p7 = scmp.lt.s32.totalorder %s11888_s10, %s11881_s28 }
  0xc2   : > { %p11884_p2 = pnand %p11882_p1, %p12940_p0 }
  0xc3   : > { %p11891_p8 = por %p11890_p7, %p11889_p4 }
  0xc4   : > { %p11885_p3 = pneg %p11884_p2 }
  0xc6   : > { %p11892_p11 = pnand %p11891_p8, %p11885_p3 }
  0xc8   : > { %11895 = shalt.err (!%p11892_p11)
}
  0xc9   : > { %11187 = dma.hbm_to_vmem [thread:$0]  (!%p12928_p12), %s12712_s24, 16, %s1145_s26, [#allocation15]  }
  0xca   : > { %s11896_s15 = scalar_lea.hbm %s14262_s6, 16 }
  0xcb   : > { %p11897_p13 = scmp.ne.s32.totalorder %s14262_s6, %s11896_s15  ;;  %p11903_p9 = scmp.lt.u32.totalorder %s11896_s15, %s14262_s6 }
  0xcd   : > { %p11899_p6 = pnand %p11897_p13, %p12940_p0 }
  0xcf   : > { %p11900_p5 = pneg %p11899_p6 }
  0xd1   : > { %p11905_p10 = pnand %p11903_p9, %p11900_p5 }
  0xd3   : > { %11908 = shalt.err (!%p11905_p10)
}
  0xd4   : > { %s11909_s0 = scalar_lea.vmem %s1169_s2, 16  ;;  %s11916_s18 = scalar_lea.vmem %s1169_s2, 32 }
  0xd5   : > { %p11910_p1 = scmp.ne.s32.totalorder %s1169_s2, %s11909_s0  ;;  %p11917_p4 = scmp.lt.s32.totalorder %s1169_s2, %s1169_s2 }
  0xd6   : > { %p11918_p7 = scmp.lt.s32.totalorder %s11916_s18, %s11909_s0 }
  0xd7   : > { %p11912_p2 = pnand %p11910_p1, %p12940_p0 }
  0xd8   : > { %p11919_p8 = por %p11918_p7, %p11917_p4 }
  0xd9   : > { %p11913_p3 = pneg %p11912_p2 }
  0xdb   : > { %p11920_p11 = pnand %p11919_p8, %p11913_p3 }
  0xdd   : > { %11923 = shalt.err (!%p11920_p11)
}
  0xde   : > { %11193 = dma.hbm_to_vmem [thread:$0]  (!%p12928_p12), %s14262_s6, 16, %s1169_s2, [#allocation18]  }
  0xdf   : > { %s12621_s26 = smov [#allocation20]   ;;  %s12622_s10 = smov [#allocation23]  }
  0xe0   : > { %s1192_s28 = sshll.u32 %s12621_s26, 4  ;;  %s1220_s15 = sshll.u32 %s12622_s10, 4  ;;  %s1193_s28 = int_to_ptr.vmem [resolvable:$true] %s1192_s28  ;;  %s1221_s15 = int_to_ptr.vmem [resolvable:$true] %s1220_s15 }
  0xe1   : > { %s11924_s3 = scalar_lea.hbm %s12732_s20, 16 }
  0xe2   : > { %p11925_p13 = scmp.ne.s32.totalorder %s12732_s20, %s11924_s3  ;;  %p11931_p9 = scmp.lt.u32.totalorder %s11924_s3, %s12732_s20 }
  0xe4   : > { %p11927_p6 = pnand %p11925_p13, %p12940_p0 }
  0xe6   : > { %p11928_p5 = pneg %p11927_p6 }
  0xe8   : > { %p11933_p10 = pnand %p11931_p9, %p11928_p5 }
  0xea   : > { %11936 = shalt.err (!%p11933_p10)
}
  0xeb   : > { %s11937_s0 = scalar_lea.vmem %s1193_s28, 16  ;;  %s11944_s2 = scalar_lea.vmem %s1193_s28, 32 }
  0xec   : > { %p11938_p1 = scmp.ne.s32.totalorder %s1193_s28, %s11937_s0  ;;  %p11945_p4 = scmp.lt.s32.totalorder %s1193_s28, %s1193_s28 }
  0xed   : > { %p11946_p7 = scmp.lt.s32.totalorder %s11944_s2, %s11937_s0 }
  0xee   : > { %p11940_p2 = pnand %p11938_p1, %p12940_p0 }
  0xef   : > { %p11947_p8 = por %p11946_p7, %p11945_p4 }
  0xf0   : > { %p11941_p3 = pneg %p11940_p2 }
  0xf2   : > { %p11948_p11 = pnand %p11947_p8, %p11941_p3 }
  0xf4   : > { %11951 = shalt.err (!%p11948_p11)
}
  0xf5   : > { %11199 = dma.hbm_to_vmem [thread:$0]  (!%p12928_p12), %s12732_s20, 16, %s1193_s28, [#allocation21]  }
  0xf6   : > { %s11952_s3 = scalar_lea.hbm %s14258_s13, 16 }
  0xf7   : > { %p11953_p13 = scmp.ne.s32.totalorder %s14258_s13, %s11952_s3  ;;  %p11959_p9 = scmp.lt.u32.totalorder %s11952_s3, %s14258_s13 }
  0xf9   : > { %p11955_p6 = pnand %p11953_p13, %p12940_p0 }
  0xfb   : > { %p11956_p5 = pneg %p11955_p6 }
  0xfd   : > { %p11961_p10 = pnand %p11959_p9, %p11956_p5 }
  0xff   : > { %11964 = shalt.err (!%p11961_p10)
}
 0x100   : > { %s11965_s18 = scalar_lea.vmem %s1221_s15, 16  ;;  %s11972_s26 = scalar_lea.vmem %s1221_s15, 32 }
 0x101   : > { %p11966_p1 = scmp.ne.s32.totalorder %s1221_s15, %s11965_s18  ;;  %p11973_p4 = scmp.lt.s32.totalorder %s1221_s15, %s1221_s15 }
 0x102   : > { %p11974_p7 = scmp.lt.s32.totalorder %s11972_s26, %s11965_s18 }
 0x103   : > { %p11968_p2 = pnand %p11966_p1, %p12940_p0 }
 0x104   : > { %p11975_p8 = por %p11974_p7, %p11973_p4 }
 0x105   : > { %p11969_p3 = pneg %p11968_p2 }
 0x107   : > { %p11976_p11 = pnand %p11975_p8, %p11969_p3 }
 0x109   : > { %11979 = shalt.err (!%p11976_p11)
}
 0x10a   : > { %11205 = dma.hbm_to_vmem [thread:$0]  (!%p12928_p12), %s14258_s13, 16, %s1221_s15, [#allocation24]  }
 0x10b   : > { %s12623_s28 = smov [#allocation26]   ;;  %s12624_s0 = smov [#allocation29]  }
 0x10c   : > { %s1244_s10 = sshll.u32 %s12623_s28, 4  ;;  %s1268_s2 = sshll.u32 %s12624_s0, 4  ;;  %s1245_s10 = int_to_ptr.vmem [resolvable:$true] %s1244_s10  ;;  %s1269_s2 = int_to_ptr.vmem [resolvable:$true] %s1268_s2 }
 0x10d   : > { %s11980_s3 = scalar_lea.hbm %s12767_s17, 1152 }
 0x10e   : > { %p11981_p13 = scmp.ne.s32.totalorder %s12767_s17, %s11980_s3  ;;  %p11987_p9 = scmp.lt.u32.totalorder %s11980_s3, %s12767_s17 }
 0x110   : > { %p11983_p6 = pnand %p11981_p13, %p12940_p0 }
 0x112   : > { %p11984_p5 = pneg %p11983_p6 }
 0x114   : > { %p11989_p10 = pnand %p11987_p9, %p11984_p5 }
 0x116   : > { %11992 = shalt.err (!%p11989_p10)
}
 0x117   : > { %s11993_s18 = scalar_lea.vmem %s1245_s10, 1152  ;;  %p12001_p4 = scmp.lt.s32.totalorder %s1245_s10, %s1245_s10 }
 0x118   : > { %p11994_p1 = scmp.ne.s32.totalorder %s1245_s10, %s11993_s18  ;;  %p12002_p7 = scmp.lt.s32.totalorder %s11993_s18, %s11993_s18 }
 0x11a   : > { %p11996_p2 = pnand %p11994_p1, %p12940_p0  ;;  %p12003_p8 = por %p12002_p7, %p12001_p4 }
 0x11c   : > { %p11997_p3 = pneg %p11996_p2 }
 0x11e   : > { %p12004_p11 = pnand %p12003_p8, %p11997_p3 }
 0x120   : > { %12007 = shalt.err (!%p12004_p11)
}
 0x121   : > { %s14198_s15 = smov 64   ;;  %s14200_s26 = smov 4  }
 0x122   : > { %11211 = dma.hbm_to_vmem [thread:$0]  (!%p12928_p12), %s12767_s17, 1152, %s1245_s10, [#allocation27], %s14198_s15, %s14198_s15, %s14200_s26  }
 0x123   : > { %s12008_s28 = scalar_lea.hbm %s12777_s27, 1536 }
 0x124   : > { %p12009_p13 = scmp.ne.s32.totalorder %s12777_s27, %s12008_s28  ;;  %p12015_p9 = scmp.lt.u32.totalorder %s12008_s28, %s12777_s27 }
 0x126   : > { %p12011_p6 = pnand %p12009_p13, %p12940_p0 }
 0x128   : > { %p12012_p5 = pneg %p12011_p6 }
 0x12a   : > { %p12017_p10 = pnand %p12015_p9, %p12012_p5 }
 0x12c   : > { %12020 = shalt.err (!%p12017_p10)
}
 0x12d   : > { %s12021_s0 = scalar_lea.vmem %s1269_s2, 1536  ;;  %p12029_p4 = scmp.lt.s32.totalorder %s1269_s2, %s1269_s2 }
 0x12e   : > { %p12022_p1 = scmp.ne.s32.totalorder %s1269_s2, %s12021_s0  ;;  %p12030_p7 = scmp.lt.s32.totalorder %s12021_s0, %s12021_s0 }
 0x130   : > { %p12024_p2 = pnand %p12022_p1, %p12940_p0  ;;  %p12031_p8 = por %p12030_p7, %p12029_p4 }
 0x132   : > { %p12025_p3 = pneg %p12024_p2 }
 0x134   : > { %p12032_p11 = pnand %p12031_p8, %p12025_p3 }
 0x136   : > { %12035 = shalt.err (!%p12032_p11)
}
 0x137   : > { %11217 = dma.hbm_to_vmem [thread:$0]  (!%p12928_p12), %s12777_s27, 1536, %s1269_s2, [#allocation30], %s14198_s15, %s14198_s15, %s14200_s26  }
 0x138   : > { %s12627_s10 = smov [#allocation32]   ;;  %s12628_s18 = smov [#allocation35]  }
 0x139   : > { %s1299_s3 = sshll.u32 %s12627_s10, 4  ;;  %s1323_s28 = sshll.u32 %s12628_s18, 4  ;;  %s1300_s3 = int_to_ptr.vmem [resolvable:$true] %s1299_s3  ;;  %s1324_s28 = int_to_ptr.vmem [resolvable:$true] %s1323_s28 }
 0x13a   : > { %s12036_s0 = scalar_lea.hbm %s14259_s12, 16 }
 0x13b   : > { %p12037_p13 = scmp.ne.s32.totalorder %s14259_s12, %s12036_s0  ;;  %p12043_p9 = scmp.lt.u32.totalorder %s12036_s0, %s14259_s12 }
 0x13d   : > { %p12039_p6 = pnand %p12037_p13, %p12940_p0 }
 0x13f   : > { %p12040_p5 = pneg %p12039_p6 }
 0x141   : > { %p12045_p10 = pnand %p12043_p9, %p12040_p5 }
 0x143   : > { %12048 = shalt.err (!%p12045_p10)
}
 0x144   : > { %s12049_s6 = scalar_lea.vmem %s1300_s3, 16  ;;  %s12056_s2 = scalar_lea.vmem %s1300_s3, 32 }
 0x145   : > { %p12050_p1 = scmp.ne.s32.totalorder %s1300_s3, %s12049_s6  ;;  %p12057_p4 = scmp.lt.s32.totalorder %s1300_s3, %s1300_s3 }
 0x146   : > { %p12058_p7 = scmp.lt.s32.totalorder %s12056_s2, %s12049_s6 }
 0x147   : > { %p12052_p2 = pnand %p12050_p1, %p12940_p0 }
 0x148   : > { %p12059_p8 = por %p12058_p7, %p12057_p4 }
 0x149   : > { %p12053_p3 = pneg %p12052_p2 }
 0x14b   : > { %p12060_p11 = pnand %p12059_p8, %p12053_p3 }
 0x14d   : > { %12063 = shalt.err (!%p12060_p11)
}
 0x14e   : > { %11223 = dma.hbm_to_vmem [thread:$0]  (!%p12928_p12), %s14259_s12, 16, %s1300_s3, [#allocation33]  }
 0x14f   : > { %s12064_s10 = scalar_lea.hbm %s14261_s5, 128 }
 0x150   : > { %p12065_p13 = scmp.ne.s32.totalorder %s14261_s5, %s12064_s10  ;;  %p12071_p9 = scmp.lt.u32.totalorder %s12064_s10, %s14261_s5 }
 0x152   : > { %p12067_p6 = pnand %p12065_p13, %p12940_p0 }
 0x154   : > { %p12068_p5 = pneg %p12067_p6 }
 0x156   : > { %p12073_p10 = pnand %p12071_p9, %p12068_p5 }
 0x158   : > { %12076 = shalt.err (!%p12073_p10)
}
 0x159   : > { %s12077_s6 = scalar_lea.vmem %s1324_s28, 128  ;;  %p12085_p4 = scmp.lt.s32.totalorder %s1324_s28, %s1324_s28 }
 0x15a   : > { %p12078_p1 = scmp.ne.s32.totalorder %s1324_s28, %s12077_s6  ;;  %p12086_p7 = scmp.lt.s32.totalorder %s12077_s6, %s12077_s6 }
 0x15c   : > { %p12080_p2 = pnand %p12078_p1, %p12940_p0  ;;  %p12087_p8 = por %p12086_p7, %p12085_p4 }
 0x15e   : > { %p12081_p3 = pneg %p12080_p2 }
 0x160   : > { %p12088_p11 = pnand %p12087_p8, %p12081_p3 }
 0x162   : > { %12091 = shalt.err (!%p12088_p11)
}
 0x163   : > { %11229 = dma.hbm_to_vmem [thread:$0]  (!%p12928_p12), %s14261_s5, 128, %s1324_s28, [#allocation36], %s14198_s15, %s14198_s15, %s14200_s26  }
 0x164   : > { %s12629_s3 = smov [#allocation2]   ;;  %s12630_s0 = smov [#allocation7]  }
 0x165   : > { %s1056_s18 = sshll.u32 %s12629_s3, 4  ;;  %s1082_s2 = sshll.u32 %s12630_s0, 4  ;;  %s1057_s18 = int_to_ptr.vmem [resolvable:$true] %s1056_s18  ;;  %s1083_s2 = int_to_ptr.vmem [resolvable:$true] %s1082_s2 }
 0x166   : > { %s12092_s10 = scalar_lea.hbm %s12677_s21, 384 }
 0x167   : > { %p12093_p13 = scmp.ne.s32.totalorder %s12677_s21, %s12092_s10  ;;  %p12099_p9 = scmp.lt.u32.totalorder %s12092_s10, %s12677_s21 }
 0x169   : > { %p12095_p6 = pnand %p12093_p13, %p12940_p0 }
 0x16b   : > { %p12096_p5 = pneg %p12095_p6 }
 0x16d   : > { %p12101_p10 = pnand %p12099_p9, %p12096_p5 }
 0x16f   : > { %12104 = shalt.err (!%p12101_p10)
}
 0x170   : > { %s12105_s6 = scalar_lea.vmem %s1057_s18, 384  ;;  %p12113_p4 = scmp.lt.s32.totalorder %s1057_s18, %s1057_s18 }
 0x171   : > { %p12106_p1 = scmp.ne.s32.totalorder %s1057_s18, %s12105_s6  ;;  %p12114_p7 = scmp.lt.s32.totalorder %s12105_s6, %s12105_s6 }
 0x173   : > { %p12108_p2 = pnand %p12106_p1, %p12940_p0  ;;  %p12115_p8 = por %p12114_p7, %p12113_p4 }
 0x175   : > { %p12109_p3 = pneg %p12108_p2 }
 0x177   : > { %p12116_p11 = pnand %p12115_p8, %p12109_p3 }
 0x179   : > { %12119 = shalt.err (!%p12116_p11)
}
 0x17a   : > { %s14276_s28 = smov 8   ;;  %s14277_s3 = smov 128  }
 0x17b   : > { %11166 = dma.hbm_to_vmem [thread:$0]  (!%p12928_p12), %s12677_s21, 384, %s1057_s18, [#allocation3], %s14277_s3, %s14277_s3, %s14276_s28  }
 0x17c   : > { %s12120_s0 = scalar_lea.hbm %s12687_s29, 256 }
 0x17d   : > { %p12121_p13 = scmp.ne.s32.totalorder %s12687_s29, %s12120_s0  ;;  %p12127_p9 = scmp.lt.u32.totalorder %s12120_s0, %s12687_s29 }
 0x17f   : > { %p12123_p6 = pnand %p12121_p13, %p12940_p0 }
 0x181   : > { %p12124_p5 = pneg %p12123_p6 }
 0x183   : > { %p12129_p10 = pnand %p12127_p9, %p12124_p5 }
 0x185   : > { %12132 = shalt.err (!%p12129_p10)
}
 0x186   : > { %s12133_s10 = scalar_lea.vmem %s1083_s2, 256  ;;  %p12141_p4 = scmp.lt.s32.totalorder %s1083_s2, %s1083_s2 }
 0x187   : > { %p12134_p1 = scmp.ne.s32.totalorder %s1083_s2, %s12133_s10  ;;  %p12142_p7 = scmp.lt.s32.totalorder %s12133_s10, %s12133_s10 }
 0x189   : > { %p12136_p2 = pnand %p12134_p1, %p12940_p0  ;;  %p12143_p8 = por %p12142_p7, %p12141_p4 }
 0x18b   : > { %p12137_p3 = pneg %p12136_p2 }
 0x18d   : > { %p12144_p11 = pnand %p12143_p8, %p12137_p3 }
 0x18f   : > { %12147 = shalt.err (!%p12144_p11)
}
 0x190   : > { %11172 = dma.hbm_to_vmem [thread:$0]  (!%p12928_p12), %s12687_s29, 256, %s1083_s2, [#allocation6], %s14277_s3, %s14277_s3, %s14276_s28  }
 0x191   : > { %s12631_s18 = smov [#allocation10]   ;;  %s12632_s0 = smov [#allocation13]  }
 0x192   : > { %s1109_s6 = sshll.u32 %s12631_s18, 4  ;;  %s1130_s15 = sshll.u32 %s12632_s0, 4  ;;  %s1110_s6 = int_to_ptr.vmem [resolvable:$true] %s1109_s6  ;;  %s1131_s15 = int_to_ptr.vmem [resolvable:$true] %s1130_s15 }
 0x193   : > { %s12148_s10 = scalar_lea.hbm %s14260_s8, 128 }
 0x194   : > { %p12149_p13 = scmp.ne.s32.totalorder %s14260_s8, %s12148_s10  ;;  %p12155_p9 = scmp.lt.u32.totalorder %s12148_s10, %s14260_s8 }
 0x196   : > { %p12151_p6 = pnand %p12149_p13, %p12940_p0 }
 0x198   : > { %p12152_p5 = pneg %p12151_p6 }
 0x19a   : > { %p12157_p10 = pnand %p12155_p9, %p12152_p5 }
 0x19c   : > { %12160 = shalt.err (!%p12157_p10)
}
 0x19d   : > { %s12161_s26 = scalar_lea.vmem %s1110_s6, 128  ;;  %p12169_p4 = scmp.lt.s32.totalorder %s1110_s6, %s1110_s6 }
 0x19e   : > { %p12162_p1 = scmp.ne.s32.totalorder %s1110_s6, %s12161_s26  ;;  %p12170_p7 = scmp.lt.s32.totalorder %s12161_s26, %s12161_s26 }
 0x1a0   : > { %p12164_p2 = pnand %p12162_p1, %p12940_p0  ;;  %p12171_p8 = por %p12170_p7, %p12169_p4 }
 0x1a2   : > { %p12165_p3 = pneg %p12164_p2 }
 0x1a4   : > { %p12172_p11 = pnand %p12171_p8, %p12165_p3 }
 0x1a6   : > { %12175 = shalt.err (!%p12172_p11)
}
 0x1a7   : > { %s14278_s2 = sld [smem:[#allocation61_spill]] }
 0x1a8   : > { %11178 = dma.hbm_to_vmem [thread:$0]  (!%p12928_p12), %s14260_s8, 128, %s1110_s6, [#allocation9]  }
 0x1ad   : > { %s12176_s18 = scalar_lea.hbm %s14278_s2, 1152 }
 0x1ae   : > { %p12177_p13 = scmp.ne.s32.totalorder %s14278_s2, %s12176_s18  ;;  %p12183_p9 = scmp.lt.u32.totalorder %s12176_s18, %s14278_s2 }
 0x1b0   : > { %p12179_p6 = pnand %p12177_p13, %p12940_p0 }
 0x1b2   : > { %p12180_p5 = pneg %p12179_p6 }
 0x1b4   : > { %p12185_p10 = pnand %p12183_p9, %p12180_p5 }
 0x1b6   : > { %12188 = shalt.err (!%p12185_p10)
}
 0x1b7   : > { %s12189_s26 = scalar_lea.vmem %s1131_s15, 1152  ;;  %p12197_p4 = scmp.lt.s32.totalorder %s1131_s15, %s1131_s15 }
 0x1b8   : > { %p12190_p1 = scmp.ne.s32.totalorder %s1131_s15, %s12189_s26  ;;  %p12198_p7 = scmp.lt.s32.totalorder %s12189_s26, %s12189_s26 }
 0x1ba   : > { %p12192_p2 = pnand %p12190_p1, %p12940_p0  ;;  %p12199_p8 = por %p12198_p7, %p12197_p4 }
 0x1bc   : > { %p12193_p3 = pneg %p12192_p2 }
 0x1be   : > { %p12200_p11 = pnand %p12199_p8, %p12193_p3 }
 0x1c0   : > { %12203 = shalt.err (!%p12200_p11)
}
 0x1c1   : > { %s14279_s6 = smov 4   ;;  %s14280_s0 = smov 64  }
 0x1c2   : > { %s14281_s10 = sld [smem:[#allocation62_spill]]  ;;  %s12633_s18 = smov [#allocation16]  }
 0x1c3   : > { %11184 = dma.hbm_to_vmem [thread:$0]  (!%p12928_p12), %s14278_s2, 1152, %s1131_s15, [#allocation12], %s14280_s0, %s14280_s0, %s14279_s6  }
 0x1c4   : > { %s1154_s5 = sshll.u32 %s12633_s18, 4  ;;  %s12634_s8 = smov [#allocation19]   ;;  %s1155_s5 = int_to_ptr.vmem [resolvable:$true] %s1154_s5 }
 0x1c5   : > { %s1178_s12 = sshll.u32 %s12634_s8, 4  ;;  %s1179_s12 = int_to_ptr.vmem [resolvable:$true] %s1178_s12 }
 0x1c8   : > { %s12204_s26 = scalar_lea.hbm %s14281_s10, 1536 }
 0x1c9   : > { %p12205_p13 = scmp.ne.s32.totalorder %s14281_s10, %s12204_s26  ;;  %p12211_p9 = scmp.lt.u32.totalorder %s12204_s26, %s14281_s10 }
 0x1cb   : > { %p12207_p6 = pnand %p12205_p13, %p12940_p0 }
 0x1cd   : > { %p12208_p5 = pneg %p12207_p6 }
 0x1cf   : > { %p12213_p10 = pnand %p12211_p9, %p12208_p5 }
 0x1d1   : > { %12216 = shalt.err (!%p12213_p10)
}
 0x1d2   : > { %s12217_s13 = scalar_lea.vmem %s1155_s5, 1536  ;;  %p12225_p4 = scmp.lt.s32.totalorder %s1155_s5, %s1155_s5 }
 0x1d3   : > { %p12218_p1 = scmp.ne.s32.totalorder %s1155_s5, %s12217_s13  ;;  %p12226_p7 = scmp.lt.s32.totalorder %s12217_s13, %s12217_s13 }
 0x1d5   : > { %p12220_p2 = pnand %p12218_p1, %p12940_p0  ;;  %p12227_p8 = por %p12226_p7, %p12225_p4 }
 0x1d7   : > { %p12221_p3 = pneg %p12220_p2 }
 0x1d9   : > { %p12228_p11 = pnand %p12227_p8, %p12221_p3 }
 0x1db   : > { %12231 = shalt.err (!%p12228_p11)
}
 0x1dc   : > { %s14282_s8 = sld [smem:[#allocation64_spill]] }
 0x1dd   : > { %11190 = dma.hbm_to_vmem [thread:$0]  (!%p12928_p12), %s14281_s10, 1536, %s1155_s5, [#allocation15], %s14280_s0, %s14280_s0, %s14279_s6  }
 0x1e2   : > { %s12232_s15 = scalar_lea.hbm %s14282_s8, 1536 }
 0x1e3   : > { %p12233_p13 = scmp.ne.s32.totalorder %s14282_s8, %s12232_s15  ;;  %p12239_p9 = scmp.lt.u32.totalorder %s12232_s15, %s14282_s8 }
 0x1e5   : > { %p12235_p6 = pnand %p12233_p13, %p12940_p0 }
 0x1e7   : > { %p12236_p5 = pneg %p12235_p6 }
 0x1e9   : > { %p12241_p10 = pnand %p12239_p9, %p12236_p5 }
 0x1eb   : > { %12244 = shalt.err (!%p12241_p10)
}
 0x1ec   : > { %s12245_s13 = scalar_lea.vmem %s1179_s12, 1536  ;;  %p12253_p4 = scmp.lt.s32.totalorder %s1179_s12, %s1179_s12 }
 0x1ed   : > { %p12246_p1 = scmp.ne.s32.totalorder %s1179_s12, %s12245_s13  ;;  %p12254_p7 = scmp.lt.s32.totalorder %s12245_s13, %s12245_s13 }
 0x1ef   : > { %p12248_p2 = pnand %p12246_p1, %p12940_p0  ;;  %p12255_p8 = por %p12254_p7, %p12253_p4 }
 0x1f1   : > { %p12249_p3 = pneg %p12248_p2 }
 0x1f3   : > { %p12256_p11 = pnand %p12255_p8, %p12249_p3 }
 0x1f5   : > { %12259 = shalt.err (!%p12256_p11)
}
 0x1f6   : > { %s14283_s5 = sld [smem:[#allocation66_spill]]  ;;  %s12635_s18 = smov [#allocation22]  }
 0x1f7   : > { %11196 = dma.hbm_to_vmem [thread:$0]  (!%p12928_p12), %s14282_s8, 1536, %s1179_s12, [#allocation18], %s14280_s0, %s14280_s0, %s14279_s6  }
 0x1f8   : > { %s1206_s26 = sshll.u32 %s12635_s18, 4  ;;  %s12636_s15 = smov [#allocation25]   ;;  %s1207_s26 = int_to_ptr.vmem [resolvable:$true] %s1206_s26 }
 0x1f9   : > { %s1234_s2 = sshll.u32 %s12636_s15, 4  ;;  %s1235_s2 = int_to_ptr.vmem [resolvable:$true] %s1234_s2 }
 0x1fc   : > { %s12260_s13 = scalar_lea.hbm %s14283_s5, 16 }
 0x1fd   : > { %p12261_p13 = scmp.ne.s32.totalorder %s14283_s5, %s12260_s13  ;;  %p12267_p9 = scmp.lt.u32.totalorder %s12260_s13, %s14283_s5 }
 0x1ff   : > { %p12263_p6 = pnand %p12261_p13, %p12940_p0 }
 0x201   : > { %p12264_p5 = pneg %p12263_p6 }
 0x203   : > { %p12269_p10 = pnand %p12267_p9, %p12264_p5 }
 0x205   : > { %12272 = shalt.err (!%p12269_p10)
}
 0x206   : > { %s12273_s10 = scalar_lea.vmem %s1207_s26, 16  ;;  %s12280_s12 = scalar_lea.vmem %s1207_s26, 32 }
 0x207   : > { %p12274_p1 = scmp.ne.s32.totalorder %s1207_s26, %s12273_s10  ;;  %p12281_p4 = scmp.lt.s32.totalorder %s1207_s26, %s1207_s26 }
 0x208   : > { %p12282_p7 = scmp.lt.s32.totalorder %s12280_s12, %s12273_s10 }
 0x209   : > { %p12276_p2 = pnand %p12274_p1, %p12940_p0 }
 0x20a   : > { %p12283_p8 = por %p12282_p7, %p12281_p4 }
 0x20b   : > { %p12277_p3 = pneg %p12276_p2 }
 0x20d   : > { %p12284_p11 = pnand %p12283_p8, %p12277_p3 }
 0x20f   : > { %12287 = shalt.err (!%p12284_p11)
}
 0x210   : > { %s14284_s6 = sld [smem:[#allocation70_spill]] }
 0x211   : > { %11202 = dma.hbm_to_vmem [thread:$0]  (!%p12928_p12), %s14283_s5, 16, %s1207_s26, [#allocation21]  }
 0x216   : > { %s12288_s0 = scalar_lea.hbm %s14284_s6, 16 }
 0x217   : > { %p12289_p13 = scmp.ne.s32.totalorder %s14284_s6, %s12288_s0  ;;  %p12295_p9 = scmp.lt.u32.totalorder %s12288_s0, %s14284_s6 }
 0x219   : > { %p12291_p6 = pnand %p12289_p13, %p12940_p0 }
 0x21b   : > { %p12292_p5 = pneg %p12291_p6 }
 0x21d   : > { %p12297_p10 = pnand %p12295_p9, %p12292_p5 }
 0x21f   : > { %12300 = shalt.err (!%p12297_p10)
}
 0x220   : > { %s12301_s10 = scalar_lea.vmem %s1235_s2, 16  ;;  %s12308_s18 = scalar_lea.vmem %s1235_s2, 32 }
 0x221   : > { %p12302_p1 = scmp.ne.s32.totalorder %s1235_s2, %s12301_s10  ;;  %p12309_p4 = scmp.lt.s32.totalorder %s1235_s2, %s1235_s2 }
 0x222   : > { %p12310_p7 = scmp.lt.s32.totalorder %s12308_s18, %s12301_s10 }
 0x223   : > { %p12304_p2 = pnand %p12302_p1, %p12940_p0 }
 0x224   : > { %p12311_p8 = por %p12310_p7, %p12309_p4 }
 0x225   : > { %p12305_p3 = pneg %p12304_p2 }
 0x227   : > { %p12312_p11 = pnand %p12311_p8, %p12305_p3 }
 0x229   : > { %12315 = shalt.err (!%p12312_p11)
}
 0x22a   : > { %s14285_s26 = sld [smem:[#allocation71_spill]]  ;;  %s12637_s15 = smov [#allocation28]  }
 0x22b   : > { %11208 = dma.hbm_to_vmem [thread:$0]  (!%p12928_p12), %s14284_s6, 16, %s1235_s2, [#allocation24]  }
 0x22c   : > { %s1258_s13 = sshll.u32 %s12637_s15, 4  ;;  %s12638_s12 = smov [#allocation31]   ;;  %s1259_s13 = int_to_ptr.vmem [resolvable:$true] %s1258_s13 }
 0x22d   : > { %s1282_s0 = sshll.u32 %s12638_s12, 4  ;;  %s1283_s0 = int_to_ptr.vmem [resolvable:$true] %s1282_s0 }
 0x230   : > { %s12316_s5 = scalar_lea.hbm %s14285_s26, 16 }
 0x231   : > { %p12317_p13 = scmp.ne.s32.totalorder %s14285_s26, %s12316_s5  ;;  %p12323_p9 = scmp.lt.u32.totalorder %s12316_s5, %s14285_s26 }
 0x233   : > { %p12319_p6 = pnand %p12317_p13, %p12940_p0 }
 0x235   : > { %p12320_p5 = pneg %p12319_p6 }
 0x237   : > { %p12325_p10 = pnand %p12323_p9, %p12320_p5 }
 0x239   : > { %12328 = shalt.err (!%p12325_p10)
}
 0x23a   : > { %s12329_s10 = scalar_lea.vmem %s1259_s13, 16  ;;  %s12336_s2 = scalar_lea.vmem %s1259_s13, 32 }
 0x23b   : > { %p12330_p1 = scmp.ne.s32.totalorder %s1259_s13, %s12329_s10  ;;  %p12337_p4 = scmp.lt.s32.totalorder %s1259_s13, %s1259_s13 }
 0x23c   : > { %p12338_p7 = scmp.lt.s32.totalorder %s12336_s2, %s12329_s10 }
 0x23d   : > { %p12332_p2 = pnand %p12330_p1, %p12940_p0 }
 0x23e   : > { %p12339_p8 = por %p12338_p7, %p12337_p4 }
 0x23f   : > { %p12333_p3 = pneg %p12332_p2 }
 0x241   : > { %p12340_p11 = pnand %p12339_p8, %p12333_p3 }
 0x243   : > { %12343 = shalt.err (!%p12340_p11)
}
 0x244   : > { %s14286_s18 = sld [smem:[#allocation72_spill]] }
 0x245   : > { %11214 = dma.hbm_to_vmem [thread:$0]  (!%p12928_p12), %s14285_s26, 16, %s1259_s13, [#allocation27]  }
 0x24a   : > { %s14287_s12 = smov %s14286_s18  ;;  %s12344_s5 = scalar_lea.hbm %s14286_s18, 16 }
 0x24b   : > { %p12345_p13 = scmp.ne.s32.totalorder %s14287_s12, %s12344_s5  ;;  %p12351_p9 = scmp.lt.u32.totalorder %s12344_s5, %s14287_s12 }
 0x24d   : > { %p12347_p6 = pnand %p12345_p13, %p12940_p0 }
 0x24f   : > { %p12348_p5 = pneg %p12347_p6 }
 0x251   : > { %p12353_p10 = pnand %p12351_p9, %p12348_p5 }
 0x253   : > { %12356 = shalt.err (!%p12353_p10)
}
 0x254   : > { %s12357_s15 = scalar_lea.vmem %s1283_s0, 16  ;;  %s12364_s10 = scalar_lea.vmem %s1283_s0, 32 }
 0x255   : > { %p12358_p1 = scmp.ne.s32.totalorder %s1283_s0, %s12357_s15  ;;  %p12365_p4 = scmp.lt.s32.totalorder %s1283_s0, %s1283_s0 }
 0x256   : > { %p12366_p7 = scmp.lt.s32.totalorder %s12364_s10, %s12357_s15 }
 0x257   : > { %p12360_p2 = pnand %p12358_p1, %p12940_p0 }
 0x258   : > { %p12367_p8 = por %p12366_p7, %p12365_p4 }
 0x259   : > { %p12361_p3 = pneg %p12360_p2 }
 0x25b   : > { %p12368_p11 = pnand %p12367_p8, %p12361_p3 }
 0x25d   : > { %12371 = shalt.err (!%p12368_p11)
}
 0x25e   : > { %s14288_s13 = sld [smem:[#allocation77_spill]]  ;;  %s12639_s2 = smov [#allocation34]  }
 0x25f   : > { %11220 = dma.hbm_to_vmem [thread:$0]  (!%p12928_p12), %s14287_s12, 16, %s1283_s0, [#allocation30]  }
 0x260   : > { %s1313_s18 = sshll.u32 %s12639_s2, 4  ;;  %s12640_s5 = smov [#allocation37]   ;;  %s1314_s18 = int_to_ptr.vmem [resolvable:$true] %s1313_s18 }
 0x261   : > { %s1340_s6 = sshll.u32 %s12640_s5, 4  ;;  %s1341_s6 = int_to_ptr.vmem [resolvable:$true] %s1340_s6 }
 0x264   : > { %s12372_s8 = scalar_lea.hbm %s14288_s13, 16 }
 0x265   : > { %p12373_p13 = scmp.ne.s32.totalorder %s14288_s13, %s12372_s8  ;;  %p12379_p9 = scmp.lt.u32.totalorder %s12372_s8, %s14288_s13 }
 0x267   : > { %p12375_p6 = pnand %p12373_p13, %p12940_p0 }
 0x269   : > { %p12376_p5 = pneg %p12375_p6 }
 0x26b   : > { %p12381_p10 = pnand %p12379_p9, %p12376_p5 }
 0x26d   : > { %12384 = shalt.err (!%p12381_p10)
}
 0x26e   : > { %s12385_s15 = scalar_lea.vmem %s1314_s18, 16  ;;  %s12392_s0 = scalar_lea.vmem %s1314_s18, 32 }
 0x26f   : > { %p12386_p1 = scmp.ne.s32.totalorder %s1314_s18, %s12385_s15  ;;  %p12393_p4 = scmp.lt.s32.totalorder %s1314_s18, %s1314_s18 }
 0x270   : > { %p12394_p7 = scmp.lt.s32.totalorder %s12392_s0, %s12385_s15 }
 0x271   : > { %p12388_p2 = pnand %p12386_p1, %p12940_p0 }
 0x272   : > { %p12395_p8 = por %p12394_p7, %p12393_p4 }
 0x273   : > { %p12389_p3 = pneg %p12388_p2 }
 0x275   : > { %p12396_p11 = pnand %p12395_p8, %p12389_p3 }
 0x277   : > { %12399 = shalt.err (!%p12396_p11)
}
 0x278   : > { %s14289_s10 = sld [smem:[#allocation80_spill]] }
 0x279   : > { %11226 = dma.hbm_to_vmem [thread:$0]  (!%p12928_p12), %s14288_s13, 16, %s1314_s18, [#allocation33]  }
 0x27e   : > { %s12400_s8 = scalar_lea.hbm %s14289_s10, 64 }
 0x27f   : > { %p12401_p13 = scmp.ne.s32.totalorder %s14289_s10, %s12400_s8  ;;  %p12407_p9 = scmp.lt.u32.totalorder %s12400_s8, %s14289_s10 }
 0x281   : > { %p12403_p6 = pnand %p12401_p13, %p12940_p0 }
 0x283   : > { %p12404_p5 = pneg %p12403_p6 }
 0x285   : > { %p12409_p10 = pnand %p12407_p9, %p12404_p5 }
 0x287   : > { %12412 = shalt.err (!%p12409_p10)
}
 0x288   : > { %s12413_s2 = scalar_lea.vmem %s1341_s6, 64  ;;  %p12421_p4 = scmp.lt.s32.totalorder %s1341_s6, %s1341_s6 }
 0x289   : > { %p12414_p1 = scmp.ne.s32.totalorder %s1341_s6, %s12413_s2  ;;  %p12422_p7 = scmp.lt.s32.totalorder %s12413_s2, %s12413_s2 }
 0x28b   : > { %p12416_p2 = pnand %p12414_p1, %p12940_p0  ;;  %p12423_p8 = por %p12422_p7, %p12421_p4 }
 0x28d   : > { %p12417_p3 = pneg %p12416_p2 }
 0x28f   : > { %p12424_p11 = pnand %p12423_p8, %p12417_p3 }
 0x291   : > { %12427 = shalt.err (!%p12424_p11)
}
 0x292   : > { %s14290_s18 = sld [smem:[#allocation85_spill]]  ;;  %s12641_s15 = smov [#allocation38]  }
 0x293   : > { %11232 = dma.hbm_to_vmem [thread:$0]  (!%p12928_p12), %s14289_s10, 64, %s1341_s6, [#allocation36]  }
 0x294   : > { %s1362_s0 = sshll.u32 %s12641_s15, 4  ;;  %s1363_s0 = int_to_ptr.vmem [resolvable:$true] %s1362_s0 }
 0x298   : > { %s14291_s5 = smov %s14290_s18  ;;  %s12428_s8 = scalar_lea.hbm %s14290_s18, 2048 }
 0x299   : > { %p12429_p13 = scmp.ne.s32.totalorder %s14291_s5, %s12428_s8  ;;  %p12435_p9 = scmp.lt.u32.totalorder %s12428_s8, %s14291_s5 }
 0x29b   : > { %p12431_p6 = pnand %p12429_p13, %p12940_p0 }
 0x29d   : > { %p12432_p5 = pneg %p12431_p6 }
 0x29f   : > { %p12437_p10 = pnand %p12435_p9, %p12432_p5 }
 0x2a1   : > { %12440 = shalt.err (!%p12437_p10)
}
 0x2a2   : > { %s12441_s2 = scalar_lea.vmem %s1363_s0, 2048  ;;  %p12449_p4 = scmp.lt.s32.totalorder %s1363_s0, %s1363_s0 }
 0x2a3   : > { %p12442_p1 = scmp.ne.s32.totalorder %s1363_s0, %s12441_s2  ;;  %p12450_p7 = scmp.lt.s32.totalorder %s12441_s2, %s12441_s2 }
 0x2a5   : > { %p12444_p2 = pnand %p12442_p1, %p12940_p0  ;;  %p12451_p8 = por %p12450_p7, %p12449_p4 }
 0x2a7   : > { %p12445_p3 = pneg %p12444_p2 }
 0x2a9   : > { %p12452_p11 = pnand %p12451_p8, %p12445_p3 }
 0x2ab   : > { %12455 = shalt.err (!%p12452_p11)
}
 0x2ac   : > { %11235 = dma.hbm_to_vmem [thread:$0]  (!%p12928_p12), %s14291_s5, 2048, %s1363_s0, [#allocation39], %s14277_s3, %s14277_s3, %s14276_s28  }
 0x2ad   : > { %p14292_p13 = scmp.ne.s32.totalorder %s14273_s11, 0 }
 0x2ae   : > { %p14293_p6 = scmp.eq.s32.totalorder (!%p14292_p13), %s12890_s22, 0 }
 0x2af   : > { %1392 = sbr.rel (%p14292_p13) target bundleno = 8170 (0x1fea), region = 184 }
 0x2b6   : > { %12501 = dma.done.wait (%p14293_p6), [#allocation3], 384   ;;  %p14294_p0 = pmov %p14293_p6 }
 0x2b8   : > { %12503 = vsyncadd (%p14294_p0), [#allocation3], 4294966912  ;;  %p14295_p5 = pmov %p14294_p0 }
 0x2b9   : > { %p14296_p9 = pmov %p14294_p0 }
 0x2ba   : > { %12505 = dma.done.wait (%p14295_p5), [#allocation6], 640  }
 0x2bb   : > { %12507 = vsyncadd (%p14296_p9), [#allocation6], 4294966656  ;;  %p14297_p10 = pmov %p14294_p0 }
 0x2bc   : > { %p14298_p12 = pmov %p14294_p0 }
 0x2bd   : > { %12509 = dma.done.wait (%p14297_p10), [#allocation9], 384  }
 0x2be   : > { %12511 = vsyncadd (%p14298_p12), [#allocation9], 4294966912  ;;  %p14299_p1 = pmov %p14294_p0 }
 0x2bf   : > { %p14300_p2 = pmov %p14294_p0 }
 0x2c0   : > { %12513 = dma.done.wait (%p14299_p1), [#allocation12], 1280  }
 0x2c1   : > { %12515 = vsyncadd (%p14300_p2), [#allocation12], 4294966016  ;;  %p14301_p3 = pmov %p14294_p0 }
 0x2c2   : > { %p14302_p4 = pmov %p14294_p0 }
 0x2c3   : > { %12517 = dma.done.wait (%p14301_p3), [#allocation15], 1552  }
 0x2c4   : > { %12519 = vsyncadd (%p14302_p4), [#allocation15], 4294965744  ;;  %p14303_p7 = pmov %p14294_p0 }
 0x2c5   : > { %p14304_p8 = pmov %p14294_p0 }
 0x2c6   : > { %12521 = dma.done.wait (%p14303_p7), [#allocation18], 1552  }
 0x2c7   : > { %12523 = vsyncadd (%p14304_p8), [#allocation18], 4294965744  ;;  %p14305_p11 = pmov %p14294_p0 }
 0x2c8   : > { %p14306_p13 = pmov %p14294_p0 }
 0x2c9   : > { %12525 = dma.done.wait (%p14305_p11), [#allocation21], 32  }
 0x2ca   : > { %12527 = vsyncadd (%p14306_p13), [#allocation21], 4294967264  ;;  %p14307_p6 = pmov %p14294_p0 }
 0x2cc   : > { %12529 = dma.done.wait (%p14307_p6), [#allocation24], 32  }
 0x2cd   : > { %12531 = vsyncadd (%p14294_p0), [#allocation24], 4294967264  ;;  %p14308_p5 = pmov %p14294_p0 }
 0x2ce   : > { %p14309_p9 = pmov %p14294_p0 }
 0x2cf   : > { %12533 = dma.done.wait (%p14308_p5), [#allocation27], 1168  }
 0x2d0   : > { %12535 = vsyncadd (%p14309_p9), [#allocation27], 4294966128  ;;  %p14310_p10 = pmov %p14294_p0 }
 0x2d1   : > { %p14311_p12 = pmov %p14294_p0 }
 0x2d2   : > { %12537 = dma.done.wait (%p14310_p10), [#allocation30], 1552  }
 0x2d3   : > { %12539 = vsyncadd (%p14311_p12), [#allocation30], 4294965744  ;;  %p14312_p1 = pmov %p14294_p0 }
 0x2d4   : > { %p14313_p2 = pmov %p14294_p0 }
 0x2d5   : > { %12541 = dma.done.wait (%p14312_p1), [#allocation33], 32  }
 0x2d6   : > { %12543 = vsyncadd (%p14313_p2), [#allocation33], 4294967264  ;;  %p14314_p3 = pmov %p14294_p0 }
 0x2d7   : > { %p14315_p4 = pmov %p14294_p0 }
 0x2d8   : > { %12545 = dma.done.wait (%p14314_p3), [#allocation36], 192  }
 0x2d9   : > { %12547 = vsyncadd (%p14315_p4), [#allocation36], 4294967104  ;;  %p14316_p7 = pmov %p14294_p0 }
 0x2da   : > { %p14317_p8 = pmov %p14294_p0 }
 0x2db   : > { %12549 = dma.done.wait (%p14316_p7), [#allocation39], 2048  }
 0x2dc   : > { %12551 = vsyncadd (%p14317_p8), [#allocation39], 4294965248  ;;  %s14318_s11 = sld [smem:[#allocation55_spill]]  ;;  %p1590_p11 = scmp.lt.s32.totalorder %s12890_s22, 1  ;;  %v11399_v0 = vld [vmem:[#allocation13] sm:$0xff]   ;;  %v11400_v1 = vld [vmem:[#allocation13 + $0x8] sm:$0xff]  }
 0x2dd   : > { %10171 = vmatprep.subr.bf16.mxu0 %v11399_v0  ;;  %v11401_v2 = vld [vmem:[#allocation13 + $0x30] sm:$0xff]   ;;  %v11403_v4 = vld [vmem:[#allocation13 + $0x38] sm:$0xff]   ;;  %vm1636_vm0 = vcmask 392192   ;;  %v11406_v6 = vld [vmem:[#allocation13 + $0x40] sm:$0xff]   ;;  %s14319_s3 = sld [smem:[#allocation56_spill]]  ;;  %v12642_v11 = vmov 0.0|0.0  }
 0x2de   : > { %s13282_s1 = scalar_select %p1590_p11, %s12890_s22, 1  ;;  %10172 = vmatpush3.bf16.msra.mxu0 %v11399_v0  ;;  %v11402_v3 = vld [vmem:[#allocation13 + $0x10] sm:$0xff]   ;;  %10181 = vmatprep.subr.bf16.mxu1 %v11401_v2  ;;  %v11407_v8 = vld [vmem:[#allocation13 + $0x18] sm:$0xff]   ;;  %v11408_v9 = vld [vmem:[#allocation13 + $0x20] sm:$0xff]   ;;  %v12643_v12 = vmov 0.0   ;;  %vm12644_vm1 = vmmov 0  }
 0x2df   : > { %10173 = vmatprep.subr.bf16.mxu0 %v11400_v1  ;;  %10182 = vmatpush3.bf16.msra.mxu1 %v11401_v2  ;;  %v11409_v10 = vld [vmem:[#allocation13 + $0x28] sm:$0xff]   ;;  %s14320_s6 = sld [smem:[#allocation57_spill]]  ;;  %s14321_s18 = sld [smem:[#allocation58_spill]]  ;;  %v12645_v15 = vmov 0   ;;  %v1771_v30 = vld [vmem:[#allocation2] sm:$0xff]  ;;  %vm1774_vm2 = vcmask 195584  }
 0x2e0   : > { %s11063_s23 = smul.u32 12, %s13282_s1  ;;  %10183 = vmatprep.subr.bf16.mxu1 %v11403_v4  ;;  %11397 = vset.pattern.permute.xlu0 %v12645_v15  ;;  %v1772_v31 = vld [vmem:[#allocation2 + $0x8] sm:$0xff]  ;;  %v1773_v32 = vld [vmem:[#allocation2 + $0x10] sm:$0xff]  ;;  %s14322_s15 = sld [smem:[#allocation79_spill]]  ;;  %v1930_v33 = vld [vmem:[#allocation5] sm:$0xff]  ;;  %vm2071_vm3 = vcmask 1043456  }
 0x2e1   : > { %11398 = vset.pattern.permute.xlu1 %v12645_v15  ;;  %v1931_v34 = vld [vmem:[#allocation5 + $0x8] sm:$0xff]  ;;  %v1932_v35 = vld [vmem:[#allocation5 + $0x10] sm:$0xff]  ;;  %vm2255_vm4 = vcmask 523264   ;;  %vm2385_vm5 = vcmask 130048   ;;  %s14324_s0 = sld [smem:[#allocation81_spill]]  ;;  %vm2951_vm6 = vcmask 64512  }
 0x2e2   : > { %s13286_s28 = scalar_lea.vmem %s14318_s11, %s11063_s23  ;;  %10174 = vmatpush3.bf16.msra.mxu0 %v11400_v1  ;;  %v8897_v57 = vld [vmem:[#allocation14] ss:$0 sm:$0xff]  ;;  %s14326_s11 = sld [smem:[#allocation83_spill]]  ;;  %vm8444_vm7 = vcmask 253952   ;;  %vm8311_vm8 = vcmask 654336  }
 0x2e3   : > { %v11404_v5 = vld [vmem:[%s13286_s28] sm:$0xff]   ;;  %10175 = vmatprep.subr.bf16.mxu0 %v11402_v3  ;;  %v11405_v7 = vld [vmem:[%s13286_s28 + $0x8] ss:$0 sps:$4 sm:$0xff]   ;;  %10184 = vmatpush3.bf16.msra.mxu1 %v11403_v4  ;;  %v2040_v14 = vld [vmem:[%s14319_s3 + $0x10] sm:$0xff]  ;;  %s14327_s23 = sld [smem:[#allocation82_spill]]  ;;  %p14342_p6 = scmp.ne.s32.totalorder %s14270_s7, 0 }
 0x2e4   : > { %10177 = vmatprep.mubr.msk.bf16.mxu0 %vm1636_vm0, %v11404_v5  ;;  %10187 = vmatprep.mubr.msk.bf16.mxu1 %vm1636_vm0, %v11404_v5  ;;  %v2038_v13 = vld [vmem:[%s14319_s3] sm:$0xff]  ;;  %v2039_v16 = vld [vmem:[%s14319_s3 + $0x8] sm:$0xff] }
 0x2e5   : > { %10185 = vmatprep.subr.bf16.mxu1 %v11406_v6  ;;  %v2628_v17 = vld [vmem:[%s14320_s6] sm:$0xff]  ;;  %2043 = vperm.xlu0 %11397, %v2038_v13   ;;  %v2629_v18 = vld [vmem:[%s14320_s6 + $0x8] sm:$0xff]  ;;  %s14341_s6 = sand.u32 1, %s12562_s16  }
 0x2e6   : > { %10176 = vmatpush3.bf16.msra.mxu0 %v11402_v3  ;;  %2053 = vperm.xlu1 %11398, %v2040_v14   ;;  %v3173_v19 = vld [vmem:[%s14321_s18] sm:$0xff]  ;;  %s14323_s8 = smov %s14322_s15  ;;  %s14328_s18 = sld [smem:[#allocation65_spill]] }
 0x2e7   : > { %10186 = vmatpush3.bf16.msra.mxu1 %v11406_v6  ;;  %10945 = vmatprep.subr.bf16.mxu0 %v12642_v11  ;;  %v11411_v40 = vld [vmem:[%s14322_s15] sm:$0xff]   ;;  %v11412_v41 = vld [vmem:[%s14323_s8 + $0x8] sm:$0xff]   ;;  %v11413_v42 = vld [vmem:[%s14323_s8 + $0x10] sm:$0xff]   ;;  %s14325_s2 = smov %s14324_s0  ;;  %s14211_s15 = sand.u32 1, %s12562_s16  }
 0x2e8   : > { %10206 = vmatprep.subr.bf16.mxu1 %v11407_v8  ;;  %v11414_v43 = vld [vmem:[%s14323_s8 + $0x18] sm:$0xff]   ;;  %v11415_v44 = vld [vmem:[%s14323_s8 + $0x20] sm:$0xff]   ;;  %v11416_v45 = vld [vmem:[%s14323_s8 + $0x28] sm:$0xff]  }
 0x2e9   : > { %10178 = vmatmul.mubr.msk.bf16.vlgmr.msra.gmra.mrb[0].mxu0 %vm1636_vm0, %v11405_v7  ;;  %2048 = vperm.xlu0 %11397, %v2039_v16   ;;  %v11417_v46 = vld [vmem:[%s14323_s8 + $0x30] sm:$0xff]  }
 0x2ea   : > { %10188 = vmatmul.mubr.msk.bf16.vlgmr.msra.gmra.mrb[0].mxu1 %vm1636_vm0, %v11405_v7  ;;  %10197 = vmatprep.mubr.msk.f32.mxu0 %vm12644_vm1, %v12643_v12 }
 0x2eb   : > { %10207 = vmatpush3.bf16.msra.mxu1 %v11407_v8  ;;  %10212 = vmatprep.mubr.msk.bf16.mxu1 %vm1636_vm0, %v11404_v5 }
 0x2ec   : > { %10208 = vmatprep.subr.bf16.mxu1 %v11408_v9  ;;  %2632 = vperm.xlu1 %11398, %v2628_v17  }
 0x2ed   : > { %2637 = vperm.xlu0 %11397, %v2629_v18  }
 0x2ef   : > { %10209 = vmatpush3.bf16.msra.mxu1 %v11408_v9 }
 0x2f0   : > { %10210 = vmatprep.subr.bf16.mxu1 %v11409_v10  ;;  %3176 = vperm.xlu1 %11398, %v3173_v19  }
 0x2f3   : > { %10211 = vmatpush3.bf16.msra.mxu1 %v11409_v10 }
 0x2f4   : > { %10231 = vmatprep.subr.bf16.mxu1 %v12643_v12 }
 0x2f6   : > { %10213 = vmatmul.mubr.msk.bf16.vlgmr.msra.gmra.mrb[4].mxu1 %vm1636_vm0, %v11405_v7 }
 0x2f7   : > { %10235 = vmatprep.mubr.msk.bf16.mxu1 %vm12644_vm1, %v12643_v12 }
 0x364   : > { %v13346_v61 = vpop.permute.xlu0 %2043 }
 0x365   : > { %v13352_v16 = vpop.permute.xlu1 %2053 }
 0x368   : > { %v13348_v7 = vpop.permute.xlu0 %2048 }
 0x3bc   : > { %v10179_v20 = vpop.f32.mrb[0].mxu0 }
 0x3bd   : > { %v1677_v21 = vpop.f32.mrb[1].mxu0  ;;  %v10189_v23 = vpop.f32.mrb[0].mxu1 }
 0x3be   : > { %v10180_v22 = vpop.f32.mrb[2].mxu0  ;;  %v1757_v25 = vpop.f32.mrb[1].mxu1 }
 0x3bf   : > { %v1680_v24 = vpop.f32.mrb[3].mxu0  ;;  %v10190_v27 = vpop.f32.mrb[2].mxu1  ;;  %v11419_v22 = vld [vmem:[#allocation16] sm:$0xff]  }
 0x3c0   : > { %v10946_v26 = vpack.c.bf16 %v1680_v24, %v1677_v21  ;;  %v1760_v28 = vpop.f32.mrb[3].mxu1  ;;  %v11418_v21 = vld [vmem:[%s14323_s8 + $0x38] sm:$0xff]  }
 0x3c1   : > { %v10949_v29 = vpack.c.bf16 %v1760_v28, %v1757_v25  ;;  %v11421_v24 = vld [vmem:[#allocation16 + $0x10] sm:$0xff]  }
 0x3c2   : > { %10947 = vmatpush3.bf16.msra.mxu0 %v10946_v26 }
 0x3c3   : > { %10195 = vmatprep.subr.mxu0 %v12643_v12 }
 0x3c6   : > { %10196 = vmatpush3.msra.mxu0 %v10179_v20  ;;  %v11410_v20 = vld [vmem:[#allocation35] sm:$0xff]  }
 0x3c7   : > { %10198 = vmatmul.mubr.msk.f32.vlgmr.msra.gmra.mrb[4].mxu0 %vm1774_vm2, %v1771_v30  ;;  %10948 = vmatprep.subr.bf16.mxu0 %v12642_v11  ;;  %v11422_v30 = vld [vmem:[#allocation16 + $0x18] sm:$0xff]  }
 0x3c8   : > { %10950 = vmatpush3.bf16.msra.mxu0 %v10949_v29  ;;  %10200 = vmatprep.mubr.msk.f32.mxu0 %vm12644_vm1, %v12643_v12 }
 0x3c9   : > { %10220 = vmatprep.subr.mxu0 %v12643_v12  ;;  %v10214_v36 = vpop.f32.mrb[4].mxu1 }
 0x3ca   : > { %v1916_v37 = vpop.f32.mrb[5].mxu1 }
 0x3cb   : > { %10201 = vmatmul.mubr.msk.f32.gmra.mrb[6].mxu0 %vm1774_vm2, %v1772_v31  ;;  %v10215_v38 = vpop.f32.mrb[6].mxu1 }
 0x3cc   : > { %10221 = vmatpush3.msra.mxu0 %v10189_v23  ;;  %10203 = vmatprep.mubr.msk.f32.mxu0 %vm12644_vm1, %v12643_v12  ;;  %v1919_v39 = vpop.f32.mrb[7].mxu1  ;;  %v11420_v23 = vld [vmem:[#allocation16 + $0x8] sm:$0xff]   ;;  %v11425_v38 = vld [vmem:[#allocation16 + $0x50] sm:$0xff]  }
 0x3cd   : > { %10239 = vmatprep.subr.bf16.mxu0 %v12643_v12 }
 0x3cf   : > { %10204 = vmatmul.mubr.msk.f32.gmra.mrb[8].mxu0 %vm1774_vm2, %v1773_v32 }
 0x3d0   : > { %10222 = vmatprep.mubr.msk.f32.mxu0 %vm12644_vm1, %v12643_v12 }
 0x3d3   : > { %10223 = vmatmul.mubr.msk.f32.vlgmr.msra.gmra.mrb[10].mxu0 %vm1774_vm2, %v1930_v33 }
 0x3d4   : > { %10225 = vmatprep.mubr.msk.f32.mxu0 %vm12644_vm1, %v12643_v12  ;;  %10240 = vmatpush3.bf16.msra.mxu0 %v11411_v40  ;;  %v11427_v40 = vld [vmem:[#allocation16 + $0x20] sm:$0xff]  }
 0x3d5   : > { %10241 = vmatprep.subr.bf16.mxu0 %v12643_v12 }
 0x3d7   : > { %10226 = vmatmul.mubr.msk.f32.gmra.mrb[12].mxu0 %vm1774_vm2, %v1931_v34  ;;  %v11423_v34 = vld [vmem:[#allocation16 + $0x40] sm:$0xff]  }
 0x3d8   : > { %10228 = vmatprep.mubr.msk.f32.mxu0 %vm12644_vm1, %v12643_v12  ;;  %10242 = vmatpush3.bf16.msra.mxu0 %v11412_v41  ;;  %v11428_v41 = vld [vmem:[#allocation16 + $0x28] sm:$0xff]  }
 0x3d9   : > { %10243 = vmatprep.subr.bf16.mxu0 %v12643_v12 }
 0x3db   : > { %10229 = vmatmul.mubr.msk.f32.gmra.mrb[14].mxu0 %vm1774_vm2, %v1932_v35 }
 0x3dc   : > { %10255 = vmatprep.mubr.msk.bf16.mxu0 %vm12644_vm1, %v12643_v12  ;;  %10244 = vmatpush3.bf16.msra.mxu0 %v11413_v42  ;;  %v11429_v42 = vld [vmem:[#allocation16 + $0x30] sm:$0xff]  }
 0x3dd   : > { %10245 = vmatprep.subr.bf16.mxu0 %v12643_v12 }
 0x3e0   : > { %10246 = vmatpush3.bf16.msra.mxu0 %v11414_v43  ;;  %v11430_v43 = vld [vmem:[#allocation16 + $0x38] sm:$0xff]  }
 0x3e1   : > { %10247 = vmatprep.subr.bf16.mxu0 %v12643_v12 }
 0x3e4   : > { %10248 = vmatpush3.bf16.msra.mxu0 %v11415_v44  ;;  %v13383_v44 = vld [vmem:[#allocation7] sm:$0xff] }
 0x3e5   : > { %10249 = vmatprep.subr.bf16.mxu0 %v12643_v12 }
 0x3e8   : > { %10250 = vmatpush3.bf16.msra.mxu0 %v11416_v45 }
 0x3e9   : > { %10251 = vmatprep.subr.bf16.mxu0 %v12643_v12 }
 0x3ec   : > { %10252 = vmatpush3.bf16.msra.mxu0 %v11417_v46 }
 0x3ed   : > { %10253 = vmatprep.subr.bf16.mxu0 %v12643_v12 }
 0x3f0   : > { %10254 = vmatpush3.bf16.msra.mxu0 %v11418_v21 }
 0x49a   : > { %v1850_v47 = vpop.f32.mrb[4].mxu0 }
 0x49b   : > { %v1917_v48 = vadd.f32 %v1916_v37, %v1850_v47  ;;  %v10199_v49 = vpop.f32.mrb[5].mxu0  ;;  %v11424_v37 = vld [vmem:[#allocation16 + $0x48] sm:$0xff]  }
 0x49e   : > { %v1855_v50 = vpop.f32.mrb[6].mxu0 }
 0x49f   : > { %v1920_v51 = vadd.f32 %v1919_v39, %v1855_v50  ;;  %v10202_v52 = vpop.f32.mrb[7].mxu0  ;;  %v11426_v39 = vld [vmem:[#allocation16 + $0x58] sm:$0xff]   ;;  %v13387_v50 = vld [vmem:[#allocation7 + $0x8] sm:$0xff] }
 0x4a2   : > { %v1860_v53 = vpop.f32.mrb[8].mxu0 }
 0x4a3   : > { %v1925_v54 = vadd.f32 %v10214_v36, %v1860_v53  ;;  %v10205_v55 = vpop.f32.mrb[9].mxu0 }
 0x4a6   : > { %v2008_v56 = vpop.f32.mrb[10].mxu0 }
 0x4a7   : > { %v2022_v58 = vadd.f32 %v2008_v56, %v1917_v48  ;;  %v10224_v59 = vpop.f32.mrb[11].mxu0 }
 0x4a9   : > { %v2032_v60 = vadd.f32 %v8897_v57, %v2022_v58 }
 0x4aa   : > { %v2013_v62 = vpop.f32.mrb[12].mxu0 }
 0x4ab   : > { %v2023_v63 = vadd.f32 %v2013_v62, %v1920_v51  ;;  %v10227_v0 = vpop.f32.mrb[13].mxu0  ;;  %v2035_v1 = vmax.f32 %v2032_v60, 0.0  ;;  %v13389_v51 = vld [vmem:[#allocation8] sm:$0xff] }
 0x4ad   : > { %v2033_v2 = vadd.f32 %v8897_v57, %v2023_v63  ;;  %v2056_v8 = vmul.f32 %v13346_v61, %v2035_v1 }
 0x4ae   : > { %v2018_v3 = vpop.f32.mrb[14].mxu0 }
 0x4af   : > { %v2036_v4 = vmax.f32 %v2033_v2, 0.0  ;;  %v2024_v5 = vadd.f32 %v2018_v3, %v1925_v54  ;;  %v10230_v6 = vpop.f32.mrb[15].mxu0 }
 0x4b1   : > { %v2057_v9 = vmul.f32 %v13348_v7, %v2036_v4  ;;  %v2034_v10 = vadd.f32 %v8897_v57, %v2024_v5  ;;  %v13395_v57 = vld [vmem:[#allocation8 + $0x8] sm:$0xff] }
 0x4b2   : > { %v8927_v4 = vld [vmem:[#allocation17] ss:$0 sm:$0xff] }
 0x4b3   : > { %v2061_v13 = vpack.c.bf16 %v2057_v9, %v2056_v8  ;;  %v2037_v14 = vmax.f32 %v2034_v10, 0.0 }
 0x4b5   : > { %v2058_v17 = vmul.f32 %v13352_v16, %v2037_v14  ;;  %10232 = vmatpush3.bf16.msra.mxu1 %v2061_v13  ;;  %v13402_v14 = vpop.permute.xlu0 %2637 }
 0x4b6   : > { %10233 = vmatprep.subr.bf16.mxu1 %v12643_v12 }
 0x4b7   : > { %v2062_v18 = vpack.c.bf16 %v2058_v17, %v2058_v17 }
 0x4b9   : > { %v2073_v19 = vsel %vm2071_vm3, %v2062_v18, 0  ;;  %v13404_v18 = vpop.permute.xlu1 %2632 }
 0x4ba   : > { %10234 = vmatpush3.bf16.msra.mxu1 %v2073_v19 }
 0x4bb   : > { %10259 = vmatprep.subr.bf16.mxu1 %v12643_v12 }
 0x4bd   : > { %10236 = vmatmul.mubr.msk.bf16.vlgmr.msra.gmra.mrb[8].mxu1 %vm1774_vm2, %v11410_v20 }
 0x4be   : > { %10267 = vmatprep.mubr.msk.bf16.mxu1 %vm12644_vm1, %v12643_v12  ;;  %10260 = vmatpush3.bf16.msra.mxu1 %v11419_v22  ;;  %v2642_v22 = vld [vmem:[#allocation37] sm:$0xf] }
 0x4bf   : > { %10261 = vmatprep.subr.bf16.mxu1 %v12643_v12 }
 0x4c2   : > { %10262 = vmatpush3.bf16.msra.mxu1 %v11420_v23  ;;  %v11431_v23 = vld [vmem:[%s14324_s0] sm:$0xff]   ;;  %s13524_s0 = scalar_lea.vmem [#allocation40], %s14211_s15 }
 0x4c3   : > { %10263 = vmatprep.subr.bf16.mxu1 %v12643_v12 }
 0x4c6   : > { %10264 = vmatpush3.bf16.msra.mxu1 %v11421_v24  ;;  %v11432_v24 = vld [vmem:[%s14325_s2 + $0x8] sm:$0xff]  }
 0x4c7   : > { %10265 = vmatprep.subr.bf16.mxu1 %v12643_v12 }
 0x4ca   : > { %10266 = vmatpush3.bf16.msra.mxu1 %v11422_v30  ;;  %v11438_v30 = vld [vmem:[%s14325_s2 + $0x38] sm:$0xff]  }
 0x4cb   : > { %10271 = vmatprep.subr.bf16.mxu1 %v12643_v12 }
 0x590   : > { %v2109_v25 = vpop.f32.mrb[8].mxu1 }
 0x591   : > { %v10237_v26 = vpop.f32.mrb[9].mxu1 }
 0x592   : > { %v2112_v27 = vpop.f32.mrb[10].mxu1  ;;  %v11434_v26 = vld [vmem:[%s14325_s2 + $0x18] sm:$0xff]  }
 0x593   : > { %v2116_v28 = vpack.c.bf16 %v2112_v27, %v2109_v25  ;;  %v10238_v29 = vpop.f32.mrb[11].mxu1  ;;  %v11433_v25 = vld [vmem:[%s14325_s2 + $0x10] sm:$0xff]   ;;  %v11435_v27 = vld [vmem:[%s14325_s2 + $0x20] sm:$0xff]  }
 0x594   : > { %v11437_v29 = vld [vmem:[%s14325_s2 + $0x30] sm:$0xff]  }
 0x595   : > { %10256 = vmatmul.mubr.bf16.vlgmr.msra.gmra.mrb[16].mxu0 %v2116_v28  ;;  %v11436_v28 = vld [vmem:[%s14325_s2 + $0x28] sm:$0xff]  }
 0x596   : > { %10287 = vmatprep.mubr.msk.f32.mxu0 %vm2385_vm5, %v13383_v44 }
 0x668   : > { %v2215_v31 = vpop.f32.mrb[16].mxu0 }
 0x669   : > { %v10257_v32 = vpop.f32.mrb[17].mxu0 }
 0x66a   : > { %v2218_v33 = vpop.f32.mrb[18].mxu0  ;;  %v11440_v32 = vld [vmem:[#allocation19 + $0x8] sm:$0xff]  }
 0x66b   : > { %v2222_v35 = vpack.c.bf16 %v2218_v33, %v2215_v31  ;;  %v10258_v36 = vpop.f32.mrb[19].mxu0  ;;  %v11439_v31 = vld [vmem:[#allocation19] sm:$0xff]   ;;  %v11441_v33 = vld [vmem:[#allocation19 + $0x10] sm:$0xff]  }
 0x66d   : > { %10268 = vmatmul.mubr.msk.bf16.vlgmr.msra.gmra.mrb[12].mxu1 %vm2255_vm4, %v2222_v35 }
 0x66e   : > { %10272 = vmatpush3.bf16.msra.mxu1 %v11423_v34  ;;  %10279 = vmatprep.mubr.msk.bf16.mxu1 %vm12644_vm1, %v12643_v12  ;;  %v11442_v34 = vld [vmem:[#allocation19 + $0x18] sm:$0xff]  }
 0x66f   : > { %10273 = vmatprep.subr.bf16.mxu1 %v12643_v12 }
 0x672   : > { %10274 = vmatpush3.bf16.msra.mxu1 %v11424_v37 }
 0x673   : > { %10275 = vmatprep.subr.bf16.mxu1 %v12643_v12 }
 0x676   : > { %10276 = vmatpush3.bf16.msra.mxu1 %v11425_v38 }
 0x677   : > { %10277 = vmatprep.subr.bf16.mxu1 %v12643_v12 }
 0x67a   : > { %10278 = vmatpush3.bf16.msra.mxu1 %v11426_v39 }
 0x67b   : > { %10290 = vmatprep.subr.bf16.mxu1 %v12643_v12 }
 0x67d   : > { %10280 = vmatmul.mubr.msk.bf16.vlgmr.msra.gmra.mrb[16].mxu1 %vm2255_vm4, %v2222_v35 }
 0x67e   : > { %10291 = vmatpush3.bf16.msra.mxu1 %v11427_v40  ;;  %10298 = vmatprep.mubr.msk.bf16.mxu1 %vm12644_vm1, %v12643_v12 }
 0x67f   : > { %10292 = vmatprep.subr.bf16.mxu1 %v12643_v12 }
 0x682   : > { %10293 = vmatpush3.bf16.msra.mxu1 %v11428_v41  ;;  %v11443_v41 = vld [vmem:[#allocation19 + $0x40] sm:$0xff]  }
 0x683   : > { %10294 = vmatprep.subr.bf16.mxu1 %v12643_v12 }
 0x686   : > { %10295 = vmatpush3.bf16.msra.mxu1 %v11429_v42 }
 0x687   : > { %10296 = vmatprep.subr.bf16.mxu1 %v12643_v12 }
 0x68a   : > { %10297 = vmatpush3.bf16.msra.mxu1 %v11430_v43 }
 0x68b   : > { %10335 = vmatprep.subr.bf16.mxu1 %v12643_v12 }
 0x68d   : > { %10299 = vmatmul.mubr.msk.bf16.vlgmr.msra.gmra.mrb[20].mxu1 %vm2255_vm4, %v2222_v35 }
 0x68e   : > { %10343 = vmatprep.mubr.msk.bf16.mxu1 %vm12644_vm1, %v12643_v12  ;;  %10336 = vmatpush3.bf16.msra.mxu1 %v11439_v31  ;;  %v3197_v31 = vld [vmem:[%s12852_s19 + $0x58] sm:$0xff] }
 0x68f   : > { %10337 = vmatprep.subr.bf16.mxu1 %v12643_v12 }
 0x692   : > { %10338 = vmatpush3.bf16.msra.mxu1 %v11440_v32 }
 0x693   : > { %10339 = vmatprep.subr.bf16.mxu1 %v12643_v12 }
 0x696   : > { %10340 = vmatpush3.bf16.msra.mxu1 %v11441_v33  ;;  %v3198_v33 = vld [vmem:[%s12852_s19 + $0x60] sm:$0xff] }
 0x697   : > { %10341 = vmatprep.subr.bf16.mxu1 %v12643_v12 }
 0x69a   : > { %10342 = vmatpush3.bf16.msra.mxu1 %v11442_v34  ;;  %v3199_v34 = vld [vmem:[%s12852_s19 + $0x68] sm:$0xff] }
 0x69b   : > { %10347 = vmatprep.subr.bf16.mxu1 %v12643_v12 }
 0x740   : > { %v2293_v45 = vpop.f32.mrb[12].mxu1 }
 0x741   : > { %v10269_v46 = vpop.f32.mrb[13].mxu1 }
 0x742   : > { %v2296_v47 = vpop.f32.mrb[14].mxu1 }
 0x743   : > { %v10951_v48 = vpack.c.bf16 %v2296_v47, %v2293_v45  ;;  %v10270_v49 = vpop.f32.mrb[15].mxu1  ;;  %v11444_v47 = vld [vmem:[#allocation19 + $0x48] sm:$0xff]  }
 0x744   : > { %v11446_v49 = vld [vmem:[#allocation19 + $0x58] sm:$0xff]  }
 0x745   : > { %10952 = vmatprep.subr.bf16.mxu0 %v10951_v48 }
 0x746   : > { %10954 = vmatpush3.bf16.msra.mxu0 %v10951_v48  ;;  %v11445_v48 = vld [vmem:[#allocation19 + $0x50] sm:$0xff]  }
 0x749   : > { %10288 = vmatmul.mubr.msk.f32.vlgmr.msra.gmra.mrb[20].mxu0 %vm2385_vm5, %v13387_v50 }
 0x74a   : > { %10306 = vmatprep.mubr.msk.f32.mxu0 %vm2385_vm5, %v13389_v51 }
 0x750   : > { %v2376_v52 = vpop.f32.mrb[16].mxu1 }
 0x751   : > { %v10281_v53 = vpop.f32.mrb[17].mxu1 }
 0x752   : > { %v2379_v54 = vpop.f32.mrb[18].mxu1  ;;  %v11448_v53 = vld [vmem:[#allocation19 + $0x28] sm:$0xff]  }
 0x753   : > { %v10955_v55 = vpack.c.bf16 %v2379_v54, %v2376_v52  ;;  %v10282_v56 = vpop.f32.mrb[19].mxu1  ;;  %v11447_v52 = vld [vmem:[#allocation19 + $0x20] sm:$0xff]   ;;  %v11449_v54 = vld [vmem:[#allocation19 + $0x30] sm:$0xff]  }
 0x754   : > { %v2950_v56 = vld [vmem:[#allocation10] sm:$0xff] }
 0x755   : > { %10956 = vmatprep.subr.bf16.mxu0 %v10955_v55 }
 0x756   : > { %10958 = vmatpush3.bf16.msra.mxu0 %v10955_v55  ;;  %v11450_v55 = vld [vmem:[#allocation19 + $0x38] sm:$0xff]  }
 0x757   : > { %10309 = vmatprep.subr.bf16.mxu0 %v12643_v12 }
 0x759   : > { %10307 = vmatmul.mubr.msk.f32.vlgmr.msra.gmra.mrb[22].mxu0 %vm2385_vm5, %v13395_v57 }
 0x75a   : > { %10311 = vmatprep.mubr.msk.bf16.mxu0 %vm12644_vm1, %v12643_v12 }
 0x760   : > { %v2525_v58 = vpop.f32.mrb[20].mxu1 }
 0x761   : > { %v10300_v59 = vpop.f32.mrb[21].mxu1 }
 0x762   : > { %v2528_v60 = vpop.f32.mrb[22].mxu1 }
 0x763   : > { %v10301_v62 = vpop.f32.mrb[23].mxu1 }
 0x81c   : > { %v10289_v63 = vpop.f32.mrb[20].mxu0 }
 0x81d   : > { %v2529_v0 = vadd.f32 %v10289_v63, %v2528_v60  ;;  %v2458_v1 = vpop.f32.mrb[21].mxu0  ;;  %v3089_v63 = vld [vmem:[#allocation11] sm:$0xff] }
 0x81e   : > { %v2526_v2 = vadd.f32 %v2525_v58, %v2458_v1 }
 0x82c   : > { %v10308_v3 = vpop.f32.mrb[22].mxu0 }
 0x82d   : > { %v2616_v5 = vadd.f32 %v10308_v3, %v2529_v0  ;;  %v2606_v6 = vpop.f32.mrb[23].mxu0 }
 0x82e   : > { %v2615_v8 = vadd.f32 %v2606_v6, %v2526_v2 }
 0x82f   : > { %v2625_v9 = vadd.f32 %v8927_v4, %v2616_v5 }
 0x830   : > { %v2624_v10 = vadd.f32 %v8927_v4, %v2615_v8 }
 0x831   : > { %v2627_v13 = vmax.f32 %v2625_v9, 0.0  ;;  %v3186_v9 = vld [vmem:[%s12852_s19] sm:$0xff] }
 0x832   : > { %v2626_v17 = vmax.f32 %v2624_v10, 0.0  ;;  %v3187_v10 = vld [vmem:[%s12852_s19 + $0x8] sm:$0xff] }
 0x833   : > { %v2641_v19 = vmul.f32 %v13402_v14, %v2627_v13  ;;  %v3188_v13 = vld [vmem:[%s12852_s19 + $0x10] sm:$0xff] }
 0x834   : > { %v2640_v20 = vmul.f32 %v13404_v18, %v2626_v17  ;;  %v10960_v17 = vpack.c.bf16 %v3187_v10, %v3186_v9  ;;  %v11466_v9 = vld [vmem:[%s14326_s11 + $0x44] ss:$8 sps:$4 sm:$0xff]   ;;  %v11464_v10 = vld [vmem:[%s14326_s11 + $0x40] ss:$8 sps:$4 sm:$0xff]  }
 0x836   : > { %v2643_v21 = vpack.c.bf16 %v2641_v19, %v2640_v20  ;;  %v3189_v19 = vld [vmem:[%s12852_s19 + $0x18] sm:$0xff] }
 0x837   : > { %v10963_v20 = vpack.c.bf16 %v3189_v19, %v3188_v13  ;;  %v11469_v13 = vld [vmem:[%s14326_s11 + $0x54] ss:$8 sps:$4 sm:$0xff]   ;;  %v11472_v19 = vld [vmem:[%s14326_s11 + $0x64] ss:$8 sps:$4 sm:$0xff]  }
 0x838   : > { %10310 = vmatpush3.bf16.msra.mxu0 %v2643_v21  ;;  %v3190_v21 = vld [vmem:[%s12852_s19 + $0x20] sm:$0xff] }
 0x839   : > { %10315 = vmatprep.subr.bf16.mxu0 %v12643_v12 }
 0x83b   : > { %10312 = vmatmul.mubr.msk.bf16.vlgmr.msra.gmra.mrb[24].mxu0 %vm2385_vm5, %v2642_v22  ;;  %v3191_v22 = vld [vmem:[%s12852_s19 + $0x28] sm:$0xff] }
 0x83c   : > { %10316 = vmatpush3.bf16.msra.mxu0 %v11431_v23  ;;  %10331 = vmatprep.mubr.msk.bf16.mxu0 %vm12644_vm1, %v12643_v12  ;;  %v10966_v23 = vpack.c.bf16 %v3191_v22, %v3190_v21  ;;  %v11475_v21 = vld [vmem:[%s14326_s11 + $0x74] ss:$8 sps:$4 sm:$0xff]   ;;  %v11473_v22 = vld [vmem:[%s14326_s11 + $0x70] ss:$8 sps:$4 sm:$0xff]  }
 0x83d   : > { %10317 = vmatprep.subr.bf16.mxu0 %v12643_v12 }
 0x840   : > { %10318 = vmatpush3.bf16.msra.mxu0 %v11432_v24  ;;  %v3192_v24 = vld [vmem:[%s12852_s19 + $0x30] sm:$0xff] }
 0x841   : > { %10319 = vmatprep.subr.bf16.mxu0 %v12643_v12 }
 0x844   : > { %10320 = vmatpush3.bf16.msra.mxu0 %v11433_v25  ;;  %v3193_v25 = vld [vmem:[%s12852_s19 + $0x38] sm:$0xff] }
 0x845   : > { %10321 = vmatprep.subr.bf16.mxu0 %v12643_v12 }
 0x848   : > { %10322 = vmatpush3.bf16.msra.mxu0 %v11434_v26  ;;  %v10969_v26 = vpack.c.bf16 %v3193_v25, %v3192_v24 }
 0x849   : > { %10323 = vmatprep.subr.bf16.mxu0 %v12643_v12 }
 0x84c   : > { %10324 = vmatpush3.bf16.msra.mxu0 %v11435_v27  ;;  %v3194_v27 = vld [vmem:[%s12852_s19 + $0x40] sm:$0xff] }
 0x84d   : > { %10325 = vmatprep.subr.bf16.mxu0 %v12643_v12 }
 0x850   : > { %10326 = vmatpush3.bf16.msra.mxu0 %v11436_v28  ;;  %v3195_v28 = vld [vmem:[%s12852_s19 + $0x48] sm:$0xff] }
 0x851   : > { %10327 = vmatprep.subr.bf16.mxu0 %v12643_v12 }
 0x854   : > { %10328 = vmatpush3.bf16.msra.mxu0 %v11437_v29  ;;  %v10972_v29 = vpack.c.bf16 %v3195_v28, %v3194_v27 }
 0x855   : > { %10329 = vmatprep.subr.bf16.mxu0 %v12643_v12 }
 0x858   : > { %10330 = vmatpush3.bf16.msra.mxu0 %v11438_v30  ;;  %v3196_v30 = vld [vmem:[%s12852_s19 + $0x50] sm:$0xff] }
 0x859   : > { %10359 = vmatprep.subr.mxu0 %v12643_v12  ;;  %v10975_v32 = vpack.c.bf16 %v3197_v31, %v3196_v30 }
 0x90e   : > { %v2681_v35 = vpop.f32.mrb[24].mxu0 }
 0x90f   : > { %v2687_v36 = vpack.c.bf16 %v2681_v35, %v2681_v35  ;;  %v10313_v37 = vpop.f32.mrb[25].mxu0  ;;  %v10978_v35 = vpack.c.bf16 %v3199_v34, %v3198_v33 }
 0x910   : > { %v2684_v38 = vpop.f32.mrb[26].mxu0  ;;  %v3201_v37 = vld [vmem:[%s12852_s19 + $0x78] sm:$0xff] }
 0x911   : > { %v10314_v39 = vpop.f32.mrb[27].mxu0  ;;  %10332 = vmatmul.mubr.bf16.vlgmr.msra.gmra.mrb[28].mxu0 %v2687_v36  ;;  %v3200_v36 = vld [vmem:[%s12852_s19 + $0x70] sm:$0xff] }
 0x912   : > { %10361 = vmatprep.mubr.msk.f32.mxu0 %vm12644_vm1, %v12643_v12  ;;  %v10981_v38 = vpack.c.bf16 %v3201_v37, %v3200_v36 }
 0x9e4   : > { %v2786_v40 = vpop.f32.mrb[28].mxu0 }
 0x9e5   : > { %v2792_v42 = vpack.c.bf16 %v2786_v40, %v2786_v40  ;;  %v10333_v43 = vpop.f32.mrb[29].mxu0 }
 0x9e6   : > { %v2789_v45 = vpop.f32.mrb[30].mxu0  ;;  %v8954_v43 = vld [vmem:[#allocation20] ss:$0 sm:$0xff] }
 0x9e7   : > { %v10334_v46 = vpop.f32.mrb[31].mxu0  ;;  %10344 = vmatmul.mubr.msk.bf16.vlgmr.msra.gmra.mrb[24].mxu1 %vm2255_vm4, %v2792_v42 }
 0x9e8   : > { %10348 = vmatpush3.bf16.msra.mxu1 %v11443_v41  ;;  %10355 = vmatprep.mubr.msk.bf16.mxu1 %vm12644_vm1, %v12643_v12 }
 0x9e9   : > { %10349 = vmatprep.subr.bf16.mxu1 %v12643_v12 }
 0x9ec   : > { %10350 = vmatpush3.bf16.msra.mxu1 %v11444_v47 }
 0x9ed   : > { %10351 = vmatprep.subr.bf16.mxu1 %v12643_v12 }
 0x9f0   : > { %10352 = vmatpush3.bf16.msra.mxu1 %v11445_v48 }
 0x9f1   : > { %10353 = vmatprep.subr.bf16.mxu1 %v12643_v12 }
 0x9f4   : > { %10354 = vmatpush3.bf16.msra.mxu1 %v11446_v49  ;;  %v3177_v49 = vpop.permute.xlu1 %3176 }
 0x9f5   : > { %10364 = vmatprep.subr.bf16.mxu1 %v12643_v12 }
 0x9f7   : > { %10356 = vmatmul.mubr.msk.bf16.vlgmr.msra.gmra.mrb[28].mxu1 %vm2255_vm4, %v2792_v42 }
 0x9f8   : > { %10365 = vmatpush3.bf16.msra.mxu1 %v11447_v52  ;;  %10372 = vmatprep.mubr.msk.bf16.mxu1 %vm12644_vm1, %v12643_v12 }
 0x9f9   : > { %10366 = vmatprep.subr.bf16.mxu1 %v12643_v12 }
 0x9fc   : > { %10367 = vmatpush3.bf16.msra.mxu1 %v11448_v53 }
 0x9fd   : > { %10368 = vmatprep.subr.bf16.mxu1 %v12643_v12 }
 0xa00   : > { %10369 = vmatpush3.bf16.msra.mxu1 %v11449_v54 }
 0xa01   : > { %10370 = vmatprep.subr.bf16.mxu1 %v12643_v12 }
 0xa04   : > { %10371 = vmatpush3.bf16.msra.mxu1 %v11450_v55  ;;  %v11454_v55 = vld [vmem:[%s14326_s11 + $0x4] ss:$8 sps:$4 sm:$0xff]  }
 0xa05   : > { %10416 = vmatprep.subr.bf16.mxu1 %v12643_v12 }
 0xa07   : > { %10373 = vmatmul.mubr.msk.bf16.vlgmr.msra.gmra.mrb[32].mxu1 %vm2255_vm4, %v2792_v42 }
 0xa08   : > { %10418 = vmatprep.mubr.msk.bf16.mxu1 %vm12644_vm1, %v12643_v12 }
 0xaba   : > { %v2862_v58 = vpop.f32.mrb[24].mxu1 }
 0xabb   : > { %v10345_v59 = vpop.f32.mrb[25].mxu1  ;;  %10360 = vmatpush3.msra.mxu0 %v2862_v58 }
 0xabc   : > { %v2865_v60 = vpop.f32.mrb[26].mxu1  ;;  %10362 = vmatmul.mubr.msk.f32.vlgmr.msra.gmra.mrb[32].mxu0 %vm2951_vm6, %v2950_v56  ;;  %10376 = vmatprep.subr.mxu0 %v12643_v12  ;;  %v11451_v59 = vld [vmem:[%s14327_s23] sm:$0xff]   ;;  %s14329_s23 = smov %s14328_s18 }
 0xabd   : > { %v10346_v62 = vpop.f32.mrb[27].mxu1  ;;  %10378 = vmatprep.mubr.msk.f32.mxu0 %vm12644_vm1, %v12643_v12  ;;  %v11452_v60 = vld [vmem:[%s14326_s11] ss:$8 sps:$4 sm:$0xff]   ;;  %v11484_v28 = vld [vmem:[%s14329_s23 + $0x50] sm:$0xff]   ;;  %v11488_v30 = vld [vmem:[%s14329_s23 + $0x58] sm:$0xff]  }
 0xabe   : > { %v11477_v24 = vld [vmem:[%s14329_s23] sm:$0xff]   ;;  %v11481_v27 = vld [vmem:[%s14329_s23 + $0x8] sm:$0xff]   ;;  %v11489_v31 = vld [vmem:[%s14329_s23 + $0x18] sm:$0xff]  }
 0xabf   : > { %v11478_v25 = vld [vmem:[%s14329_s23 + $0x140] sm:$0xff]   ;;  %v11496_v34 = vld [vmem:[%s14329_s23 + $0x68] sm:$0xff]   ;;  %v11500_v36 = vld [vmem:[%s14329_s23 + $0x70] sm:$0xff]  }
 0xac0   : > { %v11493_v33 = vld [vmem:[%s14329_s23 + $0x20] sm:$0xff]   ;;  %v11501_v37 = vld [vmem:[%s14329_s23 + $0x30] sm:$0xff]  }
 0xaca   : > { %v2944_v0 = vpop.f32.mrb[28].mxu1 }
 0xacb   : > { %v10357_v1 = vpop.f32.mrb[29].mxu1  ;;  %10377 = vmatpush3.msra.mxu0 %v2944_v0 }
 0xacc   : > { %v2947_v2 = vpop.f32.mrb[30].mxu1  ;;  %10379 = vmatmul.mubr.msk.f32.vlgmr.msra.gmra.mrb[34].mxu0 %vm2951_vm6, %v3089_v63  ;;  %10959 = vmatprep.subr.bf16.mxu0 %v12642_v11  ;;  %v11457_v63 = vld [vmem:[%s14326_s11 + $0x14] ss:$8 sps:$4 sm:$0xff]   ;;  %v11455_v1 = vld [vmem:[%s14326_s11 + $0x10] ss:$8 sps:$4 sm:$0xff]  }
 0xacd   : > { %v10358_v3 = vpop.f32.mrb[31].mxu1  ;;  %10413 = vmatprep.mubr.msk.f32.mxu0 %vm12644_vm1, %v12643_v12  ;;  %10961 = vmatpush3.bf16.msra.mxu0 %v10960_v17  ;;  %v11467_v17 = vld [vmem:[%s14326_s11 + $0x50] ss:$8 sps:$4 sm:$0xff]  }
 0xace   : > { %10962 = vmatprep.subr.bf16.mxu0 %v12642_v11  ;;  %v11460_v3 = vld [vmem:[%s14326_s11 + $0x24] ss:$8 sps:$4 sm:$0xff]  }
 0xad1   : > { %10964 = vmatpush3.bf16.msra.mxu0 %v10963_v20  ;;  %v11470_v20 = vld [vmem:[%s14326_s11 + $0x60] ss:$8 sps:$4 sm:$0xff]  }
 0xad2   : > { %10965 = vmatprep.subr.bf16.mxu0 %v12642_v11 }
 0xad5   : > { %10967 = vmatpush3.bf16.msra.mxu0 %v10966_v23  ;;  %v11476_v23 = vld [vmem:[%s14328_s18 + $0x40] sm:$0xff]   ;;  %s14330_s18 = sld [smem:[#allocation84_spill]] }
 0xad6   : > { %10968 = vmatprep.subr.bf16.mxu0 %v12642_v11 }
 0xad9   : > { %10970 = vmatpush3.bf16.msra.mxu0 %v10969_v26  ;;  %v11480_v26 = vld [vmem:[%s14329_s23 + $0x48] sm:$0xff]  }
 0xada   : > { %v3083_v4 = vpop.f32.mrb[32].mxu1  ;;  %10971 = vmatprep.subr.bf16.mxu0 %v12642_v11 }
 0xadb   : > { %v10374_v5 = vpop.f32.mrb[33].mxu1  ;;  %s14331_s15 = smov %s14330_s18 }
 0xadc   : > { %v3086_v6 = vpop.f32.mrb[34].mxu1  ;;  %v11458_v5 = vld [vmem:[%s14326_s11 + $0x20] ss:$8 sps:$4 sm:$0xff]  }
 0xadd   : > { %v10375_v8 = vpop.f32.mrb[35].mxu1  ;;  %10973 = vmatpush3.bf16.msra.mxu0 %v10972_v29  ;;  %v11463_v6 = vld [vmem:[%s14326_s11 + $0x34] ss:$8 sps:$4 sm:$0xff]  }
 0xade   : > { %10974 = vmatprep.subr.bf16.mxu0 %v12642_v11  ;;  %v11461_v8 = vld [vmem:[%s14326_s11 + $0x30] ss:$8 sps:$4 sm:$0xff]   ;;  %s12647_s11 = smov [#allocation40]  }
 0xadf   : > { %v11485_v29 = vld [vmem:[%s14329_s23 + $0x10] sm:$0xff]   ;;  %s12460_s12 = sshll.u32 %s12647_s11, 4  ;;  %s12461_s12 = int_to_ptr.vmem [resolvable:$false] %s12460_s12 }
 0xae0   : > { %s12462_s13 = scalar_lea.vmem %s12461_s12, 32 }
 0xae1   : > { %10976 = vmatpush3.bf16.msra.mxu0 %v10975_v32  ;;  %v11492_v32 = vld [vmem:[%s14329_s23 + $0x60] sm:$0xff]  }
 0xae2   : > { %10977 = vmatprep.subr.bf16.mxu0 %v12642_v11 }
 0xae5   : > { %10979 = vmatpush3.bf16.msra.mxu0 %v10978_v35  ;;  %v11497_v35 = vld [vmem:[%s14329_s23 + $0x28] sm:$0xff]  }
 0xae6   : > { %10980 = vmatprep.subr.bf16.mxu0 %v12642_v11 }
 0xae9   : > { %10982 = vmatpush3.bf16.msra.mxu0 %v10981_v38 }
 0xaea   : > { %9698 = vmatprep.subr.bf16.mxu0 %v11476_v23  ;;  %v11514_v23 = vld [vmem:[%s14329_s23 + $0xd8] sm:$0xff]  }
 0xb8f   : > { %v3021_v39 = vpop.f32.mrb[32].mxu0 }
 0xb90   : > { %v3084_v40 = vadd.f32 %v3083_v4, %v3021_v39  ;;  %v10363_v41 = vpop.f32.mrb[33].mxu0 }
 0xb91   : > { %v11479_v41 = vld [vmem:[%s14329_s23 + $0x100] sm:$0xff]  }
 0xb9f   : > { %v3159_v42 = vpop.f32.mrb[34].mxu0 }
 0xba0   : > { %v3163_v45 = vadd.f32 %v3159_v42, %v3084_v40  ;;  %v10380_v46 = vpop.f32.mrb[35].mxu0 }
 0xba2   : > { %v3171_v47 = vadd.f32 %v8954_v43, %v3163_v45  ;;  %v11482_v45 = vld [vmem:[%s14329_s23 + $0x148] sm:$0xff]  }
 0xba4   : > { %v3172_v48 = vmax.f32 %v3171_v47, 0.0  ;;  %v11483_v47 = vld [vmem:[%s14329_s23 + $0x108] sm:$0xff]  }
 0xba6   : > { %v3179_v52 = vmul.f32 %v3177_v49, %v3172_v48 }
 0xba8   : > { %v3180_v53 = vrot.slane %v3179_v52, 4  ;;  %v3275_v54 = vpack.c.bf16 %v3179_v52, %v3179_v52 }
 0xbaa   : > { %v3181_v56 = vadd.f32 %v3180_v53, %v3179_v52  ;;  %v3285_v58 = vsel %vm2071_vm3, %v3275_v54, 0  ;;  %v11486_v52 = vld [vmem:[%s14329_s23 + $0x150] sm:$0xff]   ;;  %v11490_v54 = vld [vmem:[%s14329_s23 + $0x158] sm:$0xff]  }
 0xbab   : > { %10417 = vmatpush3.bf16.msra.mxu1 %v3285_v58  ;;  %v11487_v53 = vld [vmem:[%s14329_s23 + $0x110] sm:$0xff]   ;;  %v11495_v58 = vld [vmem:[%s14329_s23 + $0x120] sm:$0xff]  }
 0xbac   : > { %v3182_v62 = vrot.slane %v3181_v56, 2  ;;  %3425 = vmatprep.subr.bf16.mxu1 %v11454_v55  ;;  %v11491_v55 = vld [vmem:[%s14329_s23 + $0x118] sm:$0xff]  }
 0xbae   : > { %10419 = vmatmul.mubr.msk.bf16.vlgmr.msra.gmra.mrb[36].mxu1 %vm2951_vm6, %v11451_v59  ;;  %v3183_v0 = vadd.f32 %v3182_v62, %v3181_v56  ;;  %v11494_v56 = vld [vmem:[%s14329_s23 + $0x160] sm:$0xff]   ;;  %v11498_v59 = vld [vmem:[%s14329_s23 + $0x168] sm:$0xff]   ;;  %v11502_v62 = vld [vmem:[%s14329_s23 + $0x170] sm:$0xff]  }
 0xbaf   : > { %3426 = vmatpush1.bf16.msra.mxu1 %v11452_v60  ;;  %3457 = vmatprep.mubr.bf16.mxu1 %v12645_v15  ;;  %v11499_v60 = vld [vmem:[%s14329_s23 + $0x128] sm:$0xff]  }
 0xbb0   : > { %v3184_v2 = vrot.slane %v3183_v0, 1  ;;  %3427 = vmatprep.subr.bf16.mxu1 %v11457_v63  ;;  %v11503_v63 = vld [vmem:[%s14329_s23 + $0x130] sm:$0xff]  }
 0xbb2   : > { %v3185_v4 = vadd.f32 %v3184_v2, %v3183_v0  ;;  %v11504_v0 = vld [vmem:[%s14329_s23 + $0x78] sm:$0xff]  }
 0xbb3   : > { %3428 = vmatpush1.bf16.msra.mxu1 %v11455_v1  ;;  %v11505_v1 = vld [vmem:[%s14329_s23 + $0x38] sm:$0xff]  }
 0xbb4   : > { %10414 = vmatmul.mubr.f32.vlgmr.msra.gmra.mrb[36].mxu0 %v3185_v4  ;;  %3429 = vmatprep.subr.bf16.mxu1 %v11460_v3  ;;  %v11506_v2 = vld [vmem:[%s14329_s23 + $0x178] sm:$0xff]   ;;  %v11508_v4 = vld [vmem:[%s14329_s23 + $0xc0] sm:$0xff]  }
 0xbb5   : > { %9699 = vmatpush3.bf16.msra.mxu0 %v11477_v24  ;;  %v11507_v3 = vld [vmem:[%s14329_s23 + $0x138] sm:$0xff]  }
 0xbb6   : > { %9700 = vmatprep.subr.bf16.mxu0 %v11480_v26  ;;  %v11515_v24 = vld [vmem:[%s14329_s23 + $0x98] sm:$0xff]   ;;  %v11517_v26 = vld [vmem:[%s14329_s23 + $0xa0] sm:$0xff]  }
 0xbb7   : > { %3430 = vmatpush1.bf16.msra.mxu1 %v11458_v5 }
 0xbb8   : > { %3431 = vmatprep.subr.bf16.mxu1 %v11463_v6 }
 0xbb9   : > { %9701 = vmatpush3.bf16.msra.mxu0 %v11481_v27  ;;  %v11518_v27 = vld [vmem:[%s14329_s23 + $0xe8] sm:$0xff]  }
 0xbba   : > { %9702 = vmatprep.subr.bf16.mxu0 %v11484_v28  ;;  %v11519_v28 = vld [vmem:[%s14329_s23 + $0xa8] sm:$0xff]  }
 0xbbb   : > { %3432 = vmatpush1.bf16.msra.mxu1 %v11461_v8 }
 0xbbc   : > { %3433 = vmatprep.subr.bf16.mxu1 %v11466_v9 }
 0xbbd   : > { %9703 = vmatpush3.bf16.msra.mxu0 %v11485_v29  ;;  %v11521_v29 = vld [vmem:[%s14329_s23 + $0xb0] sm:$0xff]  }
 0xbbe   : > { %9704 = vmatprep.subr.bf16.mxu0 %v11488_v30  ;;  %v11522_v30 = vld [vmem:[%s14329_s23 + $0xf8] sm:$0xff]  }
 0xbbf   : > { %3434 = vmatpush1.bf16.msra.mxu1 %v11464_v10 }
 0xbc0   : > { %3435 = vmatprep.subr.bf16.mxu1 %v11469_v13 }
 0xbc1   : > { %9705 = vmatpush3.bf16.msra.mxu0 %v11489_v31  ;;  %v11523_v31 = vld [vmem:[%s14329_s23 + $0xb8] sm:$0xff]  }
 0xbc2   : > { %9706 = vmatprep.subr.bf16.mxu0 %v11492_v32 }
 0xbc3   : > { %3436 = vmatpush1.bf16.msra.mxu1 %v11467_v17  ;;  %v11509_v17 = vld [vmem:[%s14329_s23 + $0x80] sm:$0xff]  }
 0xbc4   : > { %3437 = vmatprep.subr.bf16.mxu1 %v11472_v19  ;;  %v11510_v19 = vld [vmem:[%s14329_s23 + $0xc8] sm:$0xff]  }
 0xbc5   : > { %9707 = vmatpush3.bf16.msra.mxu0 %v11493_v33 }
 0xbc6   : > { %9708 = vmatprep.subr.bf16.mxu0 %v11496_v34 }
 0xbc7   : > { %3438 = vmatpush1.bf16.msra.mxu1 %v11470_v20  ;;  %v11511_v20 = vld [vmem:[%s14329_s23 + $0x88] sm:$0xff]  }
 0xbc8   : > { %3439 = vmatprep.subr.bf16.mxu1 %v11475_v21  ;;  %v11512_v21 = vld [vmem:[%s14329_s23 + $0xd0] sm:$0xff]  }
 0xbc9   : > { %9709 = vmatpush3.bf16.msra.mxu0 %v11497_v35 }
 0xbca   : > { %9710 = vmatprep.subr.bf16.mxu0 %v11500_v36 }
 0xbcb   : > { %3440 = vmatpush1.bf16.msra.mxu1 %v11473_v22  ;;  %v11513_v22 = vld [vmem:[%s14329_s23 + $0x90] sm:$0xff]  }
 0xbcc   : > { %9720 = vmatprep.subr.bf16.mxu1 %v11478_v25  ;;  %v11516_v25 = vld [vmem:[%s14329_s23 + $0xe0] sm:$0xff]  }
 0xbcd   : > { %9711 = vmatpush3.bf16.msra.mxu0 %v11501_v37 }
 0xbce   : > { %9712 = vmatprep.subr.bf16.mxu0 %v11504_v0 }
 0xbd1   : > { %9713 = vmatpush3.bf16.msra.mxu0 %v11505_v1 }
 0xbd2   : > { %9746 = vmatprep.subr.bf16.mxu0 %v11508_v4 }
 0xc81   : > { %v3321_v38 = vpop.f32.mrb[36].mxu1 }
 0xc82   : > { %v10420_v39 = vpop.f32.mrb[37].mxu1 }
 0xc83   : > { %v3324_v40 = vpop.f32.mrb[38].mxu1 }
 0xc84   : > { %v3328_v42 = vpack.c.bf16 %v3324_v40, %v3321_v38  ;;  %v10421_v43 = vpop.f32.mrb[39].mxu1 }
 0xc86   : > { %3458 = vmatmul.mubr.bf16.vlgmr.msra.gmra.mrb[40].mxu1 %v3328_v42 }
 0xc87   : > { %v3268_v46 = vpop.f32.mrb[36].mxu0  ;;  %9721 = vmatpush3.bf16.msra.mxu1 %v11479_v41 }
 0xc88   : > { %v3272_v48 = vmul.f32 0.0625, %v3268_v46  ;;  %v10415_v49 = vpop.f32.mrb[37].mxu0  ;;  %9722 = vmatprep.subr.bf16.mxu1 %v11482_v45 }
 0xc8a   : > { %8445 = vst.msk [vmem:[%s13524_s0] sm:$0x1] %vm8444_vm7, %v3272_v48 }
 0xc8b   : > { %9723 = vmatpush3.bf16.msra.mxu1 %v11483_v47 }
 0xc8c   : > { %9724 = vmatprep.subr.bf16.mxu1 %v11486_v52 }
 0xc8f   : > { %9725 = vmatpush3.bf16.msra.mxu1 %v11487_v53 }
 0xc90   : > { %9726 = vmatprep.subr.bf16.mxu1 %v11490_v54  ;;  %v11524_v54 = vld [vmem:[%s14330_s18] sm:$0xff]   ;;  %s14332_s18 = sld [smem:[#allocation67_spill]] }
 0xc93   : > { %9727 = vmatpush3.bf16.msra.mxu1 %v11491_v55 }
 0xc94   : > { %9728 = vmatprep.subr.bf16.mxu1 %v11494_v56 }
 0xc96   : > { %s14333_s2 = smov %s14332_s18 }
 0xc97   : > { %9729 = vmatpush3.bf16.msra.mxu1 %v11495_v58 }
 0xc98   : > { %9730 = vmatprep.subr.bf16.mxu1 %v11498_v59 }
 0xc9b   : > { %9731 = vmatpush3.bf16.msra.mxu1 %v11499_v60 }
 0xc9c   : > { %9732 = vmatprep.subr.bf16.mxu1 %v11502_v62 }
 0xc9f   : > { %9733 = vmatpush3.bf16.msra.mxu1 %v11503_v63 }
 0xca0   : > { %9734 = vmatprep.subr.bf16.mxu1 %v11506_v2 }
 0xca3   : > { %9735 = vmatpush3.bf16.msra.mxu1 %v11507_v3 }
 0xd59   : > { %v3459_v5 = vpop.f32.mrb[40].mxu1 }
 0xd5a   : > { %v3461_v6 = vpop.f32.mrb[41].mxu1 }
 0xd5b   : > { %v3463_v8 = vpop.f32.mrb[42].mxu1 }
 0xd5c   : > { %v3468_v9 = vpack.c.bf16 %v3463_v8, %v3459_v5  ;;  %v3465_v10 = vpop.f32.mrb[43].mxu1  ;;  %v11528_v8 = vld [vmem:[#allocation38 + $0x4] ss:$8 sps:$4 sm:$0xff]  }
 0xd5d   : > { %v3469_v13 = vpack.c.bf16 %v3465_v10, %v3461_v6  ;;  %v11526_v10 = vld [vmem:[#allocation38] ss:$8 sps:$4 sm:$0xff]  }
 0xd5f   : > { %3630 = vmatprep.mubr.bf16.mxu0 %v3469_v13  ;;  %3833 = vmatprep.mubr.bf16.mxu1 %v3469_v13 }
 0xd60   : > { %3631 = vmatmul.mubr.bf16.vlgmr.msra.gmra.mrb[40].mxu0 %v3468_v9  ;;  %3834 = vmatmul.mubr.bf16.vlgmr.msra.gmra.mrb[44].mxu1 %v3468_v9 }
 0xd61   : > { %9747 = vmatpush3.bf16.msra.mxu0 %v11509_v17  ;;  %4045 = vmatprep.mubr.bf16.mxu0 %v3469_v13  ;;  %v11531_v13 = vld [vmem:[#allocation38 + $0x14] ss:$8 sps:$4 sm:$0xff]   ;;  %v11529_v17 = vld [vmem:[#allocation38 + $0x10] ss:$8 sps:$4 sm:$0xff]  }
 0xd62   : > { %9748 = vmatprep.subr.bf16.mxu0 %v11510_v19  ;;  %10426 = vmatprep.mubr.msk.f32.mxu1 %vm2385_vm5, %v13383_v44  ;;  %v11520_v44 = vld [vmem:[%s14329_s23 + $0xf0] sm:$0xff]  }
 0xd63   : > { %v11534_v19 = vld [vmem:[#allocation38 + $0x24] ss:$8 sps:$4 sm:$0xff]  }
 0xd65   : > { %9749 = vmatpush3.bf16.msra.mxu0 %v11511_v20  ;;  %v11532_v20 = vld [vmem:[#allocation38 + $0x20] ss:$8 sps:$4 sm:$0xff]  }
 0xd66   : > { %9750 = vmatprep.subr.bf16.mxu0 %v11512_v21  ;;  %v11537_v21 = vld [vmem:[#allocation38 + $0x34] ss:$8 sps:$4 sm:$0xff]  }
 0xd69   : > { %9751 = vmatpush3.bf16.msra.mxu0 %v11513_v22  ;;  %v11535_v22 = vld [vmem:[#allocation38 + $0x30] ss:$8 sps:$4 sm:$0xff]  }
 0xd6a   : > { %9752 = vmatprep.subr.bf16.mxu0 %v11514_v23  ;;  %v11540_v23 = vld [vmem:[#allocation38 + $0x44] ss:$8 sps:$4 sm:$0xff]  }
 0xd6d   : > { %9753 = vmatpush3.bf16.msra.mxu0 %v11515_v24  ;;  %v11538_v24 = vld [vmem:[#allocation38 + $0x40] ss:$8 sps:$4 sm:$0xff]  }
 0xd6e   : > { %9754 = vmatprep.subr.bf16.mxu0 %v11516_v25  ;;  %v11543_v25 = vld [vmem:[#allocation38 + $0x54] ss:$8 sps:$4 sm:$0xff]  }
 0xd71   : > { %9755 = vmatpush3.bf16.msra.mxu0 %v11517_v26  ;;  %v11541_v26 = vld [vmem:[#allocation38 + $0x50] ss:$8 sps:$4 sm:$0xff]  }
 0xd72   : > { %9756 = vmatprep.subr.bf16.mxu0 %v11518_v27  ;;  %v11546_v27 = vld [vmem:[#allocation38 + $0x64] ss:$8 sps:$4 sm:$0xff]  }
 0xd75   : > { %9757 = vmatpush3.bf16.msra.mxu0 %v11519_v28  ;;  %v11544_v28 = vld [vmem:[#allocation38 + $0x60] ss:$8 sps:$4 sm:$0xff]  }
 0xd76   : > { %9758 = vmatprep.subr.bf16.mxu0 %v11520_v44  ;;  %v11549_v44 = vld [vmem:[#allocation38 + $0x74] ss:$8 sps:$4 sm:$0xff]  }
 0xd79   : > { %9759 = vmatpush3.bf16.msra.mxu0 %v11521_v29  ;;  %v11547_v29 = vld [vmem:[#allocation38 + $0x70] ss:$8 sps:$4 sm:$0xff]  }
 0xd7a   : > { %9760 = vmatprep.subr.bf16.mxu0 %v11522_v30  ;;  %v11550_v30 = vld [vmem:[%s14332_s18 + $0x140] sm:$0xff]   ;;  %s14334_s18 = sld [smem:[#allocation69_spill]] }
 0xd7d   : > { %9761 = vmatpush3.bf16.msra.mxu0 %v11523_v31  ;;  %v11551_v31 = vld [vmem:[%s14333_s2 + $0x40] sm:$0xff]  }
 0xd80   : > { %4046 = vmatmul.mubr.bf16.vlgmr.msra.gmra.mrb[44].mxu0 %v3468_v9  ;;  %v11525_v9 = vld [vmem:[%s14331_s15 + $0x8] ss:$0 sps:$4 sm:$0xff]   ;;  %s14335_s3 = smov %s14334_s18 }
 0xd81   : > { %10433 = vmatprep.mubr.msk.f32.mxu0 %vm2385_vm5, %v13389_v51 }
 0xe33   : > { %v9714_v32 = vpop.f32.mrb[40].mxu0  ;;  %v9736_v33 = vpop.f32.mrb[44].mxu1 }
 0xe34   : > { %v9715_v34 = vpop.f32.mrb[41].mxu0  ;;  %v9737_v35 = vpop.f32.mrb[45].mxu1 }
 0xe35   : > { %v9716_v36 = vadd.f32 %v9715_v34, %v9714_v32  ;;  %v9738_v37 = vadd.f32 %v9737_v35, %v9736_v33  ;;  %v9717_v38 = vpop.f32.mrb[42].mxu0  ;;  %v9739_v39 = vpop.f32.mrb[46].mxu1  ;;  %v11553_v32 = vld [vmem:[%s14333_s2] sm:$0xff]   ;;  %v11555_v33 = vld [vmem:[%s14333_s2 + $0x48] sm:$0xff]   ;;  %v11559_v35 = vld [vmem:[%s14333_s2 + $0x50] sm:$0xff]  }
 0xe36   : > { %v9718_v40 = vpop.f32.mrb[43].mxu0  ;;  %v9740_v41 = vpop.f32.mrb[47].mxu1  ;;  %v11557_v34 = vld [vmem:[%s14333_s2 + $0x8] sm:$0xff]  }
 0xe37   : > { %v9719_v42 = vadd.f32 %v9718_v40, %v9717_v38  ;;  %v9741_v43 = vadd.f32 %v9740_v41, %v9739_v39  ;;  %v11565_v38 = vld [vmem:[%s14333_s2 + $0x18] sm:$0xff]   ;;  %v11567_v39 = vld [vmem:[%s14333_s2 + $0x60] sm:$0xff]   ;;  %v11571_v41 = vld [vmem:[%s14333_s2 + $0x68] sm:$0xff]  }
 0xe38   : > { %v11569_v40 = vld [vmem:[%s14333_s2 + $0x20] sm:$0xff]  }
 0xe39   : > { %v10983_v45 = vpack.c.bf16 %v9719_v42, %v9716_v36  ;;  %v10987_v46 = vpack.c.bf16 %v9741_v43, %v9738_v37  ;;  %v11561_v36 = vld [vmem:[%s14333_s2 + $0x10] sm:$0xff]   ;;  %v11563_v37 = vld [vmem:[%s14333_s2 + $0x58] sm:$0xff]   ;;  %v11573_v42 = vld [vmem:[%s14333_s2 + $0x28] sm:$0xff]  }
 0xe3a   : > { %v11575_v43 = vld [vmem:[%s14333_s2 + $0x70] sm:$0xff]  }
 0xe3b   : > { %10984 = vmatprep.subr.bf16.mxu1 %v10983_v45  ;;  %10988 = vmatprep.subr.bf16.mxu0 %v10987_v46 }
 0xe3c   : > { %10986 = vmatpush3.bf16.msra.mxu1 %v10983_v45  ;;  %10990 = vmatpush3.bf16.msra.mxu0 %v10987_v46 }
 0xe3d   : > { %9775 = vmatprep.subr.bf16.mxu0 %v11551_v31  ;;  %v11589_v31 = vld [vmem:[%s14333_s2 + $0x98] sm:$0xff]  }
 0xe3f   : > { %10427 = vmatmul.mubr.msk.f32.vlgmr.msra.gmra.mrb[48].mxu1 %vm2385_vm5, %v13387_v50  ;;  %10434 = vmatmul.mubr.msk.f32.vlgmr.msra.gmra.mrb[38].mxu0 %vm2385_vm5, %v13395_v57  ;;  %v9089_v50 = vld [vmem:[#allocation22] ss:$0 sm:$0xff] }
 0xe40   : > { %10438 = vmatprep.mubr.msk.bf16.mxu1 %vm2385_vm5, %v11524_v54  ;;  %9776 = vmatpush3.bf16.msra.mxu0 %v11553_v32  ;;  %v11558_v54 = vld [vmem:[%s14333_s2 + $0x150] sm:$0xff]   ;;  %v11590_v32 = vld [vmem:[%s14333_s2 + $0xe0] sm:$0xff]  }
 0xe41   : > { %9777 = vmatprep.subr.bf16.mxu0 %v11555_v33  ;;  %v11591_v33 = vld [vmem:[%s14333_s2 + $0xa0] sm:$0xff]  }
 0xe44   : > { %9778 = vmatpush3.bf16.msra.mxu0 %v11557_v34  ;;  %v11592_v34 = vld [vmem:[%s14333_s2 + $0xe8] sm:$0xff]  }
 0xe45   : > { %9779 = vmatprep.subr.bf16.mxu0 %v11559_v35  ;;  %v11593_v35 = vld [vmem:[%s14333_s2 + $0xa8] sm:$0xff]  }
 0xe48   : > { %9780 = vmatpush3.bf16.msra.mxu0 %v11561_v36  ;;  %v11594_v36 = vld [vmem:[%s14333_s2 + $0xf0] sm:$0xff]  }
 0xe49   : > { %9781 = vmatprep.subr.bf16.mxu0 %v11563_v37  ;;  %v11595_v37 = vld [vmem:[%s14333_s2 + $0xb0] sm:$0xff]  }
 0xe4c   : > { %9782 = vmatpush3.bf16.msra.mxu0 %v11565_v38  ;;  %v11596_v38 = vld [vmem:[%s14333_s2 + $0xf8] sm:$0xff]  }
 0xe4d   : > { %9783 = vmatprep.subr.bf16.mxu0 %v11567_v39  ;;  %v11597_v39 = vld [vmem:[%s14333_s2 + $0xb8] sm:$0xff]  }
 0xe50   : > { %9784 = vmatpush3.bf16.msra.mxu0 %v11569_v40  ;;  %v11599_v40 = vld [vmem:[%s14334_s18 + $0x80] sm:$0xff]   ;;  %s14337_s18 = sld [smem:[#allocation74_spill]] }
 0xe51   : > { %9785 = vmatprep.subr.bf16.mxu0 %v11571_v41 }
 0xe53   : > { %v9762_v51 = vpop.f32.mrb[44].mxu0 }
 0xe54   : > { %v9763_v47 = vpop.f32.mrb[45].mxu0  ;;  %9786 = vmatpush3.bf16.msra.mxu0 %v11573_v42 }
 0xe55   : > { %v9764_v48 = vadd.f32 %v9763_v47, %v9762_v51  ;;  %v9765_v49 = vpop.f32.mrb[46].mxu0  ;;  %9787 = vmatprep.subr.bf16.mxu0 %v11575_v43 }
 0xe56   : > { %v9766_v52 = vpop.f32.mrb[47].mxu0 }
 0xe57   : > { %v9767_v53 = vadd.f32 %v9766_v52, %v9765_v49  ;;  %v11554_v52 = vld [vmem:[%s14333_s2 + $0x148] sm:$0xff]  }
 0xf12   : > { %v10428_v55 = vpop.f32.mrb[48].mxu1  ;;  %v10435_v56 = vpop.f32.mrb[38].mxu0 }
 0xf13   : > { %v4051_v58 = vadd.f32 %v10428_v55, %v9767_v53  ;;  %v3908_v59 = vpop.f32.mrb[49].mxu1  ;;  %v4120_v60 = vpop.f32.mrb[39].mxu0  ;;  %v11556_v53 = vld [vmem:[%s14333_s2 + $0x108] sm:$0xff]   ;;  %v11560_v55 = vld [vmem:[%s14333_s2 + $0x110] sm:$0xff]  }
 0xf14   : > { %v4048_v62 = vadd.f32 %v9764_v48, %v3908_v59  ;;  %v11552_v48 = vld [vmem:[%s14333_s2 + $0x100] sm:$0xff]   ;;  %v11564_v59 = vld [vmem:[%s14333_s2 + $0x118] sm:$0xff]  }
 0xf15   : > { %v4130_v63 = vadd.f32 %v10435_v56, %v4051_v58  ;;  %v11562_v58 = vld [vmem:[%s14333_s2 + $0x158] sm:$0xff]  }
 0xf16   : > { %v4129_v0 = vadd.f32 %v4120_v60, %v4048_v62  ;;  %v11566_v60 = vld [vmem:[%s14333_s2 + $0x160] sm:$0xff]  }
 0xf17   : > { %v4139_v57 = vadd.f32 %v9089_v50, %v4130_v63  ;;  %v11568_v62 = vld [vmem:[%s14333_s2 + $0x120] sm:$0xff]   ;;  %v11572_v63 = vld [vmem:[%s14333_s2 + $0x128] sm:$0xff]  }
 0xf18   : > { %v4138_v1 = vadd.f32 %v9089_v50, %v4129_v0  ;;  %v11570_v50 = vld [vmem:[%s14333_s2 + $0x168] sm:$0xff]   ;;  %v11574_v0 = vld [vmem:[%s14333_s2 + $0x170] sm:$0xff]  }
 0xf19   : > { %v4141_v2 = vmax.f32 %v4139_v57, 0.0  ;;  %v11576_v57 = vld [vmem:[%s14333_s2 + $0x130] sm:$0xff]  }
 0xf1a   : > { %v4140_v3 = vmax.f32 %v4138_v1, 0.0  ;;  %v11577_v1 = vld [vmem:[%s14333_s2 + $0x30] sm:$0xff]  }
 0xf1b   : > { %v4143_v4 = vmul.f32 %v4141_v2, %v13402_v14  ;;  %9788 = vmatpush3.bf16.msra.mxu0 %v11577_v1  ;;  %v11578_v2 = vld [vmem:[%s14333_s2 + $0x178] sm:$0xff]  }
 0xf1c   : > { %v4142_v5 = vmul.f32 %v4140_v3, %v13404_v18  ;;  %v11579_v3 = vld [vmem:[%s14333_s2 + $0x78] sm:$0xff]  }
 0xf1d   : > { %9789 = vmatprep.subr.bf16.mxu0 %v11579_v3  ;;  %v13625_v3 = vld [vmem:[#allocation2] sm:$0xff] }
 0xf1e   : > { %v4147_v6 = vpack.c.bf16 %v4143_v4, %v4142_v5  ;;  %v11580_v4 = vld [vmem:[%s14333_s2 + $0x138] sm:$0xff]  }
 0xf1f   : > { %v11581_v5 = vld [vmem:[%s14333_s2 + $0x38] sm:$0xff]  }
 0xf20   : > { %10436 = vmatprep.subr.bf16.mxu1 %v4147_v6  ;;  %9790 = vmatpush3.bf16.msra.mxu0 %v11581_v5  ;;  %v13634_v5 = vld [vmem:[#allocation2 + $0x8] sm:$0xff] }
 0xf21   : > { %10437 = vmatpush3.bf16.msra.mxu1 %v4147_v6  ;;  %v11582_v6 = vld [vmem:[%s14333_s2 + $0xc0] sm:$0xff]   ;;  %10991 = vmatprep.subr.bf16.mxu0 %v12642_v11 }
 0xf22   : > { %4308 = vmatprep.subr.bf16.mxu1 %v11528_v8 }
 0xf24   : > { %10439 = vmatmul.mubr.msk.bf16.vlgmr.msra.gmra.mrb[52].mxu1 %vm2385_vm5, %v11525_v9 }
 0xf25   : > { %4309 = vmatpush1.bf16.msra.mxu1 %v11526_v10  ;;  %4340 = vmatprep.mubr.bf16.mxu1 %v12645_v15 }
 0xf26   : > { %4310 = vmatprep.subr.bf16.mxu1 %v11531_v13 }
 0xf29   : > { %4311 = vmatpush1.bf16.msra.mxu1 %v11529_v17 }
 0xf2a   : > { %4312 = vmatprep.subr.bf16.mxu1 %v11534_v19 }
 0xf2d   : > { %4313 = vmatpush1.bf16.msra.mxu1 %v11532_v20  ;;  %v11583_v20 = vld [vmem:[%s14333_s2 + $0x80] sm:$0xff]  }
 0xf2e   : > { %4314 = vmatprep.subr.bf16.mxu1 %v11537_v21  ;;  %v11584_v21 = vld [vmem:[%s14333_s2 + $0xc8] sm:$0xff]  }
 0xf31   : > { %4315 = vmatpush1.bf16.msra.mxu1 %v11535_v22 }
 0xf32   : > { %4316 = vmatprep.subr.bf16.mxu1 %v11540_v23  ;;  %v11585_v23 = vld [vmem:[%s14333_s2 + $0x88] sm:$0xff]  }
 0xf35   : > { %4317 = vmatpush1.bf16.msra.mxu1 %v11538_v24 }
 0xf36   : > { %4318 = vmatprep.subr.bf16.mxu1 %v11543_v25  ;;  %v11586_v25 = vld [vmem:[%s14333_s2 + $0xd0] sm:$0xff]  }
 0xf39   : > { %4319 = vmatpush1.bf16.msra.mxu1 %v11541_v26 }
 0xf3a   : > { %4320 = vmatprep.subr.bf16.mxu1 %v11546_v27 }
 0xf3d   : > { %4321 = vmatpush1.bf16.msra.mxu1 %v11544_v28 }
 0xf3e   : > { %4322 = vmatprep.subr.bf16.mxu1 %v11549_v44  ;;  %v11587_v44 = vld [vmem:[%s14333_s2 + $0x90] sm:$0xff]  }
 0xf41   : > { %4323 = vmatpush1.bf16.msra.mxu1 %v11547_v29 }
 0xf42   : > { %9803 = vmatprep.subr.bf16.mxu1 %v11550_v30  ;;  %v11588_v30 = vld [vmem:[%s14333_s2 + $0xd8] sm:$0xff]   ;;  %s14338_s2 = smov %s14337_s18 }
 0xff7   : > { %v10440_v45 = vpop.f32.mrb[52].mxu1 }
 0xff8   : > { %v4196_v46 = vpop.f32.mrb[53].mxu1  ;;  %v4211_v56 = vpack.c.bf16 %v10440_v45, %v10440_v45 }
 0xff9   : > { %v10441_v51 = vpop.f32.mrb[54].mxu1 }
 0xffa   : > { %v4199_v47 = vpop.f32.mrb[55].mxu1 }
 0xffb   : > { %v4210_v49 = vpack.c.bf16 %v4199_v47, %v4196_v46 }
 0xffd   : > { %4341 = vmatmul.mubr.bf16.vlgmr.msra.gmra.mrb[56].mxu1 %v4210_v49 }
 0xffe   : > { %4350 = vmatprep.mubr.bf16.mxu1 %v12645_v15  ;;  %9804 = vmatpush3.bf16.msra.mxu1 %v11552_v48 }
 0xfff   : > { %9805 = vmatprep.subr.bf16.mxu1 %v11554_v52 }
0x1002   : > { %9806 = vmatpush3.bf16.msra.mxu1 %v11556_v53 }
0x1003   : > { %9807 = vmatprep.subr.bf16.mxu1 %v11558_v54 }
0x1005   : > { %4351 = vmatmul.mubr.bf16.gmra.mrb[60].mxu1 %v4211_v56 }
0x1006   : > { %9808 = vmatpush3.bf16.msra.mxu1 %v11560_v55 }
0x1007   : > { %9809 = vmatprep.subr.bf16.mxu1 %v11562_v58 }
0x100a   : > { %9810 = vmatpush3.bf16.msra.mxu1 %v11564_v59 }
0x100b   : > { %9811 = vmatprep.subr.bf16.mxu1 %v11566_v60 }
0x100e   : > { %9812 = vmatpush3.bf16.msra.mxu1 %v11568_v62 }
0x100f   : > { %9813 = vmatprep.subr.bf16.mxu1 %v11570_v50 }
0x1012   : > { %9814 = vmatpush3.bf16.msra.mxu1 %v11572_v63 }
0x1013   : > { %9815 = vmatprep.subr.bf16.mxu1 %v11574_v0 }
0x1016   : > { %9816 = vmatpush3.bf16.msra.mxu1 %v11576_v57 }
0x1017   : > { %9817 = vmatprep.subr.bf16.mxu1 %v11578_v2 }
0x101a   : > { %9818 = vmatpush3.bf16.msra.mxu1 %v11580_v4  ;;  %v11598_v4 = vld [vmem:[%s14335_s3] sm:$0xff]  }
0x101b   : > { %9837 = vmatprep.subr.bf16.mxu1 %v11582_v6  ;;  %v13640_v6 = vld [vmem:[#allocation2 + $0x10] sm:$0xff] }
0x10d0   : > { %v4342_v8 = vpop.f32.mrb[56].mxu1 }
0x10d1   : > { %v4344_v9 = vpop.f32.mrb[57].mxu1 }
0x10d2   : > { %v4346_v10 = vpop.f32.mrb[58].mxu1 }
0x10d3   : > { %v4359_v13 = vpack.c.bf16 %v4346_v10, %v4342_v8  ;;  %v4348_v17 = vpop.f32.mrb[59].mxu1  ;;  %v13646_v8 = vld [vmem:[#allocation5] sm:$0xff] }
0x10d4   : > { %v4360_v19 = vpack.c.bf16 %v4348_v17, %v4344_v9  ;;  %v13652_v9 = vld [vmem:[#allocation5 + $0x8] sm:$0xff]  ;;  %v13658_v17 = vld [vmem:[#allocation5 + $0x10] sm:$0xff] }
0x10d6   : > { %4523 = vmatprep.mubr.bf16.mxu0 %v4360_v19  ;;  %4733 = vmatprep.mubr.bf16.mxu1 %v4360_v19 }
0x10d7   : > { %4524 = vmatmul.mubr.bf16.vlgmr.msra.gmra.mrb[48].mxu0 %v4359_v13  ;;  %4734 = vmatmul.mubr.bf16.vlgmr.msra.gmra.mrb[64].mxu1 %v4359_v13 }
0x10d8   : > { %9838 = vmatpush3.bf16.msra.mxu1 %v11583_v20  ;;  %v4352_v22 = vpop.f32.mrb[60].mxu1 }
0x10d9   : > { %v4354_v24 = vpop.f32.mrb[61].mxu1  ;;  %9839 = vmatprep.subr.bf16.mxu1 %v11584_v21  ;;  %v4361_v29 = vpack.c.bf16 %v4352_v22, %v4352_v22 }
0x10da   : > { %v4362_v26 = vpack.c.bf16 %v4354_v24, %v4354_v24  ;;  %v4356_v27 = vpop.f32.mrb[62].mxu1 }
0x10db   : > { %v4357_v28 = vpop.f32.mrb[63].mxu1 }
0x10dc   : > { %9840 = vmatpush3.bf16.msra.mxu1 %v11585_v23  ;;  %4531 = vmatprep.mubr.bf16.mxu0 %v4362_v26  ;;  %v11600_v28 = vld [vmem:[%s14335_s3 + $0x8] sm:$0xff]  }
0x10dd   : > { %4741 = vmatprep.mubr.bf16.mxu1 %v4362_v26  ;;  %9841 = vmatprep.subr.bf16.mxu1 %v11586_v25 }
0x10df   : > { %4532 = vmatmul.mubr.bf16.gmra.mrb[52].mxu0 %v4361_v29  ;;  %4742 = vmatmul.mubr.bf16.gmra.mrb[68].mxu1 %v4361_v29 }
0x10e0   : > { %9842 = vmatpush3.bf16.msra.mxu1 %v11587_v44  ;;  %4957 = vmatprep.mubr.bf16.mxu1 %v4360_v19  ;;  %v11601_v44 = vld [vmem:[%s14335_s3 + $0x88] sm:$0xff]  }
0x10e1   : > { %9843 = vmatprep.subr.bf16.mxu1 %v11588_v30  ;;  %10448 = vmatprep.mubr.msk.f32.mxu0 %vm12644_vm1, %v12643_v12  ;;  %v11603_v30 = vld [vmem:[%s14335_s3 + $0x90] sm:$0xff]  }
0x10e4   : > { %9844 = vmatpush3.bf16.msra.mxu1 %v11589_v31  ;;  %v11604_v31 = vld [vmem:[%s14335_s3 + $0x18] sm:$0xff]  }
0x10e5   : > { %9845 = vmatprep.subr.bf16.mxu1 %v11590_v32  ;;  %v11605_v32 = vld [vmem:[%s14335_s3 + $0x98] sm:$0xff]  }
0x10e8   : > { %9846 = vmatpush3.bf16.msra.mxu1 %v11591_v33  ;;  %v11606_v33 = vld [vmem:[%s14335_s3 + $0x20] sm:$0xff]  }
0x10e9   : > { %9847 = vmatprep.subr.bf16.mxu1 %v11592_v34  ;;  %v11607_v34 = vld [vmem:[%s14335_s3 + $0xa0] sm:$0xff]  }
0x10ec   : > { %9848 = vmatpush3.bf16.msra.mxu1 %v11593_v35  ;;  %v11608_v35 = vld [vmem:[%s14335_s3 + $0x28] sm:$0xff]  }
0x10ed   : > { %9849 = vmatprep.subr.bf16.mxu1 %v11594_v36  ;;  %v11609_v36 = vld [vmem:[%s14335_s3 + $0xa8] sm:$0xff]  }
0x10f0   : > { %9850 = vmatpush3.bf16.msra.mxu1 %v11595_v37  ;;  %v11610_v37 = vld [vmem:[%s14335_s3 + $0x30] sm:$0xff]  }
0x10f1   : > { %9851 = vmatprep.subr.bf16.mxu1 %v11596_v38  ;;  %v11611_v38 = vld [vmem:[%s14335_s3 + $0xb0] sm:$0xff]  }
0x10f4   : > { %9852 = vmatpush3.bf16.msra.mxu1 %v11597_v39  ;;  %v11612_v39 = vld [vmem:[%s14335_s3 + $0x38] sm:$0xff]  }
0x10f5   : > { %10492 = vmatprep.subr.bf16.mxu1 %v11599_v40 }
0x10f7   : > { %4958 = vmatmul.mubr.bf16.vlgmr.msra.gmra.mrb[72].mxu1 %v4359_v13 }
0x10f8   : > { %4965 = vmatprep.mubr.bf16.mxu1 %v4362_v26  ;;  %10493 = vmatpush3.bf16.msra.mxu1 %v11599_v40  ;;  %v11613_v40 = vld [vmem:[%s14335_s3 + $0xb8] sm:$0xff]  }
0x10f9   : > { %10494 = vmatprep.subr.bf16.mxu1 %v11601_v44 }
0x10fc   : > { %10495 = vmatpush3.bf16.msra.mxu1 %v11601_v44 }
0x10fd   : > { %10496 = vmatprep.subr.bf16.mxu1 %v11603_v30 }
0x10ff   : > { %4966 = vmatmul.mubr.bf16.gmra.mrb[76].mxu1 %v4361_v29  ;;  %v11602_v29 = vld [vmem:[%s14335_s3 + $0x10] sm:$0xff]  }
0x1100   : > { %10497 = vmatpush3.bf16.msra.mxu1 %v11603_v30 }
0x1101   : > { %10498 = vmatprep.subr.bf16.mxu1 %v11605_v32 }
0x1104   : > { %10499 = vmatpush3.bf16.msra.mxu1 %v11605_v32  ;;  %v11615_v32 = vld [vmem:[#allocation26] sm:$0xff]  }
0x1105   : > { %10500 = vmatprep.subr.bf16.mxu1 %v11607_v34 }
0x1108   : > { %10501 = vmatpush3.bf16.msra.mxu1 %v11607_v34  ;;  %v11617_v34 = vld [vmem:[#allocation26 + $0x8] sm:$0xff]  }
0x1109   : > { %10502 = vmatprep.subr.bf16.mxu1 %v11609_v36 }
0x110c   : > { %10503 = vmatpush3.bf16.msra.mxu1 %v11609_v36  ;;  %v11619_v36 = vld [vmem:[#allocation26 + $0x10] sm:$0xff]  }
0x110d   : > { %10504 = vmatprep.subr.bf16.mxu1 %v11611_v38 }
0x1110   : > { %10505 = vmatpush3.bf16.msra.mxu1 %v11611_v38  ;;  %v11621_v38 = vld [vmem:[#allocation26 + $0x30] sm:$0xff]  }
0x1111   : > { %10506 = vmatprep.subr.bf16.mxu1 %v11613_v40 }
0x1114   : > { %10507 = vmatpush3.bf16.msra.mxu1 %v11613_v40  ;;  %v11622_v40 = vld [vmem:[%s14335_s3 + $0x60] sm:$0xff]  }
0x1115   : > { %11000 = vmatprep.subr.bf16.mxu1 %v12642_v11 }
0x11aa   : > { %v9791_v41 = vpop.f32.mrb[48].mxu0  ;;  %v9819_v42 = vpop.f32.mrb[64].mxu1 }
0x11ab   : > { %v9792_v43 = vpop.f32.mrb[49].mxu0  ;;  %v9820_v45 = vpop.f32.mrb[65].mxu1 }
0x11ac   : > { %v9793_v46 = vadd.f32 %v9792_v43, %v9791_v41  ;;  %v9821_v51 = vadd.f32 %v9820_v45, %v9819_v42  ;;  %v9794_v47 = vpop.f32.mrb[50].mxu0  ;;  %v9822_v48 = vpop.f32.mrb[66].mxu1 }
0x11ad   : > { %v9795_v49 = vpop.f32.mrb[51].mxu0  ;;  %v9823_v52 = vpop.f32.mrb[67].mxu1 }
0x11ae   : > { %v9796_v53 = vadd.f32 %v9795_v49, %v9794_v47  ;;  %v9824_v54 = vadd.f32 %v9823_v52, %v9822_v48 }
0x11b0   : > { %v10992_v55 = vpack.c.bf16 %v9796_v53, %v9793_v46  ;;  %v10995_v56 = vpack.c.bf16 %v9824_v54, %v9821_v51  ;;  %v9228_v53 = vld [vmem:[#allocation23] ss:$0 sm:$0xff] }
0x11b2   : > { %v9797_v58 = vpop.f32.mrb[52].mxu0  ;;  %v9825_v59 = vpop.f32.mrb[68].mxu1  ;;  %10993 = vmatpush3.bf16.msra.mxu0 %v10992_v55 }
0x11b3   : > { %v9798_v60 = vpop.f32.mrb[53].mxu0  ;;  %v9826_v62 = vpop.f32.mrb[69].mxu1  ;;  %10446 = vmatprep.subr.mxu0 %v12643_v12 }
0x11b4   : > { %v9799_v50 = vadd.f32 %v9798_v60, %v9797_v58  ;;  %v9827_v63 = vadd.f32 %v9826_v62, %v9825_v59  ;;  %v9800_v0 = vpop.f32.mrb[54].mxu0  ;;  %v9828_v57 = vpop.f32.mrb[70].mxu1 }
0x11b5   : > { %v9801_v1 = vpop.f32.mrb[55].mxu0  ;;  %v9829_v2 = vpop.f32.mrb[71].mxu1 }
0x11b6   : > { %10447 = vmatpush3.msra.mxu0 %v9799_v50 }
0x11b7   : > { %10449 = vmatmul.mubr.msk.f32.vlgmr.msra.gmra.mrb[56].mxu0 %vm1774_vm2, %v13625_v3  ;;  %10994 = vmatprep.subr.bf16.mxu0 %v12642_v11 }
0x11b8   : > { %10996 = vmatpush3.bf16.msra.mxu0 %v10995_v56  ;;  %10451 = vmatprep.mubr.msk.f32.mxu0 %vm12644_vm1, %v12643_v12 }
0x11b9   : > { %10461 = vmatprep.subr.mxu0 %v12643_v12 }
0x11bb   : > { %10452 = vmatmul.mubr.msk.f32.gmra.mrb[58].mxu0 %vm1774_vm2, %v13634_v5 }
0x11bc   : > { %10462 = vmatpush3.msra.mxu0 %v9827_v63  ;;  %10454 = vmatprep.mubr.msk.f32.mxu0 %vm12644_vm1, %v12643_v12 }
0x11bd   : > { %10472 = vmatprep.subr.bf16.mxu0 %v11598_v4 }
0x11bf   : > { %10455 = vmatmul.mubr.msk.f32.gmra.mrb[60].mxu0 %vm1774_vm2, %v13640_v6 }
0x11c0   : > { %10463 = vmatprep.mubr.msk.f32.mxu0 %vm12644_vm1, %v12643_v12 }
0x11c3   : > { %10464 = vmatmul.mubr.msk.f32.vlgmr.msra.gmra.mrb[62].mxu0 %vm1774_vm2, %v13646_v8 }
0x11c4   : > { %10466 = vmatprep.mubr.msk.f32.mxu0 %vm12644_vm1, %v12643_v12  ;;  %10473 = vmatpush3.bf16.msra.mxu0 %v11598_v4 }
0x11c5   : > { %10474 = vmatprep.subr.bf16.mxu0 %v11600_v28 }
0x11c7   : > { %10467 = vmatmul.mubr.msk.f32.gmra.mrb[64].mxu0 %vm1774_vm2, %v13652_v9 }
0x11c8   : > { %10469 = vmatprep.mubr.msk.f32.mxu0 %vm12644_vm1, %v12643_v12  ;;  %10475 = vmatpush3.bf16.msra.mxu0 %v11600_v28 }
0x11c9   : > { %10476 = vmatprep.subr.bf16.mxu0 %v11602_v29 }
0x11ca   : > { %v9853_v10 = vpop.f32.mrb[72].mxu1 }
0x11cb   : > { %v9854_v13 = vpop.f32.mrb[73].mxu1  ;;  %10470 = vmatmul.mubr.msk.f32.gmra.mrb[66].mxu0 %vm1774_vm2, %v13658_v17 }
0x11cc   : > { %v9855_v19 = vadd.f32 %v9854_v13, %v9853_v10  ;;  %v9856_v20 = vpop.f32.mrb[74].mxu1  ;;  %10477 = vmatpush3.bf16.msra.mxu0 %v11602_v29 }
0x11cd   : > { %v9857_v21 = vpop.f32.mrb[75].mxu1  ;;  %10478 = vmatprep.subr.bf16.mxu0 %v11604_v31 }
0x11ce   : > { %v9858_v22 = vadd.f32 %v9857_v21, %v9856_v20 }
0x11d0   : > { %10479 = vmatpush3.bf16.msra.mxu0 %v11604_v31  ;;  %v11614_v31 = vld [vmem:[%s14335_s3 + $0x40] sm:$0xff]  }
0x11d1   : > { %10480 = vmatprep.subr.bf16.mxu0 %v11606_v33 }
0x11d2   : > { %v9859_v23 = vpop.f32.mrb[76].mxu1 }
0x11d3   : > { %v9860_v24 = vpop.f32.mrb[77].mxu1 }
0x11d4   : > { %v9861_v25 = vadd.f32 %v9860_v24, %v9859_v23  ;;  %v9862_v26 = vpop.f32.mrb[78].mxu1  ;;  %10481 = vmatpush3.bf16.msra.mxu0 %v11606_v33  ;;  %v11616_v33 = vld [vmem:[%s14335_s3 + $0x48] sm:$0xff]  }
0x11d5   : > { %v9863_v27 = vpop.f32.mrb[79].mxu1  ;;  %10482 = vmatprep.subr.bf16.mxu0 %v11608_v35 }
0x11d8   : > { %10483 = vmatpush3.bf16.msra.mxu0 %v11608_v35  ;;  %v11618_v35 = vld [vmem:[%s14335_s3 + $0x50] sm:$0xff]  }
0x11d9   : > { %10484 = vmatprep.subr.bf16.mxu0 %v11610_v37 }
0x11dc   : > { %10485 = vmatpush3.bf16.msra.mxu0 %v11610_v37  ;;  %v11620_v37 = vld [vmem:[%s14335_s3 + $0x58] sm:$0xff]  }
0x11dd   : > { %10486 = vmatprep.subr.bf16.mxu0 %v11612_v39 }
0x11e0   : > { %10487 = vmatpush3.bf16.msra.mxu0 %v11612_v39  ;;  %v11745_v39 = vld [vmem:[%s13286_s28] sm:$0xff]  }
0x11e1   : > { %10997 = vmatprep.subr.bf16.mxu0 %v12642_v11 }
0x128a   : > { %v4815_v41 = vpop.f32.mrb[56].mxu0 }
0x128b   : > { %v4960_v42 = vadd.f32 %v9855_v19, %v4815_v41  ;;  %v10450_v43 = vpop.f32.mrb[57].mxu0  ;;  %v11623_v41 = vld [vmem:[#allocation26 + $0x38] sm:$0xff]  }
0x128c   : > { %v11624_v43 = vld [vmem:[%s14335_s3 + $0x68] sm:$0xff]  }
0x128e   : > { %v4820_v45 = vpop.f32.mrb[58].mxu0 }
0x128f   : > { %v4963_v46 = vadd.f32 %v9858_v22, %v4820_v45  ;;  %v10453_v51 = vpop.f32.mrb[59].mxu0  ;;  %v11625_v45 = vld [vmem:[#allocation26 + $0x40] sm:$0xff]  }
0x1290   : > { %v11627_v51 = vld [vmem:[%s14335_s3 + $0x78] sm:$0xff]  }
0x1292   : > { %v4825_v47 = vpop.f32.mrb[60].mxu0 }
0x1293   : > { %v4968_v48 = vadd.f32 %v9861_v25, %v4825_v47  ;;  %v10456_v49 = vpop.f32.mrb[61].mxu0  ;;  %v11628_v47 = vld [vmem:[#allocation26 + $0x18] sm:$0xff]  }
0x1294   : > { %v11630_v49 = vld [vmem:[#allocation26 + $0x28] sm:$0xff]  }
0x1296   : > { %v5039_v52 = vpop.f32.mrb[62].mxu0 }
0x1297   : > { %v5053_v54 = vadd.f32 %v5039_v52, %v4960_v42  ;;  %v10465_v55 = vpop.f32.mrb[63].mxu0  ;;  %v11746_v42 = vld [vmem:[%s13286_s28 + $0x8] ss:$0 sps:$4 sm:$0xff]   ;;  %s14336_s28 = sld [smem:[#allocation73_spill]] }
0x1299   : > { %v5063_v56 = vadd.f32 %v9228_v53, %v5053_v54 }
0x129a   : > { %v5044_v58 = vpop.f32.mrb[64].mxu0 }
0x129b   : > { %v5054_v59 = vadd.f32 %v5044_v58, %v4963_v46  ;;  %v10468_v60 = vpop.f32.mrb[65].mxu0  ;;  %v5066_v62 = vmax.f32 %v5063_v56, 0.0  ;;  %v11626_v46 = vld [vmem:[%s14335_s3 + $0x70] sm:$0xff]  }
0x129d   : > { %v5064_v50 = vadd.f32 %v9228_v53, %v5054_v59  ;;  %v5069_v2 = vmul.f32 %v5066_v62, %v13346_v61 }
0x129e   : > { %v5049_v63 = vpop.f32.mrb[66].mxu0 }
0x129f   : > { %v5067_v0 = vmax.f32 %v5064_v50, 0.0  ;;  %v5055_v57 = vadd.f32 %v5049_v63, %v4968_v48  ;;  %v10471_v1 = vpop.f32.mrb[67].mxu0  ;;  %v11629_v48 = vld [vmem:[#allocation26 + $0x20] sm:$0xff]  }
0x12a1   : > { %v5070_v4 = vmul.f32 %v5067_v0, %v13348_v7  ;;  %v5065_v10 = vadd.f32 %v9228_v53, %v5055_v57 }
0x12a3   : > { %v5068_v13 = vmax.f32 %v5065_v10, 0.0  ;;  %v5072_v19 = vpack.c.bf16 %v5070_v4, %v5069_v2 }
0x12a5   : > { %v5071_v20 = vmul.f32 %v5068_v13, %v13352_v16  ;;  %10488 = vmatprep.mubr.bf16.mxu0 %v5072_v19  ;;  %10508 = vmatprep.mubr.bf16.mxu1 %v5072_v19 }
0x12a7   : > { %v13681_v21 = vpack.c.bf16 %v5071_v20, %v5071_v20 }
0x12a9   : > { %10489 = vmatmul.mubr.bf16.vlgmr.msra.gmra.mrb[68].mxu0 %v13681_v21  ;;  %10509 = vmatmul.mubr.bf16.vlgmr.msra.gmra.mrb[80].mxu1 %v13681_v21 }
0x12aa   : > { %10518 = vmatprep.mubr.msk.f32.mxu0 %vm12644_vm1, %v12643_v12  ;;  %10553 = vmatprep.mubr.msk.f32.mxu1 %vm12644_vm1, %v12643_v12 }
0x137c   : > { %v10490_v22 = vpop.f32.mrb[68].mxu0  ;;  %v10510_v23 = vpop.f32.mrb[80].mxu1 }
0x137d   : > { %v5172_v24 = vpop.f32.mrb[69].mxu0  ;;  %v5302_v25 = vpop.f32.mrb[81].mxu1 }
0x137e   : > { %v10491_v26 = vpop.f32.mrb[70].mxu0  ;;  %v10511_v27 = vpop.f32.mrb[82].mxu1 }
0x137f   : > { %v5175_v28 = vpop.f32.mrb[71].mxu0  ;;  %v5305_v44 = vpop.f32.mrb[83].mxu1 }
0x1380   : > { %v10998_v29 = vpack.c.bf16 %v5175_v28, %v5172_v24  ;;  %v11001_v30 = vpack.c.bf16 %v5305_v44, %v5302_v25  ;;  %v11747_v44 = vld [vmem:[%s14323_s8] sm:$0xff]  }
0x1382   : > { %10999 = vmatpush3.bf16.msra.mxu0 %v10998_v29  ;;  %11002 = vmatpush3.bf16.msra.mxu1 %v11001_v30  ;;  %v11749_v30 = vld [vmem:[%s14323_s8 + $0x10] sm:$0xff]  }
0x1383   : > { %10516 = vmatprep.subr.mxu0 %v12643_v12  ;;  %10551 = vmatprep.subr.mxu1 %v12643_v12 }
0x1386   : > { %10517 = vmatpush3.msra.mxu0 %v10490_v22  ;;  %10552 = vmatpush3.msra.mxu1 %v10510_v23 }
0x1387   : > { %10519 = vmatmul.mubr.msk.f32.vlgmr.msra.gmra.mrb[72].mxu0 %vm1774_vm2, %v13625_v3  ;;  %10527 = vmatprep.subr.bf16.mxu0 %v11614_v31 }
0x1388   : > { %10554 = vmatmul.mubr.msk.f32.vlgmr.msra.gmra.mrb[50].mxu1 %vm1774_vm2, %v13646_v8  ;;  %10562 = vmatprep.subr.bf16.mxu1 %v11615_v32 }
0x1389   : > { %10528 = vmatpush3.bf16.msra.mxu0 %v11614_v31  ;;  %10563 = vmatpush3.bf16.msra.mxu1 %v11615_v32  ;;  %v11751_v31 = vld [vmem:[%s14323_s8 + $0x20] sm:$0xff]   ;;  %v11752_v32 = vld [vmem:[%s14323_s8 + $0x28] sm:$0xff]  }
0x138a   : > { %10521 = vmatprep.mubr.msk.f32.mxu0 %vm12644_vm1, %v12643_v12  ;;  %10556 = vmatprep.mubr.msk.f32.mxu1 %vm12644_vm1, %v12643_v12 }
0x138b   : > { %10522 = vmatmul.mubr.msk.f32.gmra.mrb[74].mxu0 %vm1774_vm2, %v13634_v5  ;;  %10529 = vmatprep.subr.bf16.mxu0 %v11616_v33 }
0x138c   : > { %10557 = vmatmul.mubr.msk.f32.gmra.mrb[84].mxu1 %vm1774_vm2, %v13652_v9  ;;  %10564 = vmatprep.subr.bf16.mxu1 %v11617_v34 }
0x138d   : > { %10530 = vmatpush3.bf16.msra.mxu0 %v11616_v33  ;;  %10565 = vmatpush3.bf16.msra.mxu1 %v11617_v34  ;;  %v11754_v33 = vld [vmem:[%s14323_s8 + $0x38] sm:$0xff]  }
0x138e   : > { %10524 = vmatprep.mubr.msk.f32.mxu0 %vm12644_vm1, %v12643_v12  ;;  %10559 = vmatprep.mubr.msk.f32.mxu1 %vm12644_vm1, %v12643_v12 }
0x138f   : > { %10525 = vmatmul.mubr.msk.f32.gmra.mrb[76].mxu0 %vm1774_vm2, %v13640_v6  ;;  %10531 = vmatprep.subr.bf16.mxu0 %v11618_v35 }
0x1390   : > { %10560 = vmatmul.mubr.msk.f32.gmra.mrb[86].mxu1 %vm1774_vm2, %v13658_v17  ;;  %10566 = vmatprep.subr.bf16.mxu1 %v11619_v36 }
0x1391   : > { %10532 = vmatpush3.bf16.msra.mxu0 %v11618_v35  ;;  %10543 = vmatprep.mubr.bf16.mxu0 %v5072_v19 }
0x1392   : > { %10567 = vmatpush3.bf16.msra.mxu1 %v11619_v36  ;;  %10568 = vmatprep.mubr.msk.bf16.mxu1 %vm1636_vm0, %v11745_v39 }
0x1393   : > { %10533 = vmatprep.subr.bf16.mxu0 %v11620_v37  ;;  %10572 = vmatprep.subr.bf16.mxu1 %v11621_v38 }
0x1395   : > { %10569 = vmatmul.mubr.msk.bf16.vlgmr.msra.gmra.mrb[88].mxu1 %vm1636_vm0, %v11746_v42  ;;  %10534 = vmatpush3.bf16.msra.mxu0 %v11620_v37 }
0x1396   : > { %10573 = vmatpush3.bf16.msra.mxu1 %v11621_v38  ;;  %10535 = vmatprep.subr.bf16.mxu0 %v11622_v40 }
0x1397   : > { %10574 = vmatprep.subr.bf16.mxu1 %v11623_v41  ;;  %10578 = vmatprep.mubr.msk.bf16.mxu1 %vm1636_vm0, %v11745_v39 }
0x1399   : > { %10536 = vmatpush3.bf16.msra.mxu0 %v11622_v40 }
0x139a   : > { %10575 = vmatpush3.bf16.msra.mxu1 %v11623_v41  ;;  %10537 = vmatprep.subr.bf16.mxu0 %v11624_v43 }
0x139b   : > { %10576 = vmatprep.subr.bf16.mxu1 %v11625_v45 }
0x139d   : > { %10538 = vmatpush3.bf16.msra.mxu0 %v11624_v43 }
0x139e   : > { %10577 = vmatpush3.bf16.msra.mxu1 %v11625_v45  ;;  %10539 = vmatprep.subr.bf16.mxu0 %v11626_v46 }
0x139f   : > { %10597 = vmatprep.subr.bf16.mxu1 %v11628_v47 }
0x13a1   : > { %10579 = vmatmul.mubr.msk.bf16.vlgmr.msra.gmra.mrb[92].mxu1 %vm1636_vm0, %v11746_v42  ;;  %10540 = vmatpush3.bf16.msra.mxu0 %v11626_v46 }
0x13a2   : > { %10541 = vmatprep.subr.bf16.mxu0 %v11627_v51  ;;  %10603 = vmatprep.mubr.msk.bf16.mxu1 %vm1636_vm0, %v11745_v39 }
0x13a3   : > { %10598 = vmatpush3.bf16.msra.mxu1 %v11628_v47 }
0x13a4   : > { %10599 = vmatprep.subr.bf16.mxu1 %v11629_v48 }
0x13a5   : > { %10542 = vmatpush3.bf16.msra.mxu0 %v11627_v51 }
0x13a6   : > { %11003 = vmatprep.subr.bf16.mxu0 %v12642_v11 }
0x13a7   : > { %10600 = vmatpush3.bf16.msra.mxu1 %v11629_v48  ;;  %v9313_v48 = vld [vmem:[#allocation28] ss:$0 sm:$0xff] }
0x13a8   : > { %10544 = vmatmul.mubr.bf16.vlgmr.msra.gmra.mrb[80].mxu0 %v13681_v21  ;;  %10601 = vmatprep.subr.bf16.mxu1 %v11630_v49 }
0x13a9   : > { %10588 = vmatprep.mubr.msk.f32.mxu0 %vm12644_vm1, %v12643_v12 }
0x13ab   : > { %10602 = vmatpush3.bf16.msra.mxu1 %v11630_v49 }
0x13ac   : > { %10622 = vmatprep.subr.bf16.mxu1 %v12643_v12 }
0x13ae   : > { %10604 = vmatmul.mubr.msk.bf16.vlgmr.msra.gmra.mrb[96].mxu1 %vm1636_vm0, %v11746_v42 }
0x13af   : > { %10626 = vmatprep.mubr.msk.bf16.mxu1 %vm12644_vm1, %v12643_v12 }
0x145a   : > { %v5382_v52 = vpop.f32.mrb[72].mxu0 }
0x145b   : > { %v5558_v53 = vpop.f32.mrb[50].mxu1  ;;  %v10520_v54 = vpop.f32.mrb[73].mxu0 }
0x145c   : > { %v10555_v55 = vpop.f32.mrb[51].mxu1 }
0x145e   : > { %v5387_v56 = vpop.f32.mrb[74].mxu0 }
0x145f   : > { %v5563_v58 = vpop.f32.mrb[84].mxu1  ;;  %v10523_v59 = vpop.f32.mrb[75].mxu0 }
0x1460   : > { %v10558_v60 = vpop.f32.mrb[85].mxu1 }
0x1462   : > { %v5392_v62 = vpop.f32.mrb[76].mxu0 }
0x1463   : > { %v5568_v50 = vpop.f32.mrb[86].mxu1  ;;  %v10526_v63 = vpop.f32.mrb[77].mxu0 }
0x1464   : > { %v10561_v0 = vpop.f32.mrb[87].mxu1 }
0x1468   : > { %v10570_v57 = vpop.f32.mrb[88].mxu1 }
0x1469   : > { %v5646_v1 = vpop.f32.mrb[89].mxu1 }
0x146a   : > { %v10571_v2 = vpop.f32.mrb[90].mxu1 }
0x146b   : > { %v5649_v4 = vpop.f32.mrb[91].mxu1 }
0x146c   : > { %v11004_v10 = vpack.c.bf16 %v5649_v4, %v5646_v1 }
0x146e   : > { %11005 = vmatpush3.bf16.msra.mxu0 %v11004_v10 }
0x146f   : > { %10586 = vmatprep.subr.mxu0 %v12643_v12 }
0x1472   : > { %10587 = vmatpush3.msra.mxu0 %v10570_v57 }
0x1473   : > { %10589 = vmatmul.mubr.msk.f32.vlgmr.msra.gmra.mrb[78].mxu0 %vm1774_vm2, %v13625_v3  ;;  %11006 = vmatprep.subr.bf16.mxu0 %v12642_v11 }
0x1474   : > { %v10580_v13 = vpop.f32.mrb[92].mxu1  ;;  %10591 = vmatprep.mubr.msk.f32.mxu0 %vm12644_vm1, %v12643_v12 }
0x1475   : > { %v5726_v19 = vpop.f32.mrb[93].mxu1 }
0x1476   : > { %v10581_v20 = vpop.f32.mrb[94].mxu1 }
0x1477   : > { %v5729_v21 = vpop.f32.mrb[95].mxu1  ;;  %10592 = vmatmul.mubr.msk.f32.gmra.mrb[84].mxu0 %vm1774_vm2, %v13634_v5  ;;  %v11755_v20 = vld [vmem:[#allocation35] sm:$0xff]  }
0x1478   : > { %v11007_v22 = vpack.c.bf16 %v5729_v21, %v5726_v19  ;;  %10594 = vmatprep.mubr.msk.f32.mxu0 %vm12644_vm1, %v12643_v12  ;;  %v11631_v21 = vld [vmem:[#allocation29] sm:$0xff]  }
0x147a   : > { %11008 = vmatpush3.bf16.msra.mxu0 %v11007_v22  ;;  %v11632_v22 = vld [vmem:[#allocation29 + $0x8] sm:$0xff]  }
0x147b   : > { %10595 = vmatmul.mubr.msk.f32.gmra.mrb[86].mxu0 %vm1774_vm2, %v13640_v6  ;;  %v10545_v3 = vpop.f32.mrb[80].mxu0  ;;  %10611 = vmatprep.subr.mxu0 %v12643_v12 }
0x147c   : > { %v5487_v23 = vadd.f32 %v10545_v3, %v5392_v62  ;;  %v5478_v24 = vpop.f32.mrb[81].mxu0  ;;  %10613 = vmatprep.mubr.msk.f32.mxu0 %vm12644_vm1, %v12643_v12  ;;  %v11633_v3 = vld [vmem:[#allocation29 + $0x10] sm:$0xff]  }
0x147d   : > { %v5479_v25 = vadd.f32 %v5478_v24, %v5382_v52  ;;  %v10546_v5 = vpop.f32.mrb[82].mxu0 }
0x147e   : > { %v13749_v26 = vadd.f32 %v5568_v50, %v5487_v23  ;;  %10612 = vmatpush3.msra.mxu0 %v10580_v13  ;;  %v5481_v27 = vpop.f32.mrb[83].mxu0 }
0x147f   : > { %v13751_v28 = vadd.f32 %v5558_v53, %v5479_v25  ;;  %v5482_v6 = vadd.f32 %v5481_v27, %v5387_v56  ;;  %10614 = vmatmul.mubr.msk.f32.vlgmr.msra.gmra.mrb[88].mxu0 %vm1774_vm2, %v13646_v8  ;;  %10630 = vmatprep.subr.bf16.mxu0 %v12643_v12  ;;  %v11748_v8 = vld [vmem:[%s14323_s8 + $0x8] sm:$0xff]  }
0x1480   : > { %10616 = vmatprep.mubr.msk.f32.mxu0 %vm12644_vm1, %v12643_v12  ;;  %10631 = vmatpush3.bf16.msra.mxu0 %v11747_v44  ;;  %v11634_v44 = vld [vmem:[#allocation29 + $0x18] sm:$0xff]  }
0x1481   : > { %v13759_v29 = vadd.f32 %v5563_v58, %v5482_v6  ;;  %10632 = vmatprep.subr.bf16.mxu0 %v12643_v12  ;;  %v10605_v34 = vpop.f32.mrb[96].mxu1  ;;  %v11756_v6 = vld [vmem:[#allocation7] sm:$0xff] }
0x1482   : > { %v5872_v35 = vpop.f32.mrb[97].mxu1 }
0x1483   : > { %10617 = vmatmul.mubr.msk.f32.gmra.mrb[90].mxu0 %vm1774_vm2, %v13652_v9  ;;  %v11750_v9 = vld [vmem:[%s14323_s8 + $0x18] sm:$0xff]   ;;  %v10606_v36 = vpop.f32.mrb[98].mxu1 }
0x1484   : > { %10619 = vmatprep.mubr.msk.f32.mxu0 %vm12644_vm1, %v12643_v12  ;;  %10633 = vmatpush3.bf16.msra.mxu0 %v11748_v8  ;;  %v5875_v37 = vpop.f32.mrb[99].mxu1  ;;  %v11639_v36 = vld [vmem:[#allocation29 + $0x20] sm:$0xff]  }
0x1485   : > { %10634 = vmatprep.subr.bf16.mxu0 %v12643_v12 }
0x1487   : > { %10620 = vmatmul.mubr.msk.f32.gmra.mrb[92].mxu0 %vm1774_vm2, %v13658_v17  ;;  %v11753_v17 = vld [vmem:[%s14323_s8 + $0x30] sm:$0xff]   ;;  %s8452_s8 = scalar_lea.sflag [#allocation4], %s14341_s6 }
0x1488   : > { %10635 = vmatpush3.bf16.msra.mxu0 %v11749_v30  ;;  %10646 = vmatprep.mubr.msk.bf16.mxu0 %vm12644_vm1, %v12643_v12 }
0x1489   : > { %10636 = vmatprep.subr.bf16.mxu0 %v12643_v12 }
0x148c   : > { %10637 = vmatpush3.bf16.msra.mxu0 %v11750_v9 }
0x148d   : > { %10638 = vmatprep.subr.bf16.mxu0 %v12643_v12 }
0x1490   : > { %10639 = vmatpush3.bf16.msra.mxu0 %v11751_v31  ;;  %v11635_v31 = vld [vmem:[#allocation29 + $0x40] sm:$0xff]  }
0x1491   : > { %10640 = vmatprep.subr.bf16.mxu0 %v12643_v12 }
0x1494   : > { %10641 = vmatpush3.bf16.msra.mxu0 %v11752_v32 }
0x1495   : > { %10642 = vmatprep.subr.bf16.mxu0 %v12643_v12 }
0x1498   : > { %10643 = vmatpush3.bf16.msra.mxu0 %v11753_v17 }
0x1499   : > { %10644 = vmatprep.subr.bf16.mxu0 %v12643_v12 }
0x149c   : > { %10645 = vmatpush3.bf16.msra.mxu0 %v11754_v33  ;;  %v11636_v33 = vld [vmem:[#allocation29 + $0x48] sm:$0xff]  }
0x1546   : > { %v5806_v38 = vpop.f32.mrb[78].mxu0 }
0x1547   : > { %v10590_v39 = vpop.f32.mrb[79].mxu0  ;;  %v5873_v40 = vadd.f32 %v5872_v35, %v5806_v38  ;;  %v11638_v35 = vld [vmem:[#allocation29 + $0x58] sm:$0xff]   ;;  %v11641_v38 = vld [vmem:[#allocation29 + $0x30] sm:$0xff]  }
0x1548   : > { %v11642_v39 = vld [vmem:[#allocation29 + $0x38] sm:$0xff]  }
0x154a   : > { %v5811_v41 = vpop.f32.mrb[84].mxu0 }
0x154b   : > { %v10593_v42 = vpop.f32.mrb[85].mxu0  ;;  %v5876_v43 = vadd.f32 %v5875_v37, %v5811_v41  ;;  %v11640_v37 = vld [vmem:[#allocation29 + $0x28] sm:$0xff]  }
0x154e   : > { %v5816_v45 = vpop.f32.mrb[86].mxu0 }
0x154f   : > { %v5881_v46 = vadd.f32 %v10605_v34, %v5816_v45  ;;  %v10596_v51 = vpop.f32.mrb[87].mxu0  ;;  %v11637_v34 = vld [vmem:[#allocation29 + $0x50] sm:$0xff]  }
0x1550   : > { %v11758_v51 = vld [vmem:[#allocation8] sm:$0xff] }
0x1552   : > { %v5952_v47 = vpop.f32.mrb[88].mxu0 }
0x1553   : > { %v5966_v49 = vadd.f32 %v5952_v47, %v5873_v40  ;;  %v10615_v52 = vpop.f32.mrb[89].mxu0 }
0x1555   : > { %v5976_v53 = vadd.f32 %v9313_v48, %v5966_v49 }
0x1556   : > { %v5957_v54 = vpop.f32.mrb[90].mxu0 }
0x1557   : > { %v5967_v55 = vadd.f32 %v5957_v54, %v5876_v43  ;;  %v10618_v56 = vpop.f32.mrb[91].mxu0  ;;  %v5979_v58 = vmax.f32 %v5976_v53, 0.0  ;;  %v11759_v54 = vld [vmem:[#allocation8 + $0x8] sm:$0xff] }
0x1559   : > { %v5977_v59 = vadd.f32 %v9313_v48, %v5967_v55  ;;  %v5982_v0 = vmul.f32 %v5979_v58, %v13346_v61  ;;  %v11760_v55 = vld [vmem:[%s14331_s15] sm:$0xff]  }
0x155a   : > { %v5962_v60 = vpop.f32.mrb[92].mxu0 }
0x155b   : > { %v5980_v62 = vmax.f32 %v5977_v59, 0.0  ;;  %v5968_v50 = vadd.f32 %v5962_v60, %v5881_v46  ;;  %v10621_v63 = vpop.f32.mrb[93].mxu0  ;;  %v11757_v46 = vld [vmem:[#allocation7 + $0x8] sm:$0xff] }
0x155d   : > { %v5983_v57 = vmul.f32 %v5980_v62, %v13348_v7  ;;  %v5978_v1 = vadd.f32 %v9313_v48, %v5968_v50 }
0x155f   : > { %v13785_v2 = vpack.c.bf16 %v5983_v57, %v5982_v0  ;;  %v5981_v4 = vmax.f32 %v5978_v1, 0.0  ;;  %v9334_v1 = vld [vmem:[#allocation31] ss:$0 sm:$0xff] }
0x1561   : > { %v5984_v10 = vmul.f32 %v5981_v4, %v13352_v16  ;;  %10623 = vmatpush3.bf16.msra.mxu1 %v13785_v2 }
0x1562   : > { %10624 = vmatprep.subr.bf16.mxu1 %v12643_v12 }
0x1563   : > { %v13790_v13 = vpack.c.bf16 %v5984_v10, %v5984_v10 }
0x1565   : > { %v5988_v19 = vsel %vm2071_vm3, %v13790_v13, 0 }
0x1566   : > { %10625 = vmatpush3.bf16.msra.mxu1 %v5988_v19 }
0x1567   : > { %10650 = vmatprep.subr.bf16.mxu1 %v12643_v12 }
0x1569   : > { %10627 = vmatmul.mubr.msk.bf16.vlgmr.msra.gmra.mrb[100].mxu1 %vm1774_vm2, %v11755_v20 }
0x156a   : > { %10658 = vmatprep.mubr.msk.bf16.mxu1 %vm12644_vm1, %v12643_v12  ;;  %10651 = vmatpush3.bf16.msra.mxu1 %v11631_v21 }
0x156b   : > { %10652 = vmatprep.subr.bf16.mxu1 %v12643_v12 }
0x156e   : > { %10653 = vmatpush3.bf16.msra.mxu1 %v11632_v22 }
0x156f   : > { %10654 = vmatprep.subr.bf16.mxu1 %v12643_v12 }
0x1572   : > { %10655 = vmatpush3.bf16.msra.mxu1 %v11633_v3 }
0x1573   : > { %10656 = vmatprep.subr.bf16.mxu1 %v12643_v12 }
0x1576   : > { %10657 = vmatpush3.bf16.msra.mxu1 %v11634_v44  ;;  %v11764_v44 = vld [vmem:[#allocation38 + $0x14] ss:$8 sps:$4 sm:$0xff]  }
0x1577   : > { %10662 = vmatprep.subr.bf16.mxu1 %v12643_v12 }
0x163c   : > { %v6024_v23 = vpop.f32.mrb[100].mxu1 }
0x163d   : > { %v10628_v24 = vpop.f32.mrb[101].mxu1 }
0x163e   : > { %v6027_v25 = vpop.f32.mrb[102].mxu1 }
0x163f   : > { %v6031_v5 = vpack.c.bf16 %v6027_v25, %v6024_v23  ;;  %v10629_v27 = vpop.f32.mrb[103].mxu1 }
0x1640   : > { %v11762_v27 = vld [vmem:[%s14331_s15 + $0x8] ss:$0 sps:$4 sm:$0xff]  }
0x1641   : > { %10647 = vmatmul.mubr.bf16.vlgmr.msra.gmra.mrb[96].mxu0 %v6031_v5  ;;  %v11761_v5 = vld [vmem:[#allocation38 + $0x4] ss:$8 sps:$4 sm:$0xff]  }
0x1642   : > { %10678 = vmatprep.mubr.msk.f32.mxu0 %vm2385_vm5, %v11756_v6  ;;  %v11763_v6 = vld [vmem:[#allocation38] ss:$8 sps:$4 sm:$0xff]  }
0x1714   : > { %v6066_v8 = vpop.f32.mrb[96].mxu0 }
0x1715   : > { %v10648_v30 = vpop.f32.mrb[97].mxu0 }
0x1716   : > { %v6069_v9 = vpop.f32.mrb[98].mxu0  ;;  %v11766_v30 = vld [vmem:[#allocation38 + $0x24] ss:$8 sps:$4 sm:$0xff]  }
0x1717   : > { %v6073_v32 = vpack.c.bf16 %v6069_v9, %v6066_v8  ;;  %v10649_v17 = vpop.f32.mrb[99].mxu0  ;;  %v11765_v8 = vld [vmem:[#allocation38 + $0x10] ss:$8 sps:$4 sm:$0xff]  }
0x1718   : > { %v11769_v9 = vld [vmem:[#allocation38 + $0x30] ss:$8 sps:$4 sm:$0xff]   ;;  %v11772_v17 = vld [vmem:[#allocation38 + $0x54] ss:$8 sps:$4 sm:$0xff]  }
0x1719   : > { %10659 = vmatmul.mubr.msk.bf16.vlgmr.msra.gmra.mrb[104].mxu1 %vm2255_vm4, %v6073_v32 }
0x171a   : > { %10663 = vmatpush3.bf16.msra.mxu1 %v11635_v31  ;;  %10670 = vmatprep.mubr.msk.bf16.mxu1 %vm12644_vm1, %v12643_v12  ;;  %v11770_v31 = vld [vmem:[#allocation38 + $0x44] ss:$8 sps:$4 sm:$0xff]  }
0x171b   : > { %10664 = vmatprep.subr.bf16.mxu1 %v12643_v12 }
0x171e   : > { %10665 = vmatpush3.bf16.msra.mxu1 %v11636_v33  ;;  %v11773_v33 = vld [vmem:[#allocation38 + $0x50] ss:$8 sps:$4 sm:$0xff]  }
0x171f   : > { %10666 = vmatprep.subr.bf16.mxu1 %v12643_v12 }
0x1722   : > { %10667 = vmatpush3.bf16.msra.mxu1 %v11637_v34  ;;  %v11774_v34 = vld [vmem:[#allocation38 + $0x64] ss:$8 sps:$4 sm:$0xff]  }
0x1723   : > { %10668 = vmatprep.subr.bf16.mxu1 %v12643_v12 }
0x1726   : > { %10669 = vmatpush3.bf16.msra.mxu1 %v11638_v35  ;;  %v11775_v35 = vld [vmem:[#allocation38 + $0x60] ss:$8 sps:$4 sm:$0xff]  }
0x1727   : > { %10681 = vmatprep.subr.bf16.mxu1 %v12643_v12 }
0x1729   : > { %10671 = vmatmul.mubr.msk.bf16.vlgmr.msra.gmra.mrb[108].mxu1 %vm2255_vm4, %v6073_v32 }
0x172a   : > { %10682 = vmatpush3.bf16.msra.mxu1 %v11639_v36  ;;  %10689 = vmatprep.mubr.msk.bf16.mxu1 %vm12644_vm1, %v12643_v12  ;;  %v11776_v36 = vld [vmem:[#allocation38 + $0x74] ss:$8 sps:$4 sm:$0xff]  }
0x172b   : > { %10683 = vmatprep.subr.bf16.mxu1 %v12643_v12 }
0x172e   : > { %10684 = vmatpush3.bf16.msra.mxu1 %v11640_v37  ;;  %v11777_v37 = vld [vmem:[#allocation38 + $0x70] ss:$8 sps:$4 sm:$0xff]  }
0x172f   : > { %10685 = vmatprep.subr.bf16.mxu1 %v12643_v12 }
0x1732   : > { %10686 = vmatpush3.bf16.msra.mxu1 %v11641_v38  ;;  %v11643_v38 = vld [vmem:[%s14336_s28 + $0x140] sm:$0xff]  }
0x1733   : > { %10687 = vmatprep.subr.bf16.mxu1 %v12643_v12 }
0x1736   : > { %10688 = vmatpush3.bf16.msra.mxu1 %v11642_v39  ;;  %v11644_v39 = vld [vmem:[%s14336_s28 + $0x40] sm:$0xff]  }
0x1737   : > { %9978 = vmatprep.subr.bf16.mxu1 %v11644_v39  ;;  %v11680_v39 = vld [vmem:[%s14338_s2 + $0x28] sm:$0xff]  }
0x1739   : > { %10690 = vmatmul.mubr.msk.bf16.vlgmr.msra.gmra.mrb[112].mxu1 %vm2255_vm4, %v6073_v32  ;;  %v11771_v32 = vld [vmem:[#allocation38 + $0x40] ss:$8 sps:$4 sm:$0xff]  }
0x17ec   : > { %v6143_v40 = vpop.f32.mrb[104].mxu1 }
0x17ed   : > { %v10660_v41 = vpop.f32.mrb[105].mxu1 }
0x17ee   : > { %v6146_v42 = vpop.f32.mrb[106].mxu1  ;;  %v11648_v41 = vld [vmem:[%s14336_s28 + $0x48] sm:$0xff]  }
0x17ef   : > { %v11009_v43 = vpack.c.bf16 %v6146_v42, %v6143_v40  ;;  %v10661_v45 = vpop.f32.mrb[107].mxu1  ;;  %v11646_v40 = vld [vmem:[%s14336_s28] sm:$0xff]   ;;  %v11650_v42 = vld [vmem:[%s14336_s28 + $0x8] sm:$0xff]  }
0x17f0   : > { %9979 = vmatpush3.bf16.msra.mxu1 %v11646_v40  ;;  %v11654_v45 = vld [vmem:[%s14336_s28 + $0x10] sm:$0xff]  }
0x17f1   : > { %11010 = vmatprep.subr.bf16.mxu0 %v11009_v43  ;;  %9980 = vmatprep.subr.bf16.mxu1 %v11648_v41  ;;  %v11681_v40 = vld [vmem:[%s14338_s2 + $0x30] sm:$0xff]   ;;  %v11682_v41 = vld [vmem:[%s14338_s2 + $0x38] sm:$0xff]  }
0x17f2   : > { %11012 = vmatpush3.bf16.msra.mxu0 %v11009_v43  ;;  %v11652_v43 = vld [vmem:[%s14336_s28 + $0x50] sm:$0xff]  }
0x17f4   : > { %9981 = vmatpush3.bf16.msra.mxu1 %v11650_v42  ;;  %v11683_v42 = vld [vmem:[%s14338_s2 + $0x40] sm:$0xff]  }
0x17f5   : > { %10679 = vmatmul.mubr.msk.f32.vlgmr.msra.gmra.mrb[94].mxu0 %vm2385_vm5, %v11757_v46  ;;  %9982 = vmatprep.subr.bf16.mxu1 %v11652_v43  ;;  %v11656_v46 = vld [vmem:[%s14336_s28 + $0x58] sm:$0xff]   ;;  %v11684_v43 = vld [vmem:[%s14338_s2 + $0x48] sm:$0xff]  }
0x17f6   : > { %10697 = vmatprep.mubr.msk.f32.mxu0 %vm2385_vm5, %v11758_v51  ;;  %v11658_v51 = vld [vmem:[%s14336_s28 + $0x18] sm:$0xff]  }
0x17f8   : > { %9983 = vmatpush3.bf16.msra.mxu1 %v11654_v45  ;;  %v11685_v45 = vld [vmem:[%s14338_s2 + $0x50] sm:$0xff]  }
0x17f9   : > { %9984 = vmatprep.subr.bf16.mxu1 %v11656_v46  ;;  %v11686_v46 = vld [vmem:[%s14338_s2 + $0x58] sm:$0xff]  }
0x17fc   : > { %v6226_v47 = vpop.f32.mrb[108].mxu1  ;;  %9985 = vmatpush3.bf16.msra.mxu1 %v11658_v51  ;;  %v11687_v51 = vld [vmem:[%s14338_s2 + $0x60] sm:$0xff]  }
0x17fd   : > { %v10672_v48 = vpop.f32.mrb[109].mxu1 }
0x17fe   : > { %v6229_v49 = vpop.f32.mrb[110].mxu1  ;;  %v11662_v48 = vld [vmem:[%s14336_s28 + $0x20] sm:$0xff]  }
0x17ff   : > { %v11013_v52 = vpack.c.bf16 %v6229_v49, %v6226_v47  ;;  %v10673_v53 = vpop.f32.mrb[111].mxu1  ;;  %v11660_v47 = vld [vmem:[%s14336_s28 + $0x60] sm:$0xff]   ;;  %v11664_v49 = vld [vmem:[%s14336_s28 + $0x68] sm:$0xff]  }
0x1800   : > { %9986 = vmatprep.subr.bf16.mxu1 %v11660_v47  ;;  %v11668_v53 = vld [vmem:[%s14336_s28 + $0x70] sm:$0xff]   ;;  %v11688_v47 = vld [vmem:[%s14338_s2 + $0x68] sm:$0xff]  }
0x1801   : > { %11014 = vmatprep.subr.bf16.mxu0 %v11013_v52  ;;  %9987 = vmatpush3.bf16.msra.mxu1 %v11662_v48  ;;  %v11689_v48 = vld [vmem:[%s14338_s2 + $0x70] sm:$0xff]  }
0x1802   : > { %11016 = vmatpush3.bf16.msra.mxu0 %v11013_v52  ;;  %v11666_v52 = vld [vmem:[%s14336_s28 + $0x28] sm:$0xff]   ;;  %9988 = vmatprep.subr.bf16.mxu1 %v11664_v49  ;;  %v11690_v49 = vld [vmem:[%s14338_s2 + $0x78] sm:$0xff]  }
0x1805   : > { %10698 = vmatmul.mubr.msk.f32.vlgmr.msra.gmra.mrb[100].mxu0 %vm2385_vm5, %v11759_v54  ;;  %9989 = vmatpush3.bf16.msra.mxu1 %v11666_v52 }
0x1806   : > { %10702 = vmatprep.mubr.msk.bf16.mxu0 %vm2385_vm5, %v11760_v55  ;;  %9990 = vmatprep.subr.bf16.mxu1 %v11668_v53 }
0x180c   : > { %v6366_v56 = vpop.f32.mrb[112].mxu1 }
0x180d   : > { %v10691_v58 = vpop.f32.mrb[113].mxu1 }
0x180e   : > { %v6369_v59 = vpop.f32.mrb[114].mxu1 }
0x180f   : > { %v10692_v60 = vpop.f32.mrb[115].mxu1 }
0x18c8   : > { %v10680_v62 = vpop.f32.mrb[94].mxu0 }
0x18c9   : > { %v6370_v50 = vadd.f32 %v10680_v62, %v6369_v59  ;;  %v6299_v63 = vpop.f32.mrb[95].mxu0  ;;  %v11645_v59 = vld [vmem:[%s14336_s28 + $0x100] sm:$0xff]   ;;  %v11647_v62 = vld [vmem:[%s14336_s28 + $0x148] sm:$0xff]  }
0x18ca   : > { %v6367_v0 = vadd.f32 %v6366_v56, %v6299_v63  ;;  %v11651_v63 = vld [vmem:[%s14336_s28 + $0x150] sm:$0xff]  }
0x18d8   : > { %v10699_v57 = vpop.f32.mrb[100].mxu0 }
0x18d9   : > { %v6449_v4 = vadd.f32 %v10699_v57, %v6370_v50  ;;  %v6439_v10 = vpop.f32.mrb[101].mxu0  ;;  %v11649_v50 = vld [vmem:[%s14336_s28 + $0x108] sm:$0xff]  }
0x18da   : > { %v6448_v19 = vadd.f32 %v6439_v10, %v6367_v0  ;;  %v11653_v0 = vld [vmem:[%s14336_s28 + $0x110] sm:$0xff]   ;;  %v11661_v10 = vld [vmem:[%s14336_s28 + $0x120] sm:$0xff]  }
0x18db   : > { %v6458_v20 = vadd.f32 %v9334_v1, %v6449_v4  ;;  %v11657_v4 = vld [vmem:[%s14336_s28 + $0x118] sm:$0xff]  }
0x18dc   : > { %v6457_v21 = vadd.f32 %v9334_v1, %v6448_v19  ;;  %v11655_v1 = vld [vmem:[%s14336_s28 + $0x158] sm:$0xff]   ;;  %v11663_v19 = vld [vmem:[%s14336_s28 + $0x168] sm:$0xff]  }
0x18dd   : > { %v6460_v22 = vmax.f32 %v6458_v20, 0.0  ;;  %v11665_v20 = vld [vmem:[%s14336_s28 + $0x128] sm:$0xff]  }
0x18de   : > { %v6459_v3 = vmax.f32 %v6457_v21, 0.0  ;;  %v11667_v21 = vld [vmem:[%s14336_s28 + $0x170] sm:$0xff]  }
0x18df   : > { %v6462_v23 = vmul.f32 %v6460_v22, %v13402_v14  ;;  %v11767_v14 = vld [vmem:[#allocation38 + $0x20] ss:$8 sps:$4 sm:$0xff]  }
0x18e0   : > { %v6461_v24 = vmul.f32 %v6459_v3, %v13404_v18  ;;  %v11768_v18 = vld [vmem:[#allocation38 + $0x34] ss:$8 sps:$4 sm:$0xff]   ;;  %v11669_v22 = vld [vmem:[%s14336_s28 + $0x130] sm:$0xff]  }
0x18e1   : > { %v11670_v3 = vld [vmem:[%s14336_s28 + $0x30] sm:$0xff]  }
0x18e2   : > { %v6463_v25 = vpack.c.bf16 %v6462_v23, %v6461_v24  ;;  %9991 = vmatpush3.bf16.msra.mxu1 %v11670_v3  ;;  %v11671_v23 = vld [vmem:[%s14336_s28 + $0x178] sm:$0xff]  }
0x18e3   : > { %v11672_v24 = vld [vmem:[%s14336_s28 + $0x78] sm:$0xff]  }
0x18e4   : > { %10700 = vmatprep.subr.bf16.mxu0 %v6463_v25  ;;  %9992 = vmatprep.subr.bf16.mxu1 %v11672_v24  ;;  %v11692_v24 = vld [vmem:[%s14336_s28 + $0x80] sm:$0xff]  }
0x18e5   : > { %10701 = vmatpush3.bf16.msra.mxu0 %v6463_v25  ;;  %v11673_v25 = vld [vmem:[%s14336_s28 + $0x138] sm:$0xff]  }
0x18e6   : > { %6514 = vmatprep.subr.bf16.mxu0 %v11761_v5  ;;  %v11674_v5 = vld [vmem:[%s14336_s28 + $0x38] sm:$0xff]  }
0x18e7   : > { %9993 = vmatpush3.bf16.msra.mxu1 %v11674_v5 }
0x18e8   : > { %10703 = vmatmul.mubr.msk.bf16.vlgmr.msra.gmra.mrb[104].mxu0 %vm2385_vm5, %v11762_v27  ;;  %v11675_v27 = vld [vmem:[%s14337_s18] sm:$0xff]   ;;  %11017 = vmatprep.subr.bf16.mxu1 %v12642_v11  ;;  %s14339_s18 = sld [smem:[#allocation76_spill]] }
0x18e9   : > { %6515 = vmatpush1.bf16.msra.mxu0 %v11763_v6  ;;  %6546 = vmatprep.mubr.bf16.mxu0 %v12645_v15 }
0x18ea   : > { %6516 = vmatprep.subr.bf16.mxu0 %v11764_v44 }
0x18ed   : > { %6517 = vmatpush1.bf16.msra.mxu0 %v11765_v8 }
0x18ee   : > { %6518 = vmatprep.subr.bf16.mxu0 %v11766_v30  ;;  %s14340_s3 = smov %s14339_s18 }
0x18f1   : > { %6519 = vmatpush1.bf16.msra.mxu0 %v11767_v14 }
0x18f2   : > { %6520 = vmatprep.subr.bf16.mxu0 %v11768_v18 }
0x18f5   : > { %6521 = vmatpush1.bf16.msra.mxu0 %v11769_v9  ;;  %v11676_v9 = vld [vmem:[%s14338_s2 + $0x8] sm:$0xff]  }
0x18f6   : > { %6522 = vmatprep.subr.bf16.mxu0 %v11770_v31 }
0x18f9   : > { %6523 = vmatpush1.bf16.msra.mxu0 %v11771_v32 }
0x18fa   : > { %6524 = vmatprep.subr.bf16.mxu0 %v11772_v17  ;;  %v11677_v17 = vld [vmem:[%s14338_s2 + $0x10] sm:$0xff]  }
0x18fd   : > { %6525 = vmatpush1.bf16.msra.mxu0 %v11773_v33 }
0x18fe   : > { %6526 = vmatprep.subr.bf16.mxu0 %v11774_v34 }
0x1901   : > { %6527 = vmatpush1.bf16.msra.mxu0 %v11775_v35 }
0x1902   : > { %6528 = vmatprep.subr.bf16.mxu0 %v11776_v36 }
0x1905   : > { %6529 = vmatpush1.bf16.msra.mxu0 %v11777_v37  ;;  %v11678_v37 = vld [vmem:[%s14338_s2 + $0x18] sm:$0xff]  }
0x1906   : > { %10006 = vmatprep.subr.bf16.mxu0 %v11643_v38  ;;  %v11679_v38 = vld [vmem:[%s14338_s2 + $0x20] sm:$0xff]  }
0x19bb   : > { %v10704_v54 = vpop.f32.mrb[104].mxu0 }
0x19bc   : > { %v6498_v55 = vpop.f32.mrb[105].mxu0  ;;  %v6513_v57 = vpack.c.bf16 %v10704_v54, %v10704_v54 }
0x19bd   : > { %v10705_v56 = vpop.f32.mrb[106].mxu0 }
0x19be   : > { %v6501_v58 = vpop.f32.mrb[107].mxu0 }
0x19bf   : > { %v6512_v60 = vpack.c.bf16 %v6501_v58, %v6498_v55 }
0x19c1   : > { %6547 = vmatmul.mubr.bf16.vlgmr.msra.gmra.mrb[108].mxu0 %v6512_v60 }
0x19c2   : > { %6556 = vmatprep.mubr.bf16.mxu0 %v12645_v15  ;;  %10007 = vmatpush3.bf16.msra.mxu0 %v11645_v59  ;;  %v11659_v15 = vld [vmem:[%s14336_s28 + $0x160] sm:$0xff]  }
0x19c3   : > { %10008 = vmatprep.subr.bf16.mxu0 %v11647_v62 }
0x19c6   : > { %10009 = vmatpush3.bf16.msra.mxu0 %v11649_v50 }
0x19c7   : > { %10010 = vmatprep.subr.bf16.mxu0 %v11651_v63 }
0x19c9   : > { %6557 = vmatmul.mubr.bf16.gmra.mrb[112].mxu0 %v6513_v57 }
0x19ca   : > { %10011 = vmatpush3.bf16.msra.mxu0 %v11653_v0 }
0x19cb   : > { %10012 = vmatprep.subr.bf16.mxu0 %v11655_v1 }
0x19ce   : > { %10013 = vmatpush3.bf16.msra.mxu0 %v11657_v4 }
0x19cf   : > { %10014 = vmatprep.subr.bf16.mxu0 %v11659_v15 }
0x19d2   : > { %10015 = vmatpush3.bf16.msra.mxu0 %v11661_v10 }
0x19d3   : > { %10016 = vmatprep.subr.bf16.mxu0 %v11663_v19 }
0x19d6   : > { %10017 = vmatpush3.bf16.msra.mxu0 %v11665_v20  ;;  %v11691_v20 = vld [vmem:[%s14336_s28 + $0xc0] sm:$0xff]  }
0x19d7   : > { %10018 = vmatprep.subr.bf16.mxu0 %v11667_v21 }
0x19da   : > { %10019 = vmatpush3.bf16.msra.mxu0 %v11669_v22 }
0x19db   : > { %10020 = vmatprep.subr.bf16.mxu0 %v11671_v23 }
0x19de   : > { %10021 = vmatpush3.bf16.msra.mxu0 %v11673_v25 }
0x19df   : > { %10736 = vmatprep.subr.bf16.mxu0 %v11675_v27 }
0x1a94   : > { %v6548_v6 = vpop.f32.mrb[108].mxu0 }
0x1a95   : > { %v6550_v44 = vpop.f32.mrb[109].mxu0 }
0x1a96   : > { %v6552_v8 = vpop.f32.mrb[110].mxu0 }
0x1a97   : > { %v13862_v30 = vpack.c.bf16 %v6552_v8, %v6548_v6  ;;  %v6554_v14 = vpop.f32.mrb[111].mxu0  ;;  %v13914_v6 = vld [vmem:[#allocation2] sm:$0xff]  ;;  %v11695_v8 = vld [vmem:[%s14336_s28 + $0xd0] sm:$0xff]  }
0x1a98   : > { %v13864_v18 = vpack.c.bf16 %v6554_v14, %v6550_v44  ;;  %v11694_v44 = vld [vmem:[%s14336_s28 + $0x88] sm:$0xff]  }
0x1a99   : > { %v13922_v14 = vld [vmem:[#allocation2 + $0x8] sm:$0xff] }
0x1a9a   : > { %6729 = vmatprep.mubr.bf16.mxu1 %v13864_v18  ;;  %6939 = vmatprep.mubr.bf16.mxu0 %v13864_v18 }
0x1a9b   : > { %6730 = vmatmul.mubr.bf16.vlgmr.msra.gmra.mrb[116].mxu1 %v13862_v30  ;;  %6940 = vmatmul.mubr.bf16.vlgmr.msra.gmra.mrb[116].mxu0 %v13862_v30 }
0x1a9c   : > { %10737 = vmatpush3.bf16.msra.mxu0 %v11675_v27  ;;  %v6558_v31 = vpop.f32.mrb[112].mxu0  ;;  %v11693_v27 = vld [vmem:[%s14336_s28 + $0xc8] sm:$0xff]  }
0x1a9d   : > { %v6560_v32 = vpop.f32.mrb[113].mxu0  ;;  %10738 = vmatprep.subr.bf16.mxu0 %v11676_v9  ;;  %v13875_v36 = vpack.c.bf16 %v6558_v31, %v6558_v31  ;;  %v11697_v31 = vld [vmem:[%s14336_s28 + $0xd8] sm:$0xff]  }
0x1a9e   : > { %v13872_v33 = vpack.c.bf16 %v6560_v32, %v6560_v32  ;;  %v6562_v34 = vpop.f32.mrb[114].mxu0  ;;  %v13930_v32 = vld [vmem:[#allocation2 + $0x10] sm:$0xff] }
0x1a9f   : > { %v6563_v35 = vpop.f32.mrb[115].mxu0  ;;  %v11699_v34 = vld [vmem:[%s14336_s28 + $0xe0] sm:$0xff]  }
0x1aa0   : > { %10739 = vmatpush3.bf16.msra.mxu0 %v11676_v9  ;;  %6737 = vmatprep.mubr.bf16.mxu1 %v13872_v33  ;;  %v11696_v9 = vld [vmem:[%s14336_s28 + $0x90] sm:$0xff]   ;;  %v11700_v35 = vld [vmem:[%s14336_s28 + $0xa0] sm:$0xff]  }
0x1aa1   : > { %6947 = vmatprep.mubr.bf16.mxu0 %v13872_v33  ;;  %10740 = vmatprep.subr.bf16.mxu0 %v11677_v17 }
0x1aa3   : > { %6738 = vmatmul.mubr.bf16.gmra.mrb[120].mxu1 %v13875_v36  ;;  %6948 = vmatmul.mubr.bf16.gmra.mrb[120].mxu0 %v13875_v36 }
0x1aa4   : > { %10741 = vmatpush3.bf16.msra.mxu0 %v11677_v17  ;;  %10752 = vmatprep.mubr.bf16.mxu0 %v13785_v2  ;;  %v11698_v17 = vld [vmem:[%s14336_s28 + $0x98] sm:$0xff]  }
0x1aa5   : > { %10742 = vmatprep.subr.bf16.mxu0 %v11678_v37  ;;  %10712 = vmatprep.mubr.msk.f32.mxu1 %vm12644_vm1, %v12643_v12 }
0x1aa8   : > { %10743 = vmatpush3.bf16.msra.mxu0 %v11678_v37  ;;  %v11701_v37 = vld [vmem:[%s14336_s28 + $0xe8] sm:$0xff]  }
0x1aa9   : > { %10744 = vmatprep.subr.bf16.mxu0 %v11679_v38 }
0x1aac   : > { %10745 = vmatpush3.bf16.msra.mxu0 %v11679_v38  ;;  %v11702_v38 = vld [vmem:[%s14336_s28 + $0xa8] sm:$0xff]  }
0x1aad   : > { %10746 = vmatprep.subr.bf16.mxu0 %v11680_v39 }
0x1ab0   : > { %10747 = vmatpush3.bf16.msra.mxu0 %v11680_v39  ;;  %v11703_v39 = vld [vmem:[%s14336_s28 + $0xf0] sm:$0xff]  }
0x1ab1   : > { %10748 = vmatprep.subr.bf16.mxu0 %v11681_v40 }
0x1ab4   : > { %10749 = vmatpush3.bf16.msra.mxu0 %v11681_v40 }
0x1ab5   : > { %10750 = vmatprep.subr.bf16.mxu0 %v11682_v41 }
0x1ab8   : > { %10751 = vmatpush3.bf16.msra.mxu0 %v11682_v41 }
0x1ab9   : > { %10756 = vmatprep.subr.bf16.mxu0 %v11683_v42 }
0x1abb   : > { %10753 = vmatmul.mubr.bf16.vlgmr.msra.gmra.mrb[124].mxu0 %v13790_v13 }
0x1abc   : > { %10757 = vmatpush3.bf16.msra.mxu0 %v11683_v42  ;;  %10772 = vmatprep.mubr.bf16.mxu0 %v13785_v2 }
0x1abd   : > { %10758 = vmatprep.subr.bf16.mxu0 %v11684_v43 }
0x1ac0   : > { %10759 = vmatpush3.bf16.msra.mxu0 %v11684_v43  ;;  %v11704_v43 = vld [vmem:[%s14336_s28 + $0xb0] sm:$0xff]  }
0x1ac1   : > { %10760 = vmatprep.subr.bf16.mxu0 %v11685_v45 }
0x1ac4   : > { %10761 = vmatpush3.bf16.msra.mxu0 %v11685_v45  ;;  %v11705_v45 = vld [vmem:[%s14336_s28 + $0xf8] sm:$0xff]  }
0x1ac5   : > { %10762 = vmatprep.subr.bf16.mxu0 %v11686_v46 }
0x1ac8   : > { %10763 = vmatpush3.bf16.msra.mxu0 %v11686_v46 }
0x1ac9   : > { %10764 = vmatprep.subr.bf16.mxu0 %v11687_v51 }
0x1acc   : > { %10765 = vmatpush3.bf16.msra.mxu0 %v11687_v51  ;;  %v11706_v51 = vld [vmem:[%s14336_s28 + $0xb8] sm:$0xff]  }
0x1acd   : > { %10766 = vmatprep.subr.bf16.mxu0 %v11688_v47 }
0x1ad0   : > { %10767 = vmatpush3.bf16.msra.mxu0 %v11688_v47  ;;  %v11707_v47 = vld [vmem:[%s14338_s2 + $0x80] sm:$0xff]  }
0x1ad1   : > { %10768 = vmatprep.subr.bf16.mxu0 %v11689_v48 }
0x1ad4   : > { %10769 = vmatpush3.bf16.msra.mxu0 %v11689_v48  ;;  %v11709_v48 = vld [vmem:[%s14338_s2 + $0x90] sm:$0xff]  }
0x1ad5   : > { %10770 = vmatprep.subr.bf16.mxu0 %v11690_v49 }
0x1ad8   : > { %10771 = vmatpush3.bf16.msra.mxu0 %v11690_v49 }
0x1ad9   : > { %11023 = vmatprep.subr.bf16.mxu0 %v12642_v11 }
0x1adb   : > { %10773 = vmatmul.mubr.bf16.vlgmr.msra.gmra.mrb[128].mxu0 %v13790_v13 }
0x1adc   : > { %10802 = vmatprep.mubr.msk.f32.mxu0 %vm12644_vm1, %v12643_v12 }
0x1b6e   : > { %v9994_v52 = vpop.f32.mrb[116].mxu1  ;;  %v10022_v53 = vpop.f32.mrb[116].mxu0 }
0x1b6f   : > { %v9995_v54 = vpop.f32.mrb[117].mxu1  ;;  %v10023_v55 = vpop.f32.mrb[117].mxu0 }
0x1b70   : > { %v9996_v56 = vadd.f32 %v9995_v54, %v9994_v52  ;;  %v13902_v58 = vadd.f32 %v10023_v55, %v10022_v53  ;;  %v9997_v59 = vpop.f32.mrb[118].mxu1  ;;  %v10025_v60 = vpop.f32.mrb[118].mxu0  ;;  %v13977_v52 = vld [vmem:[#allocation5 + $0x8] sm:$0xff]  ;;  %v11710_v55 = vld [vmem:[%s14338_s2 + $0x98] sm:$0xff]  }
0x1b71   : > { %v9998_v62 = vpop.f32.mrb[119].mxu1  ;;  %v10026_v50 = vpop.f32.mrb[119].mxu0 }
0x1b72   : > { %v9999_v63 = vadd.f32 %v9998_v62, %v9997_v59  ;;  %v13904_v0 = vadd.f32 %v10026_v50, %v10025_v60  ;;  %v11712_v59 = vld [vmem:[%s14338_s2 + $0xa8] sm:$0xff]   ;;  %v11713_v60 = vld [vmem:[%s14338_s2 + $0xb0] sm:$0xff]   ;;  %v11714_v62 = vld [vmem:[%s14338_s2 + $0xb8] sm:$0xff]  }
0x1b73   : > { %v11718_v50 = vld [vmem:[%s14340_s3 + $0x8] sm:$0xff]  }
0x1b74   : > { %v11018_v57 = vpack.c.bf16 %v9999_v63, %v9996_v56  ;;  %v11021_v1 = vpack.c.bf16 %v13904_v0, %v13902_v58  ;;  %v13984_v56 = vld [vmem:[#allocation5 + $0x10] sm:$0xff]  ;;  %v11711_v58 = vld [vmem:[%s14338_s2 + $0xa0] sm:$0xff]   ;;  %v11720_v63 = vld [vmem:[%s14340_s3 + $0x10] sm:$0xff]  }
0x1b75   : > { %v11722_v0 = vld [vmem:[%s14340_s3 + $0x18] sm:$0xff]  }
0x1b76   : > { %v10000_v4 = vpop.f32.mrb[120].mxu1  ;;  %v10028_v15 = vpop.f32.mrb[120].mxu0  ;;  %11019 = vmatpush3.bf16.msra.mxu1 %v11018_v57 }
0x1b77   : > { %v10001_v10 = vpop.f32.mrb[121].mxu1  ;;  %v10029_v19 = vpop.f32.mrb[121].mxu0  ;;  %10710 = vmatprep.subr.mxu1 %v12643_v12 }
0x1b78   : > { %v10002_v21 = vadd.f32 %v10001_v10, %v10000_v4  ;;  %v13910_v22 = vadd.f32 %v10029_v19, %v10028_v15  ;;  %v10003_v3 = vpop.f32.mrb[122].mxu1  ;;  %v10031_v23 = vpop.f32.mrb[122].mxu0 }
0x1b79   : > { %v10004_v25 = vpop.f32.mrb[123].mxu1  ;;  %v10032_v5 = vpop.f32.mrb[123].mxu0 }
0x1b7a   : > { %10711 = vmatpush3.msra.mxu1 %v10002_v21 }
0x1b7b   : > { %10713 = vmatmul.mubr.msk.f32.vlgmr.msra.gmra.mrb[124].mxu1 %vm1774_vm2, %v13914_v6  ;;  %10040 = vmatprep.subr.bf16.mxu1 %v11691_v20 }
0x1b7c   : > { %10041 = vmatpush3.bf16.msra.mxu1 %v11692_v24  ;;  %10715 = vmatprep.mubr.msk.f32.mxu1 %vm12644_vm1, %v12643_v12 }
0x1b7d   : > { %10042 = vmatprep.subr.bf16.mxu1 %v11693_v27 }
0x1b7f   : > { %10716 = vmatmul.mubr.msk.f32.gmra.mrb[126].mxu1 %vm1774_vm2, %v13922_v14 }
0x1b80   : > { %10043 = vmatpush3.bf16.msra.mxu1 %v11694_v44  ;;  %10718 = vmatprep.mubr.msk.f32.mxu1 %vm12644_vm1, %v12643_v12 }
0x1b81   : > { %10044 = vmatprep.subr.bf16.mxu1 %v11695_v8 }
0x1b83   : > { %10719 = vmatmul.mubr.msk.f32.gmra.mrb[128].mxu1 %vm1774_vm2, %v13930_v32 }
0x1b84   : > { %10045 = vmatpush3.bf16.msra.mxu1 %v11696_v9  ;;  %7163 = vmatprep.mubr.bf16.mxu1 %v13864_v18 }
0x1b85   : > { %10046 = vmatprep.subr.bf16.mxu1 %v11697_v31 }
0x1b88   : > { %10047 = vmatpush3.bf16.msra.mxu1 %v11698_v17 }
0x1b89   : > { %10048 = vmatprep.subr.bf16.mxu1 %v11699_v34 }
0x1b8c   : > { %10049 = vmatpush3.bf16.msra.mxu1 %v11700_v35 }
0x1b8d   : > { %10050 = vmatprep.subr.bf16.mxu1 %v11701_v37 }
0x1b8e   : > { %v10754_v40 = vpop.f32.mrb[124].mxu0 }
0x1b8f   : > { %v7360_v41 = vpop.f32.mrb[125].mxu0 }
0x1b90   : > { %v10755_v42 = vpop.f32.mrb[126].mxu0  ;;  %10051 = vmatpush3.bf16.msra.mxu1 %v11702_v38 }
0x1b91   : > { %v7363_v18 = vpop.f32.mrb[127].mxu0  ;;  %10052 = vmatprep.subr.bf16.mxu1 %v11703_v39 }
0x1b92   : > { %v11024_v46 = vpack.c.bf16 %v7363_v18, %v7360_v41 }
0x1b94   : > { %11025 = vmatpush3.bf16.msra.mxu0 %v11024_v46  ;;  %10053 = vmatpush3.bf16.msra.mxu1 %v11704_v43 }
0x1b95   : > { %10800 = vmatprep.subr.mxu0 %v12643_v12  ;;  %10054 = vmatprep.subr.bf16.mxu1 %v11705_v45 }
0x1b98   : > { %10801 = vmatpush3.msra.mxu0 %v10754_v40  ;;  %10055 = vmatpush3.bf16.msra.mxu1 %v11706_v51 }
0x1b99   : > { %11020 = vmatprep.subr.bf16.mxu1 %v12642_v11  ;;  %10803 = vmatmul.mubr.msk.f32.vlgmr.msra.gmra.mrb[102].mxu0 %vm1774_vm2, %v13914_v6 }
0x1b9a   : > { %10805 = vmatprep.mubr.msk.f32.mxu0 %vm12644_vm1, %v12643_v12 }
0x1b9b   : > { %7164 = vmatmul.mubr.bf16.vlgmr.msra.gmra.mrb[132].mxu1 %v13862_v30  ;;  %v11708_v30 = vld [vmem:[%s14338_s2 + $0x88] sm:$0xff]   ;;  %s9584_s2 = sshll.u32 %s12890_s22, 4 }
0x1b9c   : > { %7171 = vmatprep.mubr.bf16.mxu1 %v13872_v33  ;;  %11022 = vmatpush3.bf16.msra.mxu1 %v11021_v1  ;;  %v13968_v33 = vld [vmem:[#allocation5] sm:$0xff]  ;;  %s14115_s5 = scalar_lea.hbm %s12867_s4, %s9584_s2 }
0x1b9d   : > { %10725 = vmatprep.subr.mxu1 %v12643_v12  ;;  %10806 = vmatmul.mubr.msk.f32.gmra.mrb[132].mxu0 %vm1774_vm2, %v13922_v14 }
0x1b9e   : > { %10808 = vmatprep.mubr.msk.f32.mxu0 %vm12644_vm1, %v12643_v12 }
0x1ba0   : > { %10726 = vmatpush3.msra.mxu1 %v13910_v22 }
0x1ba1   : > { %10776 = vmatprep.subr.bf16.mxu1 %v11707_v47  ;;  %10809 = vmatmul.mubr.msk.f32.gmra.mrb[134].mxu0 %vm1774_vm2, %v13930_v32 }
0x1ba3   : > { %7172 = vmatmul.mubr.bf16.gmra.mrb[136].mxu1 %v13875_v36 }
0x1ba4   : > { %10727 = vmatprep.mubr.msk.f32.mxu1 %vm12644_vm1, %v12643_v12 }
0x1bab   : > { %10728 = vmatmul.mubr.msk.f32.vlgmr.msra.gmra.mrb[124].mxu1 %vm1774_vm2, %v13968_v33 }
0x1bac   : > { %10777 = vmatpush3.bf16.msra.mxu1 %v11707_v47  ;;  %10730 = vmatprep.mubr.msk.f32.mxu1 %vm12644_vm1, %v12643_v12 }
0x1bad   : > { %10778 = vmatprep.subr.bf16.mxu1 %v11708_v30 }
0x1bae   : > { %v13975_v49 = vpop.f32.mrb[128].mxu0 }
0x1baf   : > { %v7473_v36 = vpop.f32.mrb[129].mxu0  ;;  %10731 = vmatmul.mubr.msk.f32.gmra.mrb[126].mxu1 %vm1774_vm2, %v13977_v52 }
0x1bb0   : > { %v10775_v53 = vpop.f32.mrb[130].mxu0  ;;  %10779 = vmatpush3.bf16.msra.mxu1 %v11708_v30  ;;  %10733 = vmatprep.mubr.msk.f32.mxu1 %vm12644_vm1, %v12643_v12 }
0x1bb1   : > { %v7476_v54 = vpop.f32.mrb[131].mxu0  ;;  %10780 = vmatprep.subr.bf16.mxu1 %v11709_v48  ;;  %v11717_v53 = vld [vmem:[%s14340_s3 + $0x88] sm:$0xff]  }
0x1bb3   : > { %10734 = vmatmul.mubr.msk.f32.gmra.mrb[128].mxu1 %vm1774_vm2, %v13984_v56 }
0x1bb4   : > { %10781 = vmatpush3.bf16.msra.mxu1 %v11709_v48  ;;  %10792 = vmatprep.mubr.bf16.mxu1 %v13785_v2  ;;  %v11716_v2 = vld [vmem:[%s14339_s18] sm:$0xff]   ;;  %s12646_s18 = smov 80  }
0x1bb5   : > { %10782 = vmatprep.subr.bf16.mxu1 %v11710_v55  ;;  %10826 = vmatprep.subr.bf16.mxu0 %v11716_v2 }
0x1bb6   : > { %10827 = vmatpush3.bf16.msra.mxu0 %v11716_v2  ;;  %v11728_v2 = vld [vmem:[%s14340_s3 + $0x30] sm:$0xff]  }
0x1bb7   : > { %10828 = vmatprep.subr.bf16.mxu0 %v11718_v50 }
0x1bb8   : > { %10783 = vmatpush3.bf16.msra.mxu1 %v11710_v55  ;;  %v11723_v55 = vld [vmem:[%s14340_s3 + $0xa0] sm:$0xff]  }
0x1bb9   : > { %10784 = vmatprep.subr.bf16.mxu1 %v11711_v58 }
0x1bba   : > { %10829 = vmatpush3.bf16.msra.mxu0 %v11718_v50  ;;  %v11729_v50 = vld [vmem:[%s14340_s3 + $0xb8] sm:$0xff]  }
0x1bbb   : > { %10830 = vmatprep.subr.bf16.mxu0 %v11720_v63 }
0x1bbc   : > { %10785 = vmatpush3.bf16.msra.mxu1 %v11711_v58  ;;  %v11724_v58 = vld [vmem:[%s14340_s3 + $0x20] sm:$0xff]  }
0x1bbd   : > { %10786 = vmatprep.subr.bf16.mxu1 %v11712_v59 }
0x1bbe   : > { %10831 = vmatpush3.bf16.msra.mxu0 %v11720_v63  ;;  %v11730_v63 = vld [vmem:[%s14340_s3 + $0x38] sm:$0xff]  }
0x1bbf   : > { %10832 = vmatprep.subr.bf16.mxu0 %v11722_v0 }
0x1bc0   : > { %10787 = vmatpush3.bf16.msra.mxu1 %v11712_v59  ;;  %v11725_v59 = vld [vmem:[%s14340_s3 + $0xa8] sm:$0xff]  }
0x1bc1   : > { %10788 = vmatprep.subr.bf16.mxu1 %v11713_v60 }
0x1bc2   : > { %10833 = vmatpush3.bf16.msra.mxu0 %v11722_v0  ;;  %v11731_v0 = vld [vmem:[%s14340_s3 + $0x40] sm:$0xff]  }
0x1bc3   : > { %10834 = vmatprep.subr.bf16.mxu0 %v11724_v58 }
0x1bc4   : > { %10789 = vmatpush3.bf16.msra.mxu1 %v11713_v60  ;;  %v11726_v60 = vld [vmem:[%s14340_s3 + $0x28] sm:$0xff]  }
0x1bc5   : > { %10790 = vmatprep.subr.bf16.mxu1 %v11714_v62 }
0x1bc6   : > { %10835 = vmatpush3.bf16.msra.mxu0 %v11724_v58  ;;  %v8305_v58 = vld [vmem:[%s12857_s30 + $0x20] sm:$0xff] }
0x1bc7   : > { %10836 = vmatprep.subr.bf16.mxu0 %v11726_v60 }
0x1bc8   : > { %10791 = vmatpush3.bf16.msra.mxu1 %v11714_v62  ;;  %v11727_v62 = vld [vmem:[%s14340_s3 + $0xb0] sm:$0xff]  }
0x1bc9   : > { %11026 = vmatprep.subr.bf16.mxu1 %v12642_v11 }
0x1bca   : > { %10837 = vmatpush3.bf16.msra.mxu0 %v11726_v60  ;;  %v8308_v60 = vld [vmem:[%s12857_s30 + $0x38] sm:$0xff] }
0x1bcb   : > { %10793 = vmatmul.mubr.bf16.vlgmr.msra.gmra.mrb[140].mxu1 %v13790_v13  ;;  %10838 = vmatprep.subr.bf16.mxu0 %v11728_v2 }
0x1bcc   : > { %10817 = vmatprep.mubr.msk.f32.mxu1 %vm12644_vm1, %v12643_v12 }
0x1bce   : > { %10839 = vmatpush3.bf16.msra.mxu0 %v11728_v2 }
0x1bcf   : > { %10840 = vmatprep.subr.bf16.mxu0 %v11730_v63 }
0x1bd2   : > { %10841 = vmatpush3.bf16.msra.mxu0 %v11730_v63  ;;  %v8310_v63 = vld [vmem:[%s12857_s30 + $0x48] sm:$0xff] }
0x1bd3   : > { %11029 = vmatprep.subr.bf16.mxu0 %v12642_v11 }
0x1c6c   : > { %v7669_v57 = vpop.f32.mrb[102].mxu0 }
0x1c6d   : > { %v10804_v1 = vpop.f32.mrb[103].mxu0 }
0x1c6e   : > { %v10056_v4 = vpop.f32.mrb[132].mxu1  ;;  %v9517_v1 = vld [vmem:[#allocation32] ss:$0 sm:$0xff] }
0x1c6f   : > { %v10057_v15 = vpop.f32.mrb[133].mxu1 }
0x1c70   : > { %v10058_v13 = vadd.f32 %v10057_v15, %v10056_v4  ;;  %v10059_v10 = vpop.f32.mrb[134].mxu1  ;;  %v7674_v19 = vpop.f32.mrb[132].mxu0 }
0x1c71   : > { %v10060_v20 = vpop.f32.mrb[135].mxu1  ;;  %v10807_v21 = vpop.f32.mrb[133].mxu0 }
0x1c72   : > { %v10061_v22 = vadd.f32 %v10060_v20, %v10059_v10 }
0x1c74   : > { %v7679_v3 = vpop.f32.mrb[134].mxu0 }
0x1c75   : > { %v10810_v23 = vpop.f32.mrb[135].mxu0 }
0x1c76   : > { %v10062_v24 = vpop.f32.mrb[136].mxu1 }
0x1c77   : > { %v10063_v25 = vpop.f32.mrb[137].mxu1 }
0x1c78   : > { %v10064_v5 = vadd.f32 %v10063_v25, %v10062_v24  ;;  %v10065_v27 = vpop.f32.mrb[138].mxu1 }
0x1c79   : > { %v10066_v44 = vpop.f32.mrb[139].mxu1 }
0x1c7e   : > { %v7245_v8 = vpop.f32.mrb[124].mxu1 }
0x1c7f   : > { %v11054_v9 = vadd.f32 %v10058_v13, %v7245_v8  ;;  %v10729_v31 = vpop.f32.mrb[125].mxu1 }
0x1c81   : > { %v7600_v17 = vadd.f32 %v11054_v9, %v7473_v36  ;;  %v11715_v36 = vld [vmem:[%s14340_s3 + $0x80] sm:$0xff]  }
0x1c82   : > { %v7250_v34 = vpop.f32.mrb[126].mxu1 }
0x1c83   : > { %v11055_v35 = vadd.f32 %v10061_v22, %v7250_v34  ;;  %v14001_v37 = vadd.f32 %v7669_v57, %v7600_v17  ;;  %v10732_v38 = vpop.f32.mrb[127].mxu1  ;;  %v11732_v34 = vld [vmem:[%s14340_s3 + $0x48] sm:$0xff]  }
0x1c84   : > { %v11735_v38 = vld [vmem:[%s14340_s3 + $0x60] sm:$0xff]  }
0x1c85   : > { %v7601_v39 = vadd.f32 %v11055_v35, %v7476_v54  ;;  %v11721_v54 = vld [vmem:[%s14340_s3 + $0x98] sm:$0xff]   ;;  %v11733_v35 = vld [vmem:[%s14340_s3 + $0x50] sm:$0xff]  }
0x1c86   : > { %v7255_v40 = vpop.f32.mrb[128].mxu1 }
0x1c87   : > { %v11056_v41 = vadd.f32 %v10064_v5, %v7255_v40  ;;  %v7684_v42 = vadd.f32 %v7674_v19, %v7601_v39  ;;  %v10735_v43 = vpop.f32.mrb[129].mxu1  ;;  %v11736_v39 = vld [vmem:[%s14340_s3 + $0x68] sm:$0xff]   ;;  %v11737_v40 = vld [vmem:[%s14340_s3 + $0x70] sm:$0xff]  }
0x1c89   : > { %v7602_v18 = vadd.f32 %v11056_v41, %v13975_v49  ;;  %v11719_v49 = vld [vmem:[%s14340_s3 + $0x90] sm:$0xff]   ;;  %v11738_v41 = vld [vmem:[%s14340_s3 + $0x78] sm:$0xff]  }
0x1c8b   : > { %v14004_v45 = vadd.f32 %v7679_v3, %v7602_v18 }
0x1c9e   : > { %v10794_v46 = vpop.f32.mrb[140].mxu1 }
0x1c9f   : > { %v7586_v51 = vpop.f32.mrb[141].mxu1 }
0x1ca0   : > { %v10795_v47 = vpop.f32.mrb[142].mxu1 }
0x1ca1   : > { %v7589_v30 = vpop.f32.mrb[143].mxu1 }
0x1ca2   : > { %v11027_v48 = vpack.c.bf16 %v7589_v30, %v7586_v51 }
0x1ca4   : > { %11028 = vmatpush3.bf16.msra.mxu1 %v11027_v48 }
0x1ca5   : > { %10815 = vmatprep.subr.mxu1 %v12643_v12 }
0x1ca8   : > { %10816 = vmatpush3.msra.mxu1 %v10794_v46 }
0x1ca9   : > { %10818 = vmatmul.mubr.msk.f32.vlgmr.msra.gmra.mrb[130].mxu1 %vm1774_vm2, %v13968_v33  ;;  %10846 = vmatprep.subr.bf16.mxu1 %v11715_v36 }
0x1caa   : > { %10820 = vmatprep.mubr.msk.f32.mxu1 %vm12644_vm1, %v12643_v12  ;;  %10847 = vmatpush3.bf16.msra.mxu1 %v11715_v36 }
0x1cab   : > { %10848 = vmatprep.subr.bf16.mxu1 %v11717_v53 }
0x1cad   : > { %10821 = vmatmul.mubr.msk.f32.gmra.mrb[144].mxu1 %vm1774_vm2, %v13977_v52 }
0x1cae   : > { %10823 = vmatprep.mubr.msk.f32.mxu1 %vm12644_vm1, %v12643_v12  ;;  %10849 = vmatpush3.bf16.msra.mxu1 %v11717_v53  ;;  %v8302_v53 = vld [vmem:[%s12857_s30 + $0x8] sm:$0xff] }
0x1caf   : > { %10850 = vmatprep.subr.bf16.mxu1 %v11719_v49 }
0x1cb1   : > { %10824 = vmatmul.mubr.msk.f32.gmra.mrb[146].mxu1 %vm1774_vm2, %v13984_v56 }
0x1cb2   : > { %10851 = vmatpush3.bf16.msra.mxu1 %v11719_v49 }
0x1cb3   : > { %10852 = vmatprep.subr.bf16.mxu1 %v11721_v54 }
0x1cb6   : > { %10853 = vmatpush3.bf16.msra.mxu1 %v11721_v54  ;;  %v8304_v54 = vld [vmem:[%s12857_s30 + $0x18] sm:$0xff] }
0x1cb7   : > { %10854 = vmatprep.subr.bf16.mxu1 %v11723_v55 }
0x1cba   : > { %10855 = vmatpush3.bf16.msra.mxu1 %v11723_v55 }
0x1cbb   : > { %10856 = vmatprep.subr.bf16.mxu1 %v11725_v59 }
0x1cbe   : > { %10857 = vmatpush3.bf16.msra.mxu1 %v11725_v59 }
0x1cbf   : > { %10858 = vmatprep.subr.bf16.mxu1 %v11727_v62 }
0x1cc2   : > { %10859 = vmatpush3.bf16.msra.mxu1 %v11727_v62 }
0x1cc3   : > { %10860 = vmatprep.subr.bf16.mxu1 %v11729_v50 }
0x1cc6   : > { %10861 = vmatpush3.bf16.msra.mxu1 %v11729_v50 }
0x1cc7   : > { %10881 = vmatprep.subr.bf16.mxu1 %v11731_v0 }
0x1d7c   : > { %v7752_v57 = vpop.f32.mrb[130].mxu1 }
0x1d7d   : > { %v7766_v4 = vadd.f32 %v7752_v57, %v14001_v37  ;;  %v10819_v15 = vpop.f32.mrb[131].mxu1  ;;  %v11734_v37 = vld [vmem:[%s14340_s3 + $0x58] sm:$0xff]   ;;  %s8467_s3 = sshll.u32 %s13524_s0, 4  ;;  %s8468_s3 = int_to_ptr.vmem [resolvable:$true] %s8467_s3 }
0x1d7e   : > { %s12456_s10 = scalar_lea.vmem %s8468_s3, 16  ;;  %p12463_p9 = scmp.lt.s32.totalorder %s8468_s3, %s12461_s12 }
0x1d7f   : > { %v7776_v13 = vadd.f32 %v9517_v1, %v7766_v4  ;;  %p12457_p13 = scmp.ne.s32.totalorder %s8468_s3, %s12456_s10  ;;  %p12464_p10 = scmp.lt.s32.totalorder %s12462_s13, %s12456_s10 }
0x1d80   : > { %v7757_v10 = vpop.f32.mrb[144].mxu1 }
0x1d81   : > { %v7767_v19 = vadd.f32 %v7757_v10, %v7684_v42  ;;  %v10822_v20 = vpop.f32.mrb[145].mxu1  ;;  %v7779_v21 = vmax.f32 %v7776_v13, 0.0  ;;  %p12458_p0 = pnand %p12457_p13, %p14342_p6  ;;  %p12465_p12 = por %p12464_p10, %p12463_p9 }
0x1d83   : > { %v7777_v22 = vadd.f32 %v9517_v1, %v7767_v19  ;;  %v7782_v5 = vmul.f32 %v7779_v21, %v13346_v61  ;;  %p12459_p5 = pneg %p12458_p0 }
0x1d84   : > { %v7762_v3 = vpop.f32.mrb[146].mxu1 }
0x1d85   : > { %v7780_v23 = vmax.f32 %v7777_v22, 0.0  ;;  %v7768_v24 = vadd.f32 %v7762_v3, %v14004_v45  ;;  %v10825_v25 = vpop.f32.mrb[147].mxu1  ;;  %p12466_p1 = pnand %p12465_p12, %p12459_p5 }
0x1d87   : > { %v7783_v27 = vmul.f32 %v7780_v23, %v13348_v7  ;;  %v7778_v44 = vadd.f32 %v9517_v1, %v7768_v24 }
0x1d89   : > { %v7781_v8 = vmax.f32 %v7778_v44, 0.0  ;;  %v7785_v9 = vpack.c.bf16 %v7783_v27, %v7782_v5  ;;  %v9580_v5 = vld [vmem:[#allocation34] ss:$0 sm:$0xff] }
0x1d8b   : > { %v7784_v31 = vmul.f32 %v7781_v8, %v13352_v16  ;;  %10842 = vmatprep.mubr.bf16.mxu0 %v7785_v9  ;;  %10862 = vmatprep.mubr.bf16.mxu1 %v7785_v9 }
0x1d8d   : > { %v7786_v17 = vpack.c.bf16 %v7784_v31, %v7784_v31 }
0x1d8f   : > { %10843 = vmatmul.mubr.bf16.vlgmr.msra.gmra.mrb[136].mxu0 %v7786_v17  ;;  %10863 = vmatmul.mubr.bf16.vlgmr.msra.gmra.mrb[148].mxu1 %v7786_v17 }
0x1d90   : > { %10882 = vmatpush3.bf16.msra.mxu1 %v11731_v0  ;;  %10897 = vmatprep.mubr.bf16.mxu1 %v7785_v9  ;;  %v9291_v0 = vld [vmem:[#allocation25] ss:$0 sm:$0xff] }
0x1d91   : > { %10883 = vmatprep.subr.bf16.mxu1 %v11732_v34  ;;  %10872 = vmatprep.mubr.msk.f32.mxu0 %vm12644_vm1, %v12643_v12  ;;  %v5582_v15 = vadd.f32 %v9291_v0, %v13751_v28  ;;  %v5583_v13 = vadd.f32 %v9291_v0, %v13759_v29  ;;  %v5584_v10 = vadd.f32 %v9291_v0, %v13749_v26 }
0x1d93   : > { %v14098_v19 = vmul.f32 %v5583_v13, %v13348_v7 }
0x1d94   : > { %10884 = vmatpush3.bf16.msra.mxu1 %v11732_v34 }
0x1d95   : > { %10885 = vmatprep.subr.bf16.mxu1 %v11733_v35 }
0x1d98   : > { %10886 = vmatpush3.bf16.msra.mxu1 %v11733_v35 }
0x1d99   : > { %10887 = vmatprep.subr.bf16.mxu1 %v11734_v37 }
0x1d9c   : > { %10888 = vmatpush3.bf16.msra.mxu1 %v11734_v37 }
0x1d9d   : > { %10889 = vmatprep.subr.bf16.mxu1 %v11735_v38 }
0x1da0   : > { %10890 = vmatpush3.bf16.msra.mxu1 %v11735_v38 }
0x1da1   : > { %10891 = vmatprep.subr.bf16.mxu1 %v11736_v39 }
0x1da4   : > { %10892 = vmatpush3.bf16.msra.mxu1 %v11736_v39 }
0x1da5   : > { %10893 = vmatprep.subr.bf16.mxu1 %v11737_v40 }
0x1da8   : > { %10894 = vmatpush3.bf16.msra.mxu1 %v11737_v40 }
0x1da9   : > { %10895 = vmatprep.subr.bf16.mxu1 %v11738_v41 }
0x1dac   : > { %10896 = vmatpush3.bf16.msra.mxu1 %v11738_v41 }
0x1daf   : > { %10898 = vmatmul.mubr.bf16.vlgmr.msra.gmra.mrb[152].mxu1 %v7786_v17 }
0x1e62   : > { %v10844_v42 = vpop.f32.mrb[136].mxu0  ;;  %v10864_v43 = vpop.f32.mrb[148].mxu1 }
0x1e63   : > { %v7885_v18 = vpop.f32.mrb[137].mxu0  ;;  %v8015_v45 = vpop.f32.mrb[149].mxu1 }
0x1e64   : > { %v10845_v46 = vpop.f32.mrb[138].mxu0  ;;  %v10865_v51 = vpop.f32.mrb[150].mxu1 }
0x1e65   : > { %v7888_v47 = vpop.f32.mrb[139].mxu0  ;;  %v8018_v30 = vpop.f32.mrb[151].mxu1 }
0x1e66   : > { %v11030_v48 = vpack.c.bf16 %v7888_v47, %v7885_v18  ;;  %v11033_v36 = vpack.c.bf16 %v8018_v30, %v8015_v45 }
0x1e68   : > { %11031 = vmatpush3.bf16.msra.mxu0 %v11030_v48 }
0x1e69   : > { %10870 = vmatprep.subr.mxu0 %v12643_v12 }
0x1e6c   : > { %10871 = vmatpush3.msra.mxu0 %v10844_v42 }
0x1e6d   : > { %10873 = vmatmul.mubr.msk.f32.vlgmr.msra.gmra.mrb[140].mxu0 %vm1774_vm2, %v13914_v6  ;;  %11032 = vmatprep.subr.bf16.mxu0 %v12642_v11  ;;  %v8301_v6 = vld [vmem:[%s12857_s30] sm:$0xff] }
0x1e6e   : > { %11034 = vmatpush3.bf16.msra.mxu0 %v11033_v36  ;;  %10875 = vmatprep.mubr.msk.f32.mxu0 %vm12644_vm1, %v12643_v12  ;;  %v11036_v49 = vpack.c.bf16 %v8302_v53, %v8301_v6 }
0x1e6f   : > { %10905 = vmatprep.subr.mxu0 %v12643_v12 }
0x1e71   : > { %10876 = vmatmul.mubr.msk.f32.gmra.mrb[142].mxu0 %vm1774_vm2, %v13922_v14  ;;  %v8303_v14 = vld [vmem:[%s12857_s30 + $0x10] sm:$0xff] }
0x1e72   : > { %10906 = vmatpush3.msra.mxu0 %v10864_v43  ;;  %10878 = vmatprep.mubr.msk.f32.mxu0 %vm12644_vm1, %v12643_v12  ;;  %v11039_v55 = vpack.c.bf16 %v8304_v54, %v8303_v14 }
0x1e73   : > { %11035 = vmatprep.subr.bf16.mxu0 %v12642_v11 }
0x1e75   : > { %10879 = vmatmul.mubr.msk.f32.gmra.mrb[144].mxu0 %vm1774_vm2, %v13930_v32  ;;  %v8306_v32 = vld [vmem:[%s12857_s30 + $0x28] sm:$0xff] }
0x1e76   : > { %10907 = vmatprep.mubr.msk.f32.mxu0 %vm12644_vm1, %v12643_v12  ;;  %v11042_v59 = vpack.c.bf16 %v8306_v32, %v8305_v58 }
0x1e79   : > { %10908 = vmatmul.mubr.msk.f32.vlgmr.msra.gmra.mrb[146].mxu0 %vm1774_vm2, %v13968_v33  ;;  %v8307_v33 = vld [vmem:[%s12857_s30 + $0x30] sm:$0xff] }
0x1e7a   : > { %11037 = vmatpush3.bf16.msra.mxu0 %v11036_v49  ;;  %10910 = vmatprep.mubr.msk.f32.mxu0 %vm12644_vm1, %v12643_v12  ;;  %v11045_v2 = vpack.c.bf16 %v8308_v60, %v8307_v33 }
0x1e7b   : > { %11038 = vmatprep.subr.bf16.mxu0 %v12642_v11 }
0x1e7d   : > { %10911 = vmatmul.mubr.msk.f32.gmra.mrb[148].mxu0 %vm1774_vm2, %v13977_v52  ;;  %v8309_v52 = vld [vmem:[%s12857_s30 + $0x40] sm:$0xff] }
0x1e7e   : > { %11040 = vmatpush3.bf16.msra.mxu0 %v11039_v55  ;;  %10913 = vmatprep.mubr.msk.f32.mxu0 %vm12644_vm1, %v12643_v12  ;;  %v11048_v4 = vpack.c.bf16 %v8310_v63, %v8309_v52 }
0x1e7f   : > { %11041 = vmatprep.subr.bf16.mxu0 %v12642_v11 }
0x1e81   : > { %10914 = vmatmul.mubr.msk.f32.gmra.mrb[150].mxu0 %vm1774_vm2, %v13984_v56  ;;  %v14089_v56 = vmul.f32 %v5582_v15, %v13346_v61 }
0x1e82   : > { %v10899_v62 = vpop.f32.mrb[152].mxu1  ;;  %11043 = vmatpush3.bf16.msra.mxu0 %v11042_v59  ;;  %10936 = vmatprep.mubr.msk.f32.mxu0 %vm12644_vm1, %v12643_v12 }
0x1e83   : > { %v8191_v50 = vpop.f32.mrb[153].mxu1  ;;  %11044 = vmatprep.subr.bf16.mxu0 %v12642_v11 }
0x1e84   : > { %v10900_v57 = vpop.f32.mrb[154].mxu1 }
0x1e85   : > { %v8194_v1 = vpop.f32.mrb[155].mxu1 }
0x1e86   : > { %11046 = vmatpush3.bf16.msra.mxu0 %v11045_v2 }
0x1e87   : > { %11047 = vmatprep.subr.bf16.mxu0 %v12642_v11  ;;  %v14105_v11 = vmul.f32 %v5584_v10, %v13352_v16 }
0x1e8a   : > { %11049 = vmatpush3.bf16.msra.mxu0 %v11048_v4 }
0x1e8d   : > { %10937 = vmatmul.mubr.msk.f32.vlgmr.msra.gmra.mrb[152].mxu0 %vm8311_vm8, %v14089_v56 }
0x1e8e   : > { %10939 = vmatprep.mubr.msk.f32.mxu0 %vm12644_vm1, %v12643_v12 }
0x1e91   : > { %10940 = vmatmul.mubr.msk.f32.gmra.mrb[154].mxu0 %vm8311_vm8, %v14098_v19 }
0x1e92   : > { %10942 = vmatprep.mubr.msk.f32.mxu0 %vm12644_vm1, %v12643_v12 }
0x1e95   : > { %10943 = vmatmul.mubr.msk.f32.gmra.mrb[156].mxu0 %vm8311_vm8, %v14105_v11 }
0x1f40   : > { %v8095_v28 = vpop.f32.mrb[140].mxu0 }
0x1f41   : > { %v8192_v29 = vadd.f32 %v8191_v50, %v8095_v28  ;;  %v10874_v20 = vpop.f32.mrb[141].mxu0 }
0x1f44   : > { %v8100_v21 = vpop.f32.mrb[142].mxu0 }
0x1f45   : > { %v8195_v26 = vadd.f32 %v8194_v1, %v8100_v21  ;;  %v10877_v22 = vpop.f32.mrb[143].mxu0 }
0x1f48   : > { %v8105_v3 = vpop.f32.mrb[144].mxu0 }
0x1f49   : > { %v8200_v23 = vadd.f32 %v10899_v62, %v8105_v3  ;;  %v10880_v24 = vpop.f32.mrb[145].mxu0 }
0x1f4c   : > { %v8271_v25 = vpop.f32.mrb[146].mxu0 }
0x1f4d   : > { %v8285_v27 = vadd.f32 %v8271_v25, %v8192_v29  ;;  %v10909_v44 = vpop.f32.mrb[147].mxu0 }
0x1f4f   : > { %v8295_v12 = vadd.f32 %v9580_v5, %v8285_v27 }
0x1f50   : > { %v8276_v8 = vpop.f32.mrb[148].mxu0 }
0x1f51   : > { %v8286_v9 = vadd.f32 %v8276_v8, %v8195_v26  ;;  %v10912_v31 = vpop.f32.mrb[149].mxu0  ;;  %v8298_v17 = vmul.f32 %v8295_v12, %v13346_v61 }
0x1f53   : > { %v8296_v34 = vadd.f32 %v9580_v5, %v8286_v9  ;;  %8410 = vrot.lane.b32.xlu0 %v8298_v17, %s12646_s18 }
0x1f54   : > { %v8281_v35 = vpop.f32.mrb[150].mxu0 }
0x1f55   : > { %v8287_v37 = vadd.f32 %v8281_v35, %v8200_v23  ;;  %v8299_v38 = vmul.f32 %v8296_v34, %v13348_v7  ;;  %v10915_v39 = vpop.f32.mrb[151].mxu0 }
0x1f57   : > { %v8297_v40 = vadd.f32 %v9580_v5, %v8287_v37  ;;  %8412 = vrot.lane.b32.xlu1 %v8299_v38, %s12646_s18 }
0x1f59   : > { %v8300_v41 = vmul.f32 %v8297_v40, %v13352_v16 }
0x1f5b   : > { %8414 = vrot.lane.b32.xlu0 %v8300_v41, %s12646_s18 }
0x1f60   : > { %v8387_v42 = vpop.f32.mrb[152].mxu0 }
0x1f61   : > { %v8401_v61 = vadd.f32 %v8387_v42, %v8298_v17  ;;  %v10938_v43 = vpop.f32.mrb[153].mxu0 }
0x1f62   : > { %12469 = shalt.err (!%p12466_p1)
}
0x1f63   : > { %s12470_s22 = scalar_lea.hbm %s14115_s5, 16  ;;  %s12474_s6 = scalar_lea.hbm %s12867_s4, 32 }
0x1f64   : > { %p12471_p2 = scmp.ne.s32.totalorder %s14115_s5, %s12470_s22  ;;  %p12475_p7 = scmp.lt.u32.totalorder %s14115_s5, %s12867_s4 }
0x1f65   : > { %p12476_p8 = scmp.lt.u32.totalorder %s12474_s6, %s12470_s22  ;;  %p12478_p13 = scmp.lt.u32.totalorder %s12470_s22, %s14115_s5 }
0x1f66   : > { %p12472_p3 = pnand %p12471_p2, %p14342_p6 }
0x1f67   : > { %p12477_p11 = por %p12476_p8, %p12475_p7 }
0x1f68   : > { %p12473_p4 = pneg %p12472_p3 }
0x1f69   : > { %p12479_p0 = por %p12478_p13, %p12477_p11 }
0x1f6b   : > { %p12480_p5 = pnand %p12479_p0, %p12473_p4 }
0x1f6d   : > { %12483 = shalt.err (!%p12480_p5)
}
0x1f6e   : > { %11161 = dma.vmem_to_hbm [thread:$0]  (%p14342_p6), %s8468_s3, 16, %s14115_s5, %s8452_s8   ;;  %v8404_v7 = vmul.f32 0.5, %v8401_v61  ;;  %v8392_v16 = vpop.f32.mrb[154].mxu0  ;;  %vm8434_vm9 = vcmask 916480  }
0x1f6f   : > { %v8402_v18 = vadd.f32 %v8392_v16, %v8299_v38  ;;  %s12648_s12 = smov 112   ;;  %v10941_v45 = vpop.f32.mrb[155].mxu0  ;;  %s11064_s13 = smul.u32 48, %s13282_s1 }
0x1f70   : > { %8422 = vrot.lane.b32.xlu1 %v8404_v7, %s12648_s12  ;;  %v8397_v51 = vpop.f32.mrb[156].mxu0 }
0x1f71   : > { %v8405_v46 = vmul.f32 0.5, %v8402_v18  ;;  %v8403_v47 = vadd.f32 %v8397_v51, %v8300_v41  ;;  %v10944_v30 = vpop.f32.mrb[157].mxu0  ;;  %s1599_s7 = scalar_lea.vmem %s12862_s9, %s11064_s13 }
0x1f73   : > { %8424 = vrot.lane.b32.xlu0 %v8405_v46, %s12648_s12  ;;  %v8406_v48 = vmul.f32 0.5, %v8403_v47 }
0x1f75   : > { %8426 = vrot.lane.b32.xlu1 %v8406_v48, %s12648_s12 }
0x1fc5   : > { %v8411_v36 = vpop.permute.xlu0 %8410 }
0x1fc6   : > { %v8431_v53 = vsel %vm8311_vm8, %v14089_v56, %v8411_v36 }
0x1fc9   : > { %v8413_v6 = vpop.permute.xlu1 %8412 }
0x1fca   : > { %v8432_v55 = vsel %vm8311_vm8, %v14098_v19, %v8413_v6 }
0x1fcd   : > { %v8415_v49 = vpop.permute.xlu0 %8414 }
0x1fce   : > { %v8433_v59 = vsel %vm8311_vm8, %v14105_v11, %v8415_v49 }
0x1fe2   : > { %v8423_v14 = vpop.permute.xlu1 %8422 }
0x1fe3   : > { %v8435_v54 = vsel %vm8434_vm9, %v8431_v53, %v8423_v14  ;;  %8439 = vst.msk [vmem:[%s1599_s7 + $0x8] sm:$0xff] %vm2385_vm5, %v8423_v14 }
0x1fe4   : > { %8438 = vst [vmem:[%s1599_s7] sm:$0xff] %v8435_v54 }
0x1fe5   : > { %v8425_v58 = vpop.permute.xlu0 %8424 }
0x1fe6   : > { %v8436_v32 = vsel %vm8434_vm9, %v8432_v55, %v8425_v58  ;;  %8441 = vst.msk [vmem:[%s1599_s7 + $0x18] sm:$0xff] %vm2385_vm5, %v8425_v58 }
0x1fe7   : > { %8440 = vst [vmem:[%s1599_s7 + $0x10] sm:$0xff] %v8436_v32  ;;  %v8427_v33 = vpop.permute.xlu1 %8426 }
0x1fe8   : > { %v8437_v60 = vsel %vm8434_vm9, %v8433_v59, %v8427_v33  ;;  %8443 = vst.msk [vmem:[%s1599_s7 + $0x28] sm:$0xff] %vm2385_vm5, %v8427_v33 }
0x1fe9   : > { %8442 = vst [vmem:[%s1599_s7 + $0x20] sm:$0xff] %v8437_v60 }
0x1fea PF: > { %s14343_s10 = sld [smem:[#allocation88_spill]]  ;;  %s14344_s5 = sld [smem:[#allocation86_spill]] }
0x1feb   : > { %s14345_s1 = sld [smem:[#allocation91_spill]] }
0x1ff0   : > { %p11288_p6 = scmp.ge.s32.totalorder %s14343_s10, 2  ;;  %s8487_s3 = sand.u32 1, %s14344_s5  }
0x1ff1   : > { %p14346_p9 = scmp.ne.s32.totalorder %s14345_s1, 0  ;;  %s8488_s8 = scalar_lea.sflag [#allocation4], %s8487_s3 }
0x1ff3   : > { %p11237_p10 = pnand %p11288_p6, %p14346_p9 }
0x1ff5   : > { %12553 = dma.done.wait (!%p11237_p10), %s8488_s8, 16  }
0x1ff6   : > { %12555 = vsyncadd (!%p11237_p10), %s8488_s8, 4294967280  ;;  %s14347_s18 = sld [smem:[#allocation89_spill]]  ;;  %s14348_s2 = sld [smem:[#allocation87_spill]] }
0x1ff7   : > { %s14349_s0 = sld [smem:[#allocation90_spill]]  ;;  %14350 = sst [smem:[#allocation86_spill]] %s12562_s16 }
0x1ffc   : > { %p109_p12 = scmp.ge.s32.totalorder %s14347_s18, 4   ;;  %s14351_s16 = smov %s14348_s2 }
0x1ffe   :  { %111 = sbr.rel (!%p109_p12) target bundleno = 93 (0x5d), region = 392 }
0x2005   :  { %8492 = vsyncpa [#allocation3], 1 }
0x2006   :  { %8494 = vsyncpa [#allocation3 + $0x1], 1 }
0x2007   :  { %8495 = vsyncpa [#allocation6], 1 }
0x2008   :  { %8496 = vsyncpa [#allocation9], 1 }
0x2009   :  { %8497 = vsyncpa [#allocation12], 1 }
0x200a   :  { %8498 = vsyncpa [#allocation15], 1 }
0x200b   :  { %8499 = vsyncpa [#allocation18], 1 }
0x200c   :  { %8500 = vsyncpa [#allocation21], 1 }
0x200d   :  { %8501 = vsyncpa [#allocation24], 1 }
0x200e   :  { %8502 = vsyncpa [#allocation27], 1 }
0x200f   :  { %8503 = vsyncpa [#allocation30], 1 }
0x2010   :  { %8504 = vsyncpa [#allocation33], 1 }
0x2011   :  { %8505 = vsyncpa [#allocation36], 1 }
0x2012   :  { %8506 = vsyncpa [#allocation39], 1 }
0x2013   :  { %8507 = vsyncpa [#allocation4], 1 }
0x2014   :  { %8509 = vsyncpa [#allocation4 + $0x1], 1 }

</bundles_post_ra>
